<compile_context>
chip_gen: v5e
topology: v5e:2x2
jax: 0.10.0
libtpu: 0.0.40
codegen_flags: <defaults>
</compile_context>

<pallas_src>
import functools

import jax
import jax.numpy as jnp
from jax import lax
from jax.experimental import pallas as pl
from jax.experimental.pallas import tpu as pltpu

BN_EPS = 1e-5
LEAKY_SLOPE = 0.1
KSIZE = 3
PAD = 1
MAX_TCOUT = 256                 # output-channel tile (multiple of 128)
SMALL_CIN = 128                 # below this, pack the 9 taps into the contraction dim
RESIDENT_IMG_BUF1_BYTES = 2 << 20   # single-buffer the resident image above this size


def _round_up(x, m):
    return ((x + m - 1) // m) * m


@functools.lru_cache(maxsize=1)
def _vmem_capacity_bytes():
    try:
        return int(pltpu.get_tpu_info().vmem_capacity_bytes)
    except Exception:
        return 64 * 1024 * 1024     # conservative (v7x-sized) fallback


# -----------------------------------------------------------------------------
# Kernels: one (M-tile, Cout-tile) of
#   out = leaky_relu( conv3x3(x) * bn_scale + bn_bias )
# with bf16 operands, f32 accumulation, bf16 store. BN scale is folded into w.
# -----------------------------------------------------------------------------
def _epilogue(acc, b_ref, o_ref):
    y = acc + b_ref[...]
    o_ref[...] = jnp.maximum(y, LEAKY_SLOPE * y).astype(o_ref.dtype)


def _kernel_multidot(x_ref, w_ref, b_ref, o_ref, *, taps, tm, multi_m):
    # Large-Cin path: 9 accumulating MXU dots (K = Cin is already MXU-deep).
    # x_ref: (P, L, Cin) bf16   w_ref: (9, Cin, TCout) bf16
    # b_ref: (1, TCout) f32     o_ref: (TM, TCout) bf16
    m0 = pl.multiple_of(pl.program_id(2) * tm, tm) if multi_m else 0
    acc = None
    for t, (p, off) in enumerate(taps):            # unrolled at trace time
        lhs = x_ref[p, pl.ds(m0 + off, tm), :]     # unit-stride shifted slice
        c = jnp.dot(lhs, w_ref[t], preferred_element_type=jnp.float32)
        acc = c if acc is None else acc + c
    _epilogue(acc, b_ref, o_ref)


def _kernel_packed(x_ref, w_ref, b_ref, o_ref, pack_ref, *, taps, tm, cin, multi_m):
    # Small-Cin path: pack the 9 taps into the contraction dim (K = 9*Cin) via
    # a VMEM scratch, then ONE MXU dot.
    # x_ref: (P, L, Cin) bf16   w_ref: (9*Cin, TCout) bf16
    # pack_ref: (TM, 9*Cin) bf16 scratch
    m0 = pl.multiple_of(pl.program_id(2) * tm, tm) if multi_m else 0
    for t, (p, off) in enumerate(taps):            # unrolled at trace time
        pack_ref[:, t * cin:(t + 1) * cin] = x_ref[p, pl.ds(m0 + off, tm), :]
    acc = jnp.dot(pack_ref[...], w_ref[...], preferred_element_type=jnp.float32)
    _epilogue(acc, b_ref, o_ref)


# -----------------------------------------------------------------------------
# Wrapper: layout prep (pure data movement, ~1x input bytes) + pallas_call
# -----------------------------------------------------------------------------
def darknet_conv_bn(x_nchw, w_hwio, gamma, beta, mean, var, *, stride):
    """Forward of Darknet_conv_bn (inference-mode BatchNorm)."""
    N, Cin, H, W = x_nchw.shape
    kh, kw, wcin, Cout = w_hwio.shape
    assert (kh, kw) == (KSIZE, KSIZE) and wcin == Cin

    s = stride
    Ho = (H + 2 * PAD - KSIZE) // s + 1
    Wo = (W + 2 * PAD - KSIZE) // s + 1
    A = -(-KSIZE // s)            # within-phase taps per spatial dim (3 if s=1, 2 if s=2)
    Rph = Ho + A - 1              # phase rows needed
    Cph = Wo + A - 1              # phase cols needed
    Hp, Wp = s * Rph, s * Cph     # padded spatial extents (>= H+2, W+2)

    # ---- per-generation sizing ----
    vmem_cap = _vmem_capacity_bytes()
    big_vmem = vmem_cap >= 128 * 1024 * 1024
    max_tm = 1024 if big_vmem else 512
    vmem_limit = (80 if big_vmem else 40) * 1024 * 1024

    # ---- fold BN (inference, running stats) into weights/bias; bf16 operands ----
    inv_std = 1.0 / jnp.sqrt(var.astype(jnp.float32) + BN_EPS)
    scale = gamma.astype(jnp.float32) * inv_std                           # (Cout,)
    bias = beta.astype(jnp.float32) - mean.astype(jnp.float32) * scale    # (Cout,)
    w_mat = (w_hwio.astype(jnp.float32) * scale).astype(jnp.bfloat16)
    w_mat = w_mat.reshape(KSIZE * KSIZE, Cin, Cout)       # tap-major: t = ky*3 + kx

    # pad Cout to a multiple of 128 so output stores are lane-dense / unmasked
    cout_p = _round_up(Cout, 128)
    if cout_p != Cout:
        w_mat = jnp.pad(w_mat, ((0, 0), (0, 0), (0, cout_p - Cout)))
        bias = jnp.pad(bias, (0, cout_p - Cout))
    tcout = MAX_TCOUT if cout_p % MAX_TCOUT == 0 else 128
    n_c = cout_p // tcout

    # ---- activation layout prep (NHWC, zero pad, stride-phase split, flatten) ----
    x = jnp.transpose(x_nchw, (0, 2, 3, 1)).astype(jnp.bfloat16)          # NHWC
    x = jnp.pad(x, ((0, 0), (PAD, Hp - PAD - H), (PAD, Wp - PAD - W), (0, 0)))
    # split into s*s stride phases so every kernel tap is a unit-stride slice
    x = x.reshape(N, Rph, s, Cph, s, Cin).transpose(0, 2, 4, 1, 3, 5)
    x = x.reshape(N, s * s, Rph * Cph, Cin)

    # ---- spatial (M) tiling ----
    Mk = Ho * Cph                                     # computed output rows / image
    tm = min(max_tm, _round_up(Mk, 16))               # 16: bf16 sublane packing
    n_m = -(-Mk // tm)
    m_pad = n_m * tm

    # taps: (phase index, flat offset inside the phase), tap-major (ky, kx) order
    taps = []
    for ky in range(KSIZE):
        for kx in range(KSIZE):
            taps.append(((ky % s) * s + (kx % s), (ky // s) * Cph + kx // s))
    off_max = max(off for _, off in taps)

    # pad flattened phase dim so every tap slice (off + [0, m_pad)) stays in bounds
    L = off_max + m_pad
    x = jnp.pad(x, ((0, 0), (0, 0), (0, L - Rph * Cph), (0, 0)))

    packed = Cin < SMALL_CIN
    if packed:
        w_call = w_mat.reshape(KSIZE * KSIZE * Cin, cout_p)
        kernel = functools.partial(_kernel_packed, taps=tuple(taps), tm=tm,
                                   cin=Cin, multi_m=(n_m > 1))
        scratch = [pltpu.VMEM((tm, KSIZE * KSIZE * Cin), jnp.bfloat16)]
    else:
        w_call = w_mat
        kernel = functools.partial(_kernel_multidot, taps=tuple(taps), tm=tm,
                                   multi_m=(n_m > 1))
        scratch = []

    # ---- grid ordering: keep the larger re-streamed operand on the outer axis ----
    img_bytes = s * s * L * Cin * 2                   # resident phase image / batch elem
    w_bytes = KSIZE * KSIZE * Cin * cout_p * 2        # full folded weights
    weights_outer = (N > 1 and n_c > 1 and img_bytes * (n_c - 1) < w_bytes * (N - 1))

    if weights_outer:
        grid = (n_c, N, n_m)
        img_map = lambda j, n, i: (n, 0, 0, 0)
        wp_map = lambda j, n, i: (0, j)
        wm_map = lambda j, n, i: (0, 0, j)
        b_map = lambda j, n, i: (0, j)
        out_map = lambda j, n, i: (n, i, j)
    else:
        grid = (N, n_c, n_m)
        img_map = lambda n, j, i: (n, 0, 0, 0)
        wp_map = lambda n, j, i: (0, j)
        wm_map = lambda n, j, i: (0, 0, j)
        b_map = lambda n, j, i: (0, j)
        out_map = lambda n, j, i: (n, i, j)

    img_spec_kwargs = {}
    if (not weights_outer) and img_bytes > RESIDENT_IMG_BUF1_BYTES:
        # big resident image: single-buffer it (only changes on the outer batch axis)
        img_spec_kwargs["pipeline_mode"] = pl.Buffered(1)

    if packed:
        w_spec = pl.BlockSpec((KSIZE * KSIZE * Cin, tcout), wp_map)
    else:
        w_spec = pl.BlockSpec((KSIZE * KSIZE, Cin, tcout), wm_map)

    out = pl.pallas_call(
        kernel,
        out_shape=jax.ShapeDtypeStruct((N, m_pad, cout_p), jnp.bfloat16),
        grid=grid,
        in_specs=[
            # whole (phase-split) image per batch element, resident across inner steps
            pl.BlockSpec((None, s * s, L, Cin), img_map, **img_spec_kwargs),
            w_spec,
            pl.BlockSpec((1, tcout), b_map),
        ],
        out_specs=pl.BlockSpec((None, tm, tcout), out_map),
        scratch_shapes=scratch,
        compiler_params=pltpu.CompilerParams(
            dimension_semantics=("parallel", "parallel", "parallel"),
            vmem_limit_bytes=vmem_limit,
        ),
    )(x, w_call, bias[None, :])

    # drop padded M rows, over-computed (>= Wo) columns and padded channels;
    # relayout on the bf16 output, convert to f32 fused with the transpose copy.
    out = out[:, :Mk, :Cout].reshape(N, Ho, Cph, Cout)[:, :, :Wo, :]
    out = jnp.transpose(out, (0, 3, 1, 2))
    return out.astype(jnp.float32)

    # TODO(synk): for very large spatial extents (> ~VMEM/3 resident image),
    # stream row-blocks of the phase tensor with a manual halo DMA instead of
    # keeping the whole image resident.


# -----------------------------------------------------------------------------
# Pure-JAX reference (f32) for correctness checking
# -----------------------------------------------------------------------------
def _reference(x, w, gamma, beta, mean, var, stride):
    y = lax.conv_general_dilated(
        x, w, window_strides=(stride, stride),
        padding=((PAD, PAD), (PAD, PAD)),
        dimension_numbers=("NCHW", "HWIO", "NCHW"))
    scale = gamma / jnp.sqrt(var + BN_EPS)
    shift = beta - mean * scale
    y = y * scale[None, :, None, None] + shift[None, :, None, None]
    return jnp.where(y >= 0.0, y, LEAKY_SLOPE * y)


def _make_inputs(key, N, Cin, H, W, Cout):
    k_x, k_w, k_g, k_b, k_m, k_v = jax.random.split(key, 6)
    x = jax.random.normal(k_x, (N, Cin, H, W), jnp.float32)
    fan_in = KSIZE * KSIZE * Cin
    w = jax.random.normal(k_w, (KSIZE, KSIZE, Cin, Cout), jnp.float32) * (2.0 / fan_in) ** 0.5
    gamma = 1.0 + 0.1 * jax.random.normal(k_g, (Cout,), jnp.float32)
    beta = 0.01 * jax.random.normal(k_b, (Cout,), jnp.float32)
    mean = 0.01 * jax.random.normal(k_m, (Cout,), jnp.float32)
    var = 1.0 + 0.1 * jnp.abs(jax.random.normal(k_v, (Cout,), jnp.float32))
    return x, w, gamma, beta, mean, var


def _check(args, stride):
    x, w, gamma, beta, mean, var = args
    N, Cin, H, W = x.shape
    Cout = w.shape[-1]
    fwd = jax.jit(functools.partial(darknet_conv_bn, stride=stride))
    out = fwd(x, w, gamma, beta, mean, var)
    jax.block_until_ready(out)

    Ho = (H + 2 * PAD - KSIZE) // stride + 1
    Wo = (W + 2 * PAD - KSIZE) // stride + 1
    assert out.shape == (N, Cout, Ho, Wo), out.shape
    assert bool(jnp.all(jnp.isfinite(out)))

    ref = _reference(x, w, gamma, beta, mean, var, stride)
    max_err = float(jnp.max(jnp.abs(out - ref)))
    assert bool(jnp.allclose(out, ref, atol=5e-2, rtol=5e-2)), (stride, max_err)


if __name__ == "__main__":
    key = jax.random.PRNGKey(0)
    k0, k1 = jax.random.split(key, 2)

    # Small-Cin (packed-tap) path, Cout < 128 (lane padding), both strides.
    args_small = _make_inputs(k0, N=2, Cin=32, H=16, W=16, Cout=64)
    for stride in (1, 2):
        _check(args_small, stride)

    # Large-Cin (multi-dot) path, lane-aligned Cout.
    args_big = _make_inputs(k1, N=1, Cin=128, H=8, W=8, Cout=128)
    _check(args_big, 1)

    print("KERNEL_OK")
</pallas_src>

<mosaic_0001>
module attributes {stable_mosaic.version = 11 : i64} {
  func.func @_kernel_packed(%arg0: i32, %arg1: i32, %arg2: i32, %arg3: memref<1x1x326x32xbf16, #tpu.memory_space<vmem>>, %arg4: memref<288x128xbf16, #tpu.memory_space<vmem>>, %arg5: memref<1x128xf32, #tpu.memory_space<vmem>>, %arg6: memref<1x288x128xbf16, #tpu.memory_space<vmem>>, %arg7: memref<288x288xbf16, #tpu.memory_space<vmem>>) attributes {dimension_semantics = [#tpu.dimension_semantics<parallel>, #tpu.dimension_semantics<parallel>, #tpu.dimension_semantics<parallel>], iteration_bounds = array<i64: 2, 1, 1>, scalar_prefetch = 0 : i64, scratch_operands = 1 : i64, tpu.core_type = #tpu.core_type<tc>, window_params = [{transform_indices = @transform_0, window_bounds = array<i64: 1, 1, 326, 32>}, {transform_indices = @transform_1, window_bounds = array<i64: 288, 128>}, {transform_indices = @transform_2, window_bounds = array<i64: 1, 128>}, {transform_indices = @transform_3, window_bounds = array<i64: 1, 288, 128>}]} {
    %c0 = arith.constant 0 : index
    %c0_0 = arith.constant 0 : index
    %c0_1 = arith.constant 0 : index
    %c0_2 = arith.constant 0 : index
    %0 = vector.load %arg3[%c0, %c0_0, %c0_1, %c0_2] : memref<1x1x326x32xbf16, #tpu.memory_space<vmem>>, vector<1x1x288x32xbf16>
    %1 = vector.shape_cast %0 : vector<1x1x288x32xbf16> to vector<288x32xbf16>
    %c0_3 = arith.constant 0 : index
    %c0_4 = arith.constant 0 : index
    %2 = vector.load %arg7[%c0_3, %c0_4] : memref<288x288xbf16, #tpu.memory_space<vmem>>, vector<288x32xbf16>
    tpu.vector_store %arg7[%c0_3, %c0_4], %1 {strides = array<i32>} : memref<288x288xbf16, #tpu.memory_space<vmem>>, vector<288x32xbf16>,
    %c0_5 = arith.constant 0 : index
    %c0_6 = arith.constant 0 : index
    %c1 = arith.constant 1 : index
    %c0_7 = arith.constant 0 : index
    %3 = vector.load %arg3[%c0_5, %c0_6, %c1, %c0_7] : memref<1x1x326x32xbf16, #tpu.memory_space<vmem>>, vector<1x1x288x32xbf16>
    %4 = vector.shape_cast %3 : vector<1x1x288x32xbf16> to vector<288x32xbf16>
    %c0_8 = arith.constant 0 : index
    %c32 = arith.constant 32 : index
    %5 = vector.load %arg7[%c0_8, %c32] : memref<288x288xbf16, #tpu.memory_space<vmem>>, vector<288x32xbf16>
    tpu.vector_store %arg7[%c0_8, %c32], %4 {strides = array<i32>} : memref<288x288xbf16, #tpu.memory_space<vmem>>, vector<288x32xbf16>,
    %c0_9 = arith.constant 0 : index
    %c0_10 = arith.constant 0 : index
    %c2 = arith.constant 2 : index
    %c0_11 = arith.constant 0 : index
    %6 = vector.load %arg3[%c0_9, %c0_10, %c2, %c0_11] : memref<1x1x326x32xbf16, #tpu.memory_space<vmem>>, vector<1x1x288x32xbf16>
    %7 = vector.shape_cast %6 : vector<1x1x288x32xbf16> to vector<288x32xbf16>
    %c0_12 = arith.constant 0 : index
    %c64 = arith.constant 64 : index
    %8 = vector.load %arg7[%c0_12, %c64] : memref<288x288xbf16, #tpu.memory_space<vmem>>, vector<288x32xbf16>
    tpu.vector_store %arg7[%c0_12, %c64], %7 {strides = array<i32>} : memref<288x288xbf16, #tpu.memory_space<vmem>>, vector<288x32xbf16>,
    %c0_13 = arith.constant 0 : index
    %c0_14 = arith.constant 0 : index
    %c18 = arith.constant 18 : index
    %c0_15 = arith.constant 0 : index
    %9 = vector.load %arg3[%c0_13, %c0_14, %c18, %c0_15] : memref<1x1x326x32xbf16, #tpu.memory_space<vmem>>, vector<1x1x288x32xbf16>
    %10 = vector.shape_cast %9 : vector<1x1x288x32xbf16> to vector<288x32xbf16>
    %c0_16 = arith.constant 0 : index
    %c96 = arith.constant 96 : index
    %11 = vector.load %arg7[%c0_16, %c96] : memref<288x288xbf16, #tpu.memory_space<vmem>>, vector<288x32xbf16>
    tpu.vector_store %arg7[%c0_16, %c96], %10 {strides = array<i32>} : memref<288x288xbf16, #tpu.memory_space<vmem>>, vector<288x32xbf16>,
    %c0_17 = arith.constant 0 : index
    %c0_18 = arith.constant 0 : index
    %c19 = arith.constant 19 : index
    %c0_19 = arith.constant 0 : index
    %12 = vector.load %arg3[%c0_17, %c0_18, %c19, %c0_19] : memref<1x1x326x32xbf16, #tpu.memory_space<vmem>>, vector<1x1x288x32xbf16>
    %13 = vector.shape_cast %12 : vector<1x1x288x32xbf16> to vector<288x32xbf16>
    %c0_20 = arith.constant 0 : index
    %c128 = arith.constant 128 : index
    %14 = vector.load %arg7[%c0_20, %c128] : memref<288x288xbf16, #tpu.memory_space<vmem>>, vector<288x32xbf16>
    tpu.vector_store %arg7[%c0_20, %c128], %13 {strides = array<i32>} : memref<288x288xbf16, #tpu.memory_space<vmem>>, vector<288x32xbf16>,
    %c0_21 = arith.constant 0 : index
    %c0_22 = arith.constant 0 : index
    %c20 = arith.constant 20 : index
    %c0_23 = arith.constant 0 : index
    %15 = vector.load %arg3[%c0_21, %c0_22, %c20, %c0_23] : memref<1x1x326x32xbf16, #tpu.memory_space<vmem>>, vector<1x1x288x32xbf16>
    %16 = vector.shape_cast %15 : vector<1x1x288x32xbf16> to vector<288x32xbf16>
    %c0_24 = arith.constant 0 : index
    %c160 = arith.constant 160 : index
    %17 = vector.load %arg7[%c0_24, %c160] : memref<288x288xbf16, #tpu.memory_space<vmem>>, vector<288x32xbf16>
    tpu.vector_store %arg7[%c0_24, %c160], %16 {strides = array<i32>} : memref<288x288xbf16, #tpu.memory_space<vmem>>, vector<288x32xbf16>,
    %c0_25 = arith.constant 0 : index
    %c0_26 = arith.constant 0 : index
    %c36 = arith.constant 36 : index
    %c0_27 = arith.constant 0 : index
    %18 = vector.load %arg3[%c0_25, %c0_26, %c36, %c0_27] : memref<1x1x326x32xbf16, #tpu.memory_space<vmem>>, vector<1x1x288x32xbf16>
    %19 = vector.shape_cast %18 : vector<1x1x288x32xbf16> to vector<288x32xbf16>
    %c0_28 = arith.constant 0 : index
    %c192 = arith.constant 192 : index
    %20 = vector.load %arg7[%c0_28, %c192] : memref<288x288xbf16, #tpu.memory_space<vmem>>, vector<288x32xbf16>
    tpu.vector_store %arg7[%c0_28, %c192], %19 {strides = array<i32>} : memref<288x288xbf16, #tpu.memory_space<vmem>>, vector<288x32xbf16>,
    %c0_29 = arith.constant 0 : index
    %c0_30 = arith.constant 0 : index
    %c37 = arith.constant 37 : index
    %c0_31 = arith.constant 0 : index
    %21 = vector.load %arg3[%c0_29, %c0_30, %c37, %c0_31] : memref<1x1x326x32xbf16, #tpu.memory_space<vmem>>, vector<1x1x288x32xbf16>
    %22 = vector.shape_cast %21 : vector<1x1x288x32xbf16> to vector<288x32xbf16>
    %c0_32 = arith.constant 0 : index
    %c224 = arith.constant 224 : index
    %23 = vector.load %arg7[%c0_32, %c224] : memref<288x288xbf16, #tpu.memory_space<vmem>>, vector<288x32xbf16>
    tpu.vector_store %arg7[%c0_32, %c224], %22 {strides = array<i32>} : memref<288x288xbf16, #tpu.memory_space<vmem>>, vector<288x32xbf16>,
    %c0_33 = arith.constant 0 : index
    %c0_34 = arith.constant 0 : index
    %c38 = arith.constant 38 : index
    %c0_35 = arith.constant 0 : index
    %24 = vector.load %arg3[%c0_33, %c0_34, %c38, %c0_35] : memref<1x1x326x32xbf16, #tpu.memory_space<vmem>>, vector<1x1x288x32xbf16>
    %25 = vector.shape_cast %24 : vector<1x1x288x32xbf16> to vector<288x32xbf16>
    %c0_36 = arith.constant 0 : index
    %c256 = arith.constant 256 : index
    %26 = vector.load %arg7[%c0_36, %c256] : memref<288x288xbf16, #tpu.memory_space<vmem>>, vector<288x32xbf16>
    tpu.vector_store %arg7[%c0_36, %c256], %25 {strides = array<i32>} : memref<288x288xbf16, #tpu.memory_space<vmem>>, vector<288x32xbf16>,
    %c0_37 = arith.constant 0 : index
    %c0_38 = arith.constant 0 : index
    %27 = vector.load %arg7[%c0_37, %c0_38] : memref<288x288xbf16, #tpu.memory_space<vmem>>, vector<288x288xbf16>
    %c0_39 = arith.constant 0 : index
    %c0_40 = arith.constant 0 : index
    %28 = vector.load %arg4[%c0_39, %c0_40] : memref<288x128xbf16, #tpu.memory_space<vmem>>, vector<288x128xbf16>
    %cst = arith.constant dense<0.000000e+00> : vector<288x128xf32>
    %29 = tpu.matmul %27, %28, %cst {dimension_numbers = #tpu.dot_dimension_numbers<[1], [0], [0], [1], [0, 0, 1, 1], [], []>} : vector<288x288xbf16>, vector<288x128xbf16>, vector<288x128xf32> -> vector<288x128xf32>
    %c0_41 = arith.constant 0 : index
    %c0_42 = arith.constant 0 : index
    %30 = vector.load %arg5[%c0_41, %c0_42] : memref<1x128xf32, #tpu.memory_space<vmem>>, vector<1x128xf32>
    %31 = vector.broadcast %30 : vector<1x128xf32> to vector<288x128xf32>
    %32 = arith.addf %29, %31 : vector<288x128xf32>
    %cst_43 = arith.constant 1.000000e-01 : f32
    %33 = vector.broadcast %cst_43 : f32 to vector<288x128xf32>
    %34 = arith.mulf %33, %32 : vector<288x128xf32>
    %35 = arith.maximumf %32, %34 : vector<288x128xf32>
    %36 = arith.truncf %35 : vector<288x128xf32> to vector<288x128xbf16>
    %c0_44 = arith.constant 0 : index
    %c0_45 = arith.constant 0 : index
    %c0_46 = arith.constant 0 : index
    %37 = vector.load %arg6[%c0_44, %c0_45, %c0_46] : memref<1x288x128xbf16, #tpu.memory_space<vmem>>, vector<1x288x128xbf16>
    %38 = vector.shape_cast %37 : vector<1x288x128xbf16> to vector<288x128xbf16>
    %39 = vector.shape_cast %36 : vector<288x128xbf16> to vector<1x288x128xbf16>
    tpu.vector_store %arg6[%c0_44, %c0_45, %c0_46], %39 {strides = array<i32>} : memref<1x288x128xbf16, #tpu.memory_space<vmem>>, vector<1x288x128xbf16>,
    return
  }
  func.func @transform_0(%arg0: i32, %arg1: i32, %arg2: i32) -> (i32, i32, i32, i32) {
    %c0_i32 = arith.constant 0 : i32
    %c0_i32_0 = arith.constant 0 : i32
    %c0_i32_1 = arith.constant 0 : i32
    %c0_i32_2 = arith.constant 0 : i32
    return %arg0, %c0_i32, %c0_i32_0, %c0_i32_1 : i32, i32, i32, i32
  }
  func.func @transform_1(%arg0: i32, %arg1: i32, %arg2: i32) -> (i32, i32) {
    %c0_i32 = arith.constant 0 : i32
    %c0_i32_0 = arith.constant 0 : i32
    return %c0_i32, %arg1 : i32, i32
  }
  func.func @transform_2(%arg0: i32, %arg1: i32, %arg2: i32) -> (i32, i32) {
    %c0_i32 = arith.constant 0 : i32
    %c0_i32_0 = arith.constant 0 : i32
    return %c0_i32, %arg1 : i32, i32
  }
  func.func @transform_3(%arg0: i32, %arg1: i32, %arg2: i32) -> (i32, i32, i32) {
    %c0_i32 = arith.constant 0 : i32
    return %arg0, %arg2, %arg1 : i32, i32, i32
  }
}

</mosaic_0001>

<bundles_post_ra>
// kernel: darknet_conv_bn.1
= control target key start
LH: loop header
LB: loop body
LE: loop exit
PB: predicated region body
PF: predicated region fallthrough
CT: control target
= control target key end

     0   :  { %s5175_s12 = smov 0   ;;  %s5177_s13 = smov 0   ;;  %s7715_s0 = inlined_call_operand.vmem [shape: bf16[2,1,326,32], index: 0, kind: input, shape index: {}]   ;;  %s7716_s1 = inlined_call_operand.vmem [shape: bf16[288,128], index: 1, kind: input, shape index: {}]   ;;  %s7717_s2 = inlined_call_operand.vmem [shape: f32[1,128], index: 2, kind: input, shape index: {}]   ;;  %s7718_s3 = inlined_call_operand.vmem [shape: bf16[2,288,128], index: 3, kind: output, shape index: {}]  }
   0x1   :  { %s5179_s14 = smov 0  }
   0x2 LB: > { %s32_s15 = sadd.s32 1, %s5146_s13  ;;  %p4582_p0 = scmp.ge.s32.totalorder %s5150_s14, 1  ;;  %s5150_s14 = sphi %s5179_s14, %s13_s14   ;;  %s5146_s13 = sphi %s5177_s13, %s7746_s13   ;;  %s5142_s12 = sphi %s5175_s12, %s7745_s12  }
   0x3   : > { %p34_p1 = scmp.ge.s32.totalorder %s32_s15, 2  ;;  %p177_p2 = scmp.lt.s32.totalorder %s5150_s14, 3 }
   0x5   : > { %s7748_s15 = smov (%p34_p1, %s32_s15), 0  ;;  %p178_p3 = pnand %p4582_p0, %p177_p2 }
   0x6   : > { %p215_p4 = scmp.lt.s32.totalorder (!%p178_p3), %s5142_s12, 1  ;;  %s5152_s20 = smov (!%p178_p3), 32  }
   0x7   : > { %181 = sbr.rel (%p178_p3) target bundleno = 866 (0x362), region = 32  ;;  %s5153_s21 = smov (!%p178_p3), 64  }
   0x8   : > { %s5154_s22 = smov (!%p178_p3), 96  }
   0xc   : > { %s7750_s12 = smov (!%p215_p4, %s5142_s12), 1  ;;  %vm351_vm0 = vsmask.f32 3328  ;;  %vm352_vm1 = vsmask.f32 7440  ;;  %vm277_vm3 = vcmask 257024  }
   0xd   : > { %s5095_s16 = smul.u32 164, %s7750_s12  ;;  %vm5209_vm2 = vmor %vm351_vm0, %vm352_vm1  ;;  %vm937_vm4 = vcmask 1042432   ;;  %vm938_vm5 = vcmask 1046532   ;;  %vm826_vm7 = vcmask 519424   ;;  %vm1157_vm8 = vcmask 781824  }
   0xe   : > { %vm5360_vm6 = vmor %vm937_vm4, %vm938_vm5  ;;  %vm2076_vm9 = vcmask 1041408   ;;  %vm2077_vm10 = vcmask 1045508   ;;  %vm2696_vm12 = vsmask.f32 1280  ;;  %vm2697_vm13 = vsmask.f32 5392 }
   0xf   : > { %s5199_s19 = scalar_lea.vmem %s7715_s0, %s5095_s16  ;;  %vm5649_vm11 = vmor %vm2076_vm9, %vm2077_vm10  ;;  %vm3285_vm15 = vcmask 1040384   ;;  %vm3286_vm0 = vcmask 1044484   ;;  %vm1485_vm4 = vcmask 1044224   ;;  %vm1559_vm5 = vsmask.f32 2304  ;;  %s5096_s27 = smul.u32 144, %s7750_s12 }
  0x10   : > { %v316_v0 = vld [vmem:[%s5199_s19 + $0x8] sm:$0xf]  ;;  %v317_v1 = vld [vmem:[%s5199_s19 + $0xc] sm:$0xf]  ;;  %v314_v2 = vld [vmem:[%s5199_s19] sm:$0xf] }
  0x11   : > { %v374_v3 = vshll.u32 %v316_v0, 16  ;;  %v378_v4 = vshrl.u32 %v316_v0, 16  ;;  %v384_v5 = vshll.u32 %v317_v1, 16  ;;  %v388_v6 = vshrl.u32 %v317_v1, 16  ;;  %v315_v7 = vld [vmem:[%s5199_s19 + $0x4] sm:$0xf]  ;;  %vm5696_vm14 = vmor %vm2696_vm12, %vm2697_vm13  ;;  %s7153_s29 = scalar_lea.vmem %s7718_s3, %s5096_s27 }
  0x12   : > { %v355_v8 = vshrl.u32 %v314_v2, 16  ;;  %v358_v9 = vshll.u32 %v314_v2, 16  ;;  %v364_v10 = vshll.u32 %v315_v7, 16  ;;  %v368_v11 = vshrl.u32 %v315_v7, 16  ;;  %v318_v12 = vld [vmem:[%s5199_s19 + $0x10] sm:$0xf]  ;;  %vm5737_vm1 = vmor %vm3285_vm15, %vm3286_vm0 }
  0x13   : > { %v376_v13 = vrot.slane %v374_v3, 5  ;;  %v380_v14 = vrot.slane %v378_v4, 4  ;;  %v386_v15 = vrot.slane %v384_v5, 5  ;;  %v390_v16 = vrot.slane %v388_v6, 4  ;;  %v321_v17 = vld [vmem:[%s5199_s19 + $0x1c] sm:$0xf] }
  0x14   : > { %v357_v18 = vrot.slane %v355_v8, 4  ;;  %v360_v19 = vrot.slane %v358_v9, 5  ;;  %v370_v20 = vrot.slane %v368_v11, 4  ;;  %v394_v23 = vshll.u32 %v318_v12, 16  ;;  %v320_v29 = vld [vmem:[%s5199_s19 + $0x18] sm:$0xf] }
  0x15   : > { %v381_v21 = vor.u32 %v380_v14, %v376_v13  ;;  %v391_v22 = vor.u32 %v390_v16, %v386_v15  ;;  %v366_v26 = vrot.slane %v364_v10, 5  ;;  %v424_v27 = vshll.u32 %v321_v17, 16  ;;  %v319_v33 = vld [vmem:[%s5199_s19 + $0x14] sm:$0xf]  ;;  %v322_v42 = vld [vmem:[%s5199_s19 + $0x20] sm:$0xf] }
  0x16   : > { %v361_v25 = vor.u32 %v360_v19, %v357_v18  ;;  %v428_v28 = vshrl.u32 %v321_v17, 16  ;;  %v396_v36 = vrot.slane %v394_v23, 5  ;;  %v414_v37 = vshll.u32 %v320_v29, 16  ;;  %v324_v49 = vld [vmem:[%s5199_s19 + $0x28] sm:$0xf] }
  0x17   : > { %v382_v30 = vrot.slane %v381_v21, 4  ;;  %v371_v32 = vor.u32 %v370_v20, %v366_v26  ;;  %v392_v35 = vrot.slane %v391_v22, 4  ;;  %v426_v39 = vrot.slane %v424_v27, 5  ;;  %v323_v52 = vld [vmem:[%s5199_s19 + $0x24] sm:$0xf] }
  0x18   : > { %v362_v31 = vrot.slane %v361_v25, 4  ;;  %v430_v40 = vrot.slane %v428_v28, 4  ;;  %v418_v41 = vshrl.u32 %v320_v29, 16  ;;  %v398_v43 = vshrl.u32 %v318_v12, 16  ;;  %v325_v6 = vld [vmem:[%s5199_s19 + $0x2c] sm:$0xf] }
  0x19   : > { %v387_v34 = vsel %vm5209_vm2, %v382_v30, %v386_v15  ;;  %v404_v44 = vshll.u32 %v319_v33, 16  ;;  %v408_v45 = vshrl.u32 %v319_v33, 16  ;;  %v372_v46 = vrot.slane %v371_v32, 4  ;;  %v327_v12 = vld [vmem:[%s5199_s19 + $0x34] sm:$0xf] }
  0x1a   : > { %722 = vrot.lane.b32.xlu1 %v387_v34, %s5152_s20  ;;  %v367_v38 = vsel %vm5209_vm2, %v362_v31, %v366_v26  ;;  %v416_v47 = vrot.slane %v414_v37, 5  ;;  %v420_v48 = vrot.slane %v418_v41, 4  ;;  %v400_v50 = vrot.slane %v398_v43, 4  ;;  %v326_v14 = vld [vmem:[%s5199_s19 + $0x30] sm:$0xf] }
  0x1b   : > { %718 = vrot.lane.b32.xlu0 %v367_v38, %s5152_s20  ;;  %v410_v51 = vrot.slane %v408_v45, 4  ;;  %v397_v53 = vsel %vm5209_vm2, %v392_v35, %v396_v36  ;;  %v431_v54 = vor.u32 %v430_v40, %v426_v39  ;;  %v434_v55 = vshll.u32 %v322_v42, 16  ;;  %v328_v31 = vld [vmem:[%s5199_s19 + $0x38] sm:$0xf]  ;;  %v330_v37 = vld [vmem:[%s5199_s19 + $0x40] sm:$0xf] }
  0x1c   : > { %v401_v56 = vor.u32 %v400_v50, %v396_v36  ;;  %v406_v57 = vrot.slane %v404_v44, 5  ;;  %v454_v58 = vshll.u32 %v324_v49, 16  ;;  %v458_v59 = vshrl.u32 %v324_v49, 16  ;;  %v247_v24 = vld [vmem:[%s5199_s19 + $0x18] sm:$0xf] }
  0x1d   : > { %v377_v60 = vsel %vm5209_vm2, %v372_v46, %v376_v13  ;;  %v421_v61 = vor.u32 %v420_v48, %v416_v47  ;;  %v444_v62 = vshll.u32 %v323_v52, 16  ;;  %v448_v63 = vshrl.u32 %v323_v52, 16  ;;  %284 = vst.msk [vmem:[#allocation2 + $0x48] sm:$0xf] %vm277_vm3, %v247_v24 }
  0x1e   : > { %v402_v0 = vrot.slane %v401_v56, 4  ;;  %v411_v1 = vor.u32 %v410_v51, %v406_v57  ;;  %v436_v2 = vrot.slane %v434_v55, 5  ;;  %v438_v3 = vshrl.u32 %v322_v42, 16 }
  0x1f   : > { %v432_v4 = vrot.slane %v431_v54, 4  ;;  %v456_v7 = vrot.slane %v454_v58, 5  ;;  %v460_v8 = vrot.slane %v458_v59, 4  ;;  %v422_v9 = vrot.slane %v421_v61, 4  ;;  %v331_v59 = vld [vmem:[%s5199_s19 + $0x44] sm:$0xf] }
  0x20   : > { %v407_v5 = vsel %vm5209_vm2, %v402_v0, %v406_v57  ;;  %v446_v10 = vrot.slane %v444_v62, 5  ;;  %v450_v11 = vrot.slane %v448_v63, 4  ;;  %v412_v13 = vrot.slane %v411_v1, 4  ;;  %v333_v57 = vld [vmem:[%s5199_s19 + $0x4c] sm:$0xf] }
  0x21   : > { %726 = vrot.lane.b32.xlu2 %v407_v5, %s5152_s20  ;;  %v464_v15 = vshll.u32 %v325_v6, 16  ;;  %v440_v16 = vrot.slane %v438_v3, 4  ;;  %v437_v17 = vsel %vm5209_vm2, %v432_v4, %v436_v2  ;;  %v461_v18 = vor.u32 %v460_v8, %v456_v7  ;;  %v332_v63 = vld [vmem:[%s5199_s19 + $0x48] sm:$0xf] }
  0x22   : > { %724 = vrot.lane.b32.xlu1 %v397_v53, %s5152_s20  ;;  %v484_v19 = vshll.u32 %v327_v12, 16  ;;  %v488_v20 = vshrl.u32 %v327_v12, 16  ;;  %v427_v21 = vsel %vm5209_vm2, %v422_v9, %v426_v39  ;;  %v451_v22 = vor.u32 %v450_v11, %v446_v10  ;;  %v329_v39 = vld [vmem:[%s5199_s19 + $0x3c] sm:$0xf] }
  0x23   : > { %720 = vrot.lane.b32.xlu0 %v377_v60, %s5152_s20  ;;  %v474_v23 = vshll.u32 %v326_v14, 16  ;;  %v478_v25 = vshrl.u32 %v326_v14, 16  ;;  %v468_v26 = vshrl.u32 %v325_v6, 16  ;;  %v417_v27 = vsel %vm5209_vm2, %v412_v13, %v416_v47 }
  0x24   : > { %v441_v28 = vor.u32 %v440_v16, %v436_v2  ;;  %v462_v29 = vrot.slane %v461_v18, 4  ;;  %v466_v30 = vrot.slane %v464_v15, 5  ;;  %v486_v32 = vrot.slane %v484_v19, 5 }
  0x25   : > { %v490_v33 = vrot.slane %v488_v20, 4  ;;  %v452_v34 = vrot.slane %v451_v22, 4  ;;  %v476_v35 = vrot.slane %v474_v23, 5  ;;  %v480_v36 = vrot.slane %v478_v25, 4  ;;  %v335_v23 = vld [vmem:[%s5199_s19 + $0x54] sm:$0xf] }
  0x26   : > { %v442_v38 = vrot.slane %v441_v28, 4  ;;  %v470_v40 = vrot.slane %v468_v26, 4  ;;  %v494_v41 = vshll.u32 %v328_v31, 16  ;;  %v467_v42 = vsel %vm5209_vm2, %v462_v29, %v466_v30 }
  0x27   : > { %v491_v43 = vor.u32 %v490_v33, %v486_v32  ;;  %v514_v44 = vshll.u32 %v330_v37, 16  ;;  %v518_v45 = vshrl.u32 %v330_v37, 16  ;;  %v457_v46 = vsel %vm5209_vm2, %v452_v34, %v456_v7 }
  0x28   : > { %v481_v47 = vor.u32 %v480_v36, %v476_v35  ;;  %v504_v48 = vshll.u32 %v329_v39, 16  ;;  %v508_v49 = vshrl.u32 %v329_v39, 16  ;;  %v498_v50 = vshrl.u32 %v328_v31, 16 }
  0x29   : > { %728 = vrot.lane.b32.xlu2 %v417_v27, %s5152_s20  ;;  %v447_v51 = vsel %vm5209_vm2, %v442_v38, %v446_v10  ;;  %v471_v52 = vor.u32 %v470_v40, %v466_v30  ;;  %v492_v53 = vrot.slane %v491_v43, 4  ;;  %v496_v54 = vrot.slane %v494_v41, 5  ;;  %v337_v40 = vld [vmem:[%s5199_s19 + $0x5c] sm:$0xf] }
  0x2a   : > { %732 = vrot.lane.b32.xlu1 %v437_v17, %s5152_s20  ;;  %v516_v55 = vrot.slane %v514_v44, 5  ;;  %v520_v56 = vrot.slane %v518_v45, 4  ;;  %v482_v58 = vrot.slane %v481_v47, 4  ;;  %v506_v60 = vrot.slane %v504_v48, 5  ;;  %v334_v17 = vld [vmem:[%s5199_s19 + $0x50] sm:$0xf] }
  0x2b   : > { %730 = vrot.lane.b32.xlu0 %v427_v21, %s5152_s20  ;;  %v510_v61 = vrot.slane %v508_v49, 4  ;;  %v472_v62 = vrot.slane %v471_v52, 4  ;;  %v500_v0 = vrot.slane %v498_v50, 4  ;;  %v544_v1 = vshll.u32 %v333_v57, 16  ;;  %v336_v21 = vld [vmem:[%s5199_s19 + $0x58] sm:$0xf] }
  0x2c   : > { %v548_v2 = vshrl.u32 %v333_v57, 16  ;;  %v497_v3 = vsel %vm5209_vm2, %v492_v53, %v496_v54  ;;  %v521_v4 = vor.u32 %v520_v56, %v516_v55  ;;  %v524_v5 = vshll.u32 %v331_v59, 16  ;;  %v338_v48 = vld [vmem:[%s5199_s19 + $0x60] sm:$0xf] }
  0x2d   : > { %v487_v6 = vsel %vm5209_vm2, %v482_v58, %v486_v32  ;;  %v511_v7 = vor.u32 %v510_v61, %v506_v60  ;;  %v534_v8 = vshll.u32 %v332_v63, 16  ;;  %v538_v9 = vshrl.u32 %v332_v63, 16 }
  0x2e   : > { %v528_v10 = vshrl.u32 %v331_v59, 16  ;;  %v477_v11 = vsel %vm5209_vm2, %v472_v62, %v476_v35  ;;  %v501_v12 = vor.u32 %v500_v0, %v496_v54  ;;  %v546_v13 = vrot.slane %v544_v1, 5 }
  0x2f   : > { %v550_v14 = vrot.slane %v548_v2, 4  ;;  %v522_v15 = vrot.slane %v521_v4, 4  ;;  %v526_v16 = vrot.slane %v524_v5, 5  ;;  %v512_v18 = vrot.slane %v511_v7, 4  ;;  %v342_v2 = vld [vmem:[%s5199_s19 + $0x70] sm:$0xf] }
  0x30   : > { %v536_v19 = vrot.slane %v534_v8, 5  ;;  %v540_v20 = vrot.slane %v538_v9, 4  ;;  %v502_v22 = vrot.slane %v501_v12, 4  ;;  %v530_v25 = vrot.slane %v528_v10, 4  ;;  %v340_v4 = vld [vmem:[%s5199_s19 + $0x68] sm:$0xf] }
  0x31   : > { %734 = vrot.lane.b32.xlu2 %v447_v51, %s5152_s20  ;;  %v551_v26 = vor.u32 %v550_v14, %v546_v13  ;;  %v554_v27 = vshll.u32 %v334_v17, 16  ;;  %v527_v28 = vsel %vm5209_vm2, %v522_v15, %v526_v16  ;;  %v574_v29 = vshll.u32 %v336_v21, 16  ;;  %v341_v8 = vld [vmem:[%s5199_s19 + $0x6c] sm:$0xf] }
  0x32   : > { %738 = vrot.lane.b32.xlu1 %v467_v42, %s5152_s20  ;;  %v578_v30 = vshrl.u32 %v336_v21, 16  ;;  %v517_v31 = vsel %vm5209_vm2, %v512_v18, %v516_v55  ;;  %v541_v32 = vor.u32 %v540_v20, %v536_v19  ;;  %v564_v33 = vshll.u32 %v335_v23, 16 }
  0x33   : > { %736 = vrot.lane.b32.xlu0 %v457_v46, %s5152_s20  ;;  %v568_v34 = vshrl.u32 %v335_v23, 16  ;;  %v558_v35 = vshrl.u32 %v334_v17, 16  ;;  %v507_v36 = vsel %vm5209_vm2, %v502_v22, %v506_v60  ;;  %v531_v37 = vor.u32 %v530_v25, %v526_v16  ;;  %v339_v46 = vld [vmem:[%s5199_s19 + $0x64] sm:$0xf] }
  0x34   : > { %v552_v38 = vrot.slane %v551_v26, 4  ;;  %v556_v39 = vrot.slane %v554_v27, 5  ;;  %v576_v41 = vrot.slane %v574_v29, 5  ;;  %v580_v42 = vrot.slane %v578_v30, 4  ;;  %v343_v27 = vld [vmem:[%s5199_s19 + $0x74] sm:$0xf] }
  0x35   : > { %v542_v43 = vrot.slane %v541_v32, 4  ;;  %v566_v44 = vrot.slane %v564_v33, 5  ;;  %v570_v45 = vrot.slane %v568_v34, 4  ;;  %v532_v47 = vrot.slane %v531_v37, 4  ;;  %v344_v33 = vld [vmem:[%s5199_s19 + $0x78] sm:$0xf] }
  0x36   : > { %v560_v49 = vrot.slane %v558_v35, 4  ;;  %v557_v50 = vsel %vm5209_vm2, %v552_v38, %v556_v39  ;;  %v581_v51 = vor.u32 %v580_v42, %v576_v41  ;;  %v584_v52 = vshll.u32 %v337_v40, 16 }
  0x37   : > { %v604_v53 = vshll.u32 %v339_v46, 16  ;;  %v608_v54 = vshrl.u32 %v339_v46, 16  ;;  %v547_v55 = vsel %vm5209_vm2, %v542_v43, %v546_v13  ;;  %v571_v56 = vor.u32 %v570_v45, %v566_v44 }
  0x38   : > { %v594_v57 = vshll.u32 %v338_v48, 16  ;;  %v598_v58 = vshrl.u32 %v338_v48, 16  ;;  %v588_v59 = vshrl.u32 %v337_v40, 16  ;;  %v537_v60 = vsel %vm5209_vm2, %v532_v47, %v536_v19 }
  0x39   : > { %740 = vrot.lane.b32.xlu2 %v477_v11, %s5152_s20  ;;  %v561_v61 = vor.u32 %v560_v49, %v556_v39  ;;  %v582_v62 = vrot.slane %v581_v51, 4  ;;  %v586_v63 = vrot.slane %v584_v52, 5  ;;  %v606_v0 = vrot.slane %v604_v53, 5  ;;  %v346_v49 = vld [vmem:[%s5199_s19 + $0x80] sm:$0xf] }
  0x3a   : > { %744 = vrot.lane.b32.xlu1 %v497_v3, %s5152_s20  ;;  %v610_v1 = vrot.slane %v608_v54, 4  ;;  %v572_v3 = vrot.slane %v571_v56, 4  ;;  %v596_v5 = vrot.slane %v594_v57, 5  ;;  %v590_v9 = vrot.slane %v588_v59, 4  ;;  %v348_v52 = vld [vmem:[%s5199_s19 + $0x88] sm:$0xf] }
  0x3b   : > { %742 = vrot.lane.b32.xlu0 %v487_v6, %s5152_s20  ;;  %v600_v6 = vrot.slane %v598_v58, 4  ;;  %v562_v7 = vrot.slane %v561_v61, 4  ;;  %v634_v10 = vshll.u32 %v342_v2, 16  ;;  %v638_v11 = vshrl.u32 %v342_v2, 16  ;;  %v347_v56 = vld [vmem:[%s5199_s19 + $0x84] sm:$0xf] }
  0x3c   : > { %v587_v12 = vsel %vm5209_vm2, %v582_v62, %v586_v63  ;;  %v611_v13 = vor.u32 %v610_v1, %v606_v0  ;;  %v614_v14 = vshll.u32 %v340_v4, 16  ;;  %v577_v15 = vsel %vm5209_vm2, %v572_v3, %v576_v41 }
  0x3d   : > { %v601_v16 = vor.u32 %v600_v6, %v596_v5  ;;  %v624_v17 = vshll.u32 %v341_v8, 16  ;;  %v628_v18 = vshrl.u32 %v341_v8, 16  ;;  %v618_v19 = vshrl.u32 %v340_v4, 16 }
  0x3e   : > { %v567_v20 = vsel %vm5209_vm2, %v562_v7, %v566_v44  ;;  %v591_v21 = vor.u32 %v590_v9, %v586_v63  ;;  %v636_v22 = vrot.slane %v634_v10, 5  ;;  %v640_v23 = vrot.slane %v638_v11, 4  ;;  %v349_v11 = vld [vmem:[%s5199_s19 + $0x8c] sm:$0xf] }
  0x3f   : > { %v612_v25 = vrot.slane %v611_v13, 4  ;;  %v616_v26 = vrot.slane %v614_v14, 5  ;;  %v626_v29 = vrot.slane %v624_v17, 5  ;;  %v630_v30 = vrot.slane %v628_v18, 4 }
  0x40   : > { %v592_v32 = vrot.slane %v591_v21, 4  ;;  %v620_v34 = vrot.slane %v618_v19, 4  ;;  %v641_v35 = vor.u32 %v640_v23, %v636_v22  ;;  %v654_v42 = vshll.u32 %v344_v33, 16 }
  0x41   : > { %746 = vrot.lane.b32.xlu2 %v507_v36, %s5152_s20  ;;  %v644_v36 = vshll.u32 %v343_v27, 16  ;;  %v617_v37 = vsel %vm5209_vm2, %v612_v25, %v616_v26  ;;  %v631_v41 = vor.u32 %v630_v30, %v626_v29  ;;  %v658_v43 = vshrl.u32 %v344_v33, 16  ;;  %v245_v30 = vld [vmem:[%s5199_s19 + $0x10] sm:$0xf] }
  0x42   : > { %750 = vrot.lane.b32.xlu1 %v527_v28, %s5152_s20  ;;  %v602_v28 = vrot.slane %v601_v16, 4  ;;  %v648_v44 = vshrl.u32 %v343_v27, 16  ;;  %v597_v45 = vsel %vm5209_vm2, %v592_v32, %v596_v5  ;;  %v621_v46 = vor.u32 %v620_v34, %v616_v26  ;;  %282 = vst.msk [vmem:[#allocation2 + $0x30] sm:$0xf] %vm277_vm3, %v245_v30  ;;  %v241_v32 = vld [vmem:[%s5199_s19] sm:$0xf] }
  0x43   : > { %748 = vrot.lane.b32.xlu0 %v517_v31, %s5152_s20  ;;  %v345_v31 = vld [vmem:[%s5199_s19 + $0x7c] sm:$0xf]  ;;  %v642_v47 = vrot.slane %v641_v35, 4  ;;  %v646_v48 = vrot.slane %v644_v36, 5  ;;  %v632_v53 = vrot.slane %v631_v41, 4  ;;  %v656_v54 = vrot.slane %v654_v42, 5 }
  0x44   : > { %v664_v38 = vshll.u32 %v345_v31, 16  ;;  %v668_v39 = vshrl.u32 %v345_v31, 16  ;;  %v607_v40 = vsel %vm5209_vm2, %v602_v28, %v606_v0  ;;  %v622_v57 = vrot.slane %v621_v46, 4  ;;  %v243_v31 = vld [vmem:[%s5199_s19 + $0x8] sm:$0xf] }
  0x45   : > { %v650_v58 = vrot.slane %v648_v44, 4  ;;  %v647_v59 = vsel %vm5209_vm2, %v642_v47, %v646_v48  ;;  %v698_v61 = vshrl.u32 %v348_v52, 16  ;;  %v674_v63 = vshll.u32 %v346_v49, 16  ;;  %280 = vst.msk [vmem:[#allocation2 + $0x18] sm:$0xf] %vm277_vm3, %v243_v31 }
  0x46   : > { %v670_v51 = vrot.slane %v668_v39, 4  ;;  %v684_v0 = vshll.u32 %v347_v56, 16  ;;  %v688_v1 = vshrl.u32 %v347_v56, 16  ;;  %v637_v2 = vsel %vm5209_vm2, %v632_v53, %v636_v22  ;;  %v350_v36 = vld [vmem:[%s5199_s19 + $0x90] sm:$0x1] }
  0x47   : > { %v678_v4 = vshrl.u32 %v346_v49, 16  ;;  %v627_v5 = vsel %vm5209_vm2, %v622_v57, %v626_v29  ;;  %v651_v6 = vor.u32 %v650_v58, %v646_v48  ;;  %v700_v8 = vrot.slane %v698_v61, 4  ;;  %v864_v29 = vld [vmem:[%s5199_s19 + $0x4] sm:$0xf]  ;;  %278 = vst.msk [vmem:[#allocation2] sm:$0xf] %vm277_vm3, %v241_v32 }
  0x48   : > { %v676_v10 = vrot.slane %v674_v63, 5  ;;  %v690_v13 = vrot.slane %v688_v1, 4  ;;  %v704_v18 = vshll.u32 %v349_v11, 16  ;;  %v708_v22 = vshrl.u32 %v349_v11, 16  ;;  %v863_v39 = vld [vmem:[%s5199_s19] sm:$0xe] }
  0x49   : > { %752 = vrot.lane.b32.xlu2 %v537_v60, %s5152_s20  ;;  %v694_v60 = vshll.u32 %v348_v52, 16  ;;  %v680_v16 = vrot.slane %v678_v4, 4  ;;  %v942_v35 = vrot.slane %v864_v29, 5  ;;  %v4585_v46 = vrot.slane %v863_v39, 9  ;;  %v867_v47 = vld [vmem:[%s5199_s19 + $0x10] sm:$0xf] }
  0x4a   : > { %756 = vrot.lane.b32.xlu1 %v557_v50, %s5152_s20  ;;  %v666_v50 = vrot.slane %v664_v38, 5  ;;  %v706_v27 = vrot.slane %v704_v18, 5  ;;  %v710_v34 = vrot.slane %v708_v22, 4  ;;  %v865_v38 = vld [vmem:[%s5199_s19 + $0x8] sm:$0xf] }
  0x4b   : > { %754 = vrot.lane.b32.xlu0 %v547_v55, %s5152_s20  ;;  %v660_v55 = vrot.slane %v658_v43, 4  ;;  %v696_v7 = vrot.slane %v694_v60, 5  ;;  %v681_v25 = vor.u32 %v680_v16, %v676_v10  ;;  %v714_v43 = vshll.u32 %v350_v36, 16  ;;  %v866_v48 = vld [vmem:[%s5199_s19 + $0xc] sm:$0xf] }
  0x4c   : > { %v671_v62 = vor.u32 %v670_v51, %v666_v50  ;;  %v711_v42 = vor.u32 %v710_v34, %v706_v27  ;;  %v944_v44 = vrot.slane %v942_v35, 4  ;;  %v246_v49 = vld [vmem:[%s5199_s19 + $0x14] sm:$0xf]  ;;  %v244_v51 = vld [vmem:[%s5199_s19 + $0xc] sm:$0xf]  ;;  %v948_v58 = vrot.slane %v866_v48, 5 }
  0x4d   : > { %v661_v3 = vor.u32 %v660_v55, %v656_v54  ;;  %v701_v17 = vor.u32 %v700_v8, %v696_v7  ;;  %v682_v33 = vrot.slane %v681_v25, 4  ;;  %283 = vst.msk [vmem:[#allocation2 + $0x3c] sm:$0xf] %vm277_vm3, %v246_v49  ;;  %v242_v52 = vld [vmem:[%s5199_s19 + $0x4] sm:$0xf]  ;;  %v951_v55 = vrot.slane %v867_v47, 5 }
  0x4e   : > { %v672_v9 = vrot.slane %v671_v62, 4  ;;  %v712_v53 = vrot.slane %v711_v42, 4  ;;  %281 = vst.msk [vmem:[#allocation2 + $0x24] sm:$0xf] %vm277_vm3, %v244_v51  ;;  %v868_v57 = vld [vmem:[%s5199_s19 + $0x14] sm:$0xf] }
  0x4f   : > { %v662_v14 = vrot.slane %v661_v3, 4  ;;  %v702_v26 = vrot.slane %v701_v17, 4  ;;  %279 = vst.msk [vmem:[#allocation2 + $0xc] sm:$0xf] %vm277_vm3, %v242_v52  ;;  %v953_v61 = vrot.slane %v951_v55, 4  ;;  %v954_v62 = vrot.slane %v868_v57, 5 }
  0x50   : > { %v677_v19 = vsel %vm5209_vm2, %v672_v9, %v676_v10  ;;  %v870_v63 = vld [vmem:[%s5199_s19 + $0x1c] sm:$0xf]  ;;  %v869_v1 = vld [vmem:[%s5199_s19 + $0x18] sm:$0xf]  ;;  %v871_v9 = vld [vmem:[%s5199_s19 + $0x20] sm:$0xf] }
  0x51   : > { %758 = vrot.lane.b32.xlu2 %v567_v20, %s5152_s20  ;;  %v667_v21 = vsel %vm5209_vm2, %v662_v14, %v666_v50  ;;  %v248_v3 = vld [vmem:[%s5199_s19 + $0x1c] sm:$0xf]  ;;  %v955_v8 = vsel %vm5360_vm6, %v953_v61, %v954_v62  ;;  %v872_v16 = vld [vmem:[%s5199_s19 + $0x24] sm:$0xf]  ;;  %v252_v17 = vld [vmem:[%s5199_s19 + $0x2c] sm:$0xf] }
  0x52   : > { %762 = vrot.lane.b32.xlu1 %v587_v12, %s5152_s20  ;;  %v686_v12 = vrot.slane %v684_v0, 5  ;;  %v950_v0 = vrot.slane %v948_v58, 4  ;;  %285 = vst.msk [vmem:[#allocation2 + $0x54] sm:$0xf] %vm277_vm3, %v248_v3  ;;  %v251_v18 = vld [vmem:[%s5199_s19 + $0x28] sm:$0xf] }
  0x53   : > { %760 = vrot.lane.b32.xlu0 %v577_v15, %s5152_s20  ;;  %v652_v15 = vrot.slane %v651_v6, 4  ;;  %v957_v6 = vrot.slane %v869_v1, 5  ;;  %289 = vst.msk [vmem:[#allocation2 + $0x84] sm:$0xf] %vm277_vm3, %v252_v17  ;;  %v966_v25 = vrot.slane %v872_v16, 5 }
  0x54   : > { %v691_v20 = vor.u32 %v690_v13, %v686_v12  ;;  %v687_v41 = vsel %vm5209_vm2, %v682_v33, %v686_v12  ;;  %v952_v10 = vsel %vm5360_vm6, %v950_v0, %v951_v55  ;;  %v963_v13 = vrot.slane %v871_v9, 5  ;;  %288 = vst.msk [vmem:[#allocation2 + $0x78] sm:$0xf] %vm277_vm3, %v251_v18  ;;  %v255_v32 = vld [vmem:[%s5199_s19 + $0x38] sm:$0xf] }
  0x55   : > { %v657_v23 = vsel %vm5209_vm2, %v652_v15, %v656_v54  ;;  %v716_v54 = vrot.slane %v714_v43, 5  ;;  %v959_v14 = vrot.slane %v957_v6, 4  ;;  %v873_v15 = vld [vmem:[%s5199_s19 + $0x28] sm:$0xf]  ;;  %v968_v31 = vrot.slane %v966_v25, 4 }
  0x56   : > { %v692_v28 = vrot.slane %v691_v20, 4  ;;  %v956_v20 = vrot.slane %v954_v62, 4  ;;  %v876_v34 = vld [vmem:[%s5199_s19 + $0x34] sm:$0xf]  ;;  %292 = vst.msk [vmem:[#allocation2 + $0xa8] sm:$0xf] %vm277_vm3, %v255_v32 }
  0x57   : > { %v717_v60 = vsel %vm5209_vm2, %v712_v53, %v716_v54  ;;  %v978_v42 = vrot.slane %v876_v34, 5  ;;  %v258_v51 = vld [vmem:[%s5199_s19 + $0x44] sm:$0xf]  ;;  %v879_v53 = vld [vmem:[%s5199_s19 + $0x40] sm:$0xf] }
  0x58   : > { %v878_v54 = vld [vmem:[%s5199_s19 + $0x3c] sm:$0xf]  ;;  %295 = vst.msk [vmem:[#allocation2 + $0xcc] sm:$0xf] %vm277_vm3, %v258_v51  ;;  %v257_v57 = vld [vmem:[%s5199_s19 + $0x40] sm:$0xf] }
  0x59   : > { %764 = vrot.lane.b32.xlu2 %v597_v45, %s5152_s20  ;;  %v945_v45 = vrot.slane %v865_v38, 5  ;;  %v254_v38 = vld [vmem:[%s5199_s19 + $0x34] sm:$0xf]  ;;  %v980_v47 = vrot.slane %v978_v42, 4  ;;  %v987_v61 = vrot.slane %v879_v53, 5  ;;  %v984_v62 = vrot.slane %v878_v54, 5 }
  0x5a   : > { %768 = vrot.lane.b32.xlu1 %v617_v37, %s5152_s20  ;;  %v707_v37 = vsel %vm5209_vm2, %v702_v26, %v706_v27  ;;  %v874_v27 = vld [vmem:[%s5199_s19 + $0x2c] sm:$0xf]  ;;  %291 = vst.msk [vmem:[#allocation2 + $0x9c] sm:$0xf] %vm277_vm3, %v254_v38  ;;  %v880_v0 = vld [vmem:[%s5199_s19 + $0x44] sm:$0xf] }
  0x5b   : > { %766 = vrot.lane.b32.xlu0 %v607_v40, %s5152_s20  ;;  %v697_v40 = vsel %vm5209_vm2, %v692_v28, %v696_v7  ;;  %v946_v56 = vsel %vm5360_vm6, %v944_v44, %v945_v45  ;;  %v947_v4 = vrot.slane %v945_v45, 4  ;;  %v958_v28 = vsel %vm5360_vm6, %v956_v20, %v957_v6  ;;  %v877_v45 = vld [vmem:[%s5199_s19 + $0x38] sm:$0xf]  ;;  %294 = vst.msk [vmem:[#allocation2 + $0xc0] sm:$0xf] %vm277_vm3, %v257_v57 }
  0x5c   : > { %v972_v30 = vrot.slane %v874_v27, 5  ;;  %v981_v48 = vrot.slane %v877_v45, 5  ;;  %v990_v3 = vrot.slane %v880_v0, 5  ;;  %v986_v24 = vrot.slane %v984_v62, 4  ;;  %v882_v6 = vld [vmem:[%s5199_s19 + $0x4c] sm:$0xf] }
  0x5d   : > { %v949_v11 = vsel %vm5360_vm6, %v947_v4, %v948_v58  ;;  %v261_v4 = vld [vmem:[%s5199_s19 + $0x50] sm:$0xf]  ;;  %vm3959_vm2 = vcmask 261120   ;;  %vm1560_vm9 = vsmask.f32 6416 }
  0x5e   : > { %298 = vst.msk [vmem:[#allocation2 + $0xf0] sm:$0xf] %vm277_vm3, %v261_v4  ;;  %v983_v9 = vrot.slane %v981_v48, 4  ;;  %v988_v16 = vsel %vm5360_vm6, %v986_v24, %v987_v61  ;;  %v883_v17 = vld [vmem:[%s5199_s19 + $0x50] sm:$0xf]  ;;  %vm6027_vm10 = vmor %vm1559_vm5, %vm1560_vm9 }
  0x5f   : > { %v999_v20 = vrot.slane %v883_v17, 5  ;;  %v268_v24 = vld [vmem:[%s5199_s19 + $0x6c] sm:$0xf] }
  0x60   : > { %v985_v18 = vsel %vm5360_vm6, %v983_v9, %v984_v62  ;;  %v891_v62 = vld [vmem:[%s5199_s19 + $0x70] sm:$0xf]  ;;  %305 = vst.msk [vmem:[#allocation2 + $0x144] sm:$0xf] %vm277_vm3, %v268_v24 }
  0x61   : > { %770 = vrot.lane.b32.xlu2 %v627_v5, %s5152_s20  ;;  %v960_v5 = vrot.slane %v870_v63, 5 }
  0x62   : > { %774 = vrot.lane.b32.xlu1 %v647_v59, %s5152_s20  ;;  %v943_v59 = vsel %vm5360_vm6, %v4585_v46, %v942_v35  ;;  %v875_v35 = vld [vmem:[%s5199_s19 + $0x30] sm:$0xf] }
  0x63   : > { %772 = vrot.lane.b32.xlu0 %v637_v2, %s5152_s20  ;;  %v249_v2 = vld [vmem:[%s5199_s19 + $0x20] sm:$0xf]  ;;  %v962_v12 = vrot.slane %v960_v5, 4  ;;  %v961_v26 = vsel %vm5360_vm6, %v959_v14, %v960_v5  ;;  %v975_v43 = vrot.slane %v875_v35, 5  ;;  %v996_v14 = vrot.slane %v882_v6, 5 }
  0x64   : > { %286 = vst.msk [vmem:[#allocation2 + $0x60] sm:$0xf] %vm277_vm3, %v249_v2  ;;  %v989_v2 = vrot.slane %v987_v61, 4 }
  0x65   : > { %v964_v22 = vsel %vm5360_vm6, %v962_v12, %v963_v13  ;;  %v977_v49 = vrot.slane %v975_v43, 4  ;;  %v259_v12 = vld [vmem:[%s5199_s19 + $0x48] sm:$0xf] }
  0x66   : > { %296 = vst.msk [vmem:[#allocation2 + $0xd8] sm:$0xf] %vm277_vm3, %v259_v12 }
  0x67   : > { %v979_v63 = vsel %vm5360_vm6, %v977_v49, %v978_v42  ;;  %v265_v49 = vld [vmem:[%s5199_s19 + $0x60] sm:$0xf] }
  0x68   : > { %302 = vst.msk [vmem:[#allocation2 + $0x120] sm:$0xf] %vm277_vm3, %v265_v49 }
  0x69   : > { %776 = vrot.lane.b32.xlu2 %v657_v23, %s5152_s20  ;;  %v969_v23 = vrot.slane %v873_v15, 5 }
  0x6a   : > { %780 = vrot.lane.b32.xlu1 %v677_v19, %s5152_s20  ;;  %v250_v19 = vld [vmem:[%s5199_s19 + $0x24] sm:$0xf] }
  0x6b   : > { %778 = vrot.lane.b32.xlu0 %v667_v21, %s5152_s20  ;;  %287 = vst.msk [vmem:[#allocation2 + $0x6c] sm:$0xf] %vm277_vm3, %v250_v19  ;;  %v971_v29 = vrot.slane %v969_v23, 4  ;;  %v970_v44 = vsel %vm5360_vm6, %v968_v31, %v969_v23  ;;  %v998_v19 = vrot.slane %v996_v14, 4  ;;  %v262_v31 = vld [vmem:[%s5199_s19 + $0x54] sm:$0xf] }
  0x6c   : > { %299 = vst.msk [vmem:[#allocation2 + $0xfc] sm:$0xf] %vm277_vm3, %v262_v31 }
  0x6d   : > { %v1000_v32 = vsel %vm5360_vm6, %v998_v19, %v999_v20  ;;  %v272_v19 = vld [vmem:[%s5199_s19 + $0x7c] sm:$0xf] }
  0x6e   : > { %309 = vst.msk [vmem:[#allocation2 + $0x174] sm:$0xf] %vm277_vm3, %v272_v19 }
  0x71   : > { %782 = vrot.lane.b32.xlu2 %v687_v41, %s5152_s20  ;;  %v973_v41 = vsel %vm5360_vm6, %v971_v29, %v972_v30  ;;  %v263_v29 = vld [vmem:[%s5199_s19 + $0x58] sm:$0xf] }
  0x72   : > { %786 = vrot.lane.b32.xlu1 %v707_v37, %s5152_s20  ;;  %v965_v37 = vrot.slane %v963_v13, 4  ;;  %v991_v13 = vsel %vm5360_vm6, %v989_v2, %v990_v3  ;;  %300 = vst.msk [vmem:[#allocation2 + $0x108] sm:$0xf] %vm277_vm3, %v263_v29  ;;  %v269_v2 = vld [vmem:[%s5199_s19 + $0x70] sm:$0xf] }
  0x73   : > { %784 = vrot.lane.b32.xlu0 %v697_v40, %s5152_s20  ;;  %v253_v40 = vld [vmem:[%s5199_s19 + $0x30] sm:$0xf]  ;;  %306 = vst.msk [vmem:[#allocation2 + $0x150] sm:$0xf] %vm277_vm3, %v269_v2 }
  0x74   : > { %v967_v46 = vsel %vm5360_vm6, %v965_v37, %v966_v25  ;;  %290 = vst.msk [vmem:[#allocation2 + $0x90] sm:$0xf] %vm277_vm3, %v253_v40  ;;  %v885_v25 = vld [vmem:[%s5199_s19 + $0x58] sm:$0xf] }
  0x79   : > { %788 = vrot.lane.b32.xlu2 %v717_v60, %s5152_s20  ;;  %v982_v60 = vsel %vm5360_vm6, %v980_v47, %v981_v48  ;;  %v266_v47 = vld [vmem:[%s5199_s19 + $0x64] sm:$0xf] }
  0x7a   : > { %1051 = vrot.lane.b32.xlu1 %v946_v56, %s5153_s21  ;;  %v974_v56 = vrot.slane %v972_v30, 4  ;;  %303 = vst.msk [vmem:[#allocation2 + $0x12c] sm:$0xf] %vm277_vm3, %v266_v47 }
  0x7b   : > { %1049 = vrot.lane.b32.xlu0 %v943_v59, %s5153_s21  ;;  %v727_v7 = vpop.permute.xlu2 %726  ;;  %v256_v59 = vld [vmem:[%s5199_s19 + $0x3c] sm:$0xf] }
  0x7c   : > { %831 = vst.msk [vmem:[#allocation2 + $0x30] sm:$0xf] %vm826_vm7, %v727_v7  ;;  %v976_v1 = vsel %vm5360_vm6, %v974_v56, %v975_v43  ;;  %v881_v7 = vld [vmem:[%s5199_s19 + $0x48] sm:$0xf]  ;;  %v888_v43 = vld [vmem:[%s5199_s19 + $0x64] sm:$0xf] }
  0x7d   : > { %293 = vst.msk [vmem:[#allocation2 + $0xb4] sm:$0xf] %vm277_vm3, %v256_v59  ;;  %v993_v15 = vrot.slane %v881_v7, 5 }
  0x81   : > { %1053 = vrot.lane.b32.xlu2 %v949_v11, %s5153_s21 }
  0x82   : > { %1057 = vrot.lane.b32.xlu1 %v955_v8, %s5153_s21 }
  0x83   : > { %1055 = vrot.lane.b32.xlu0 %v952_v10, %s5153_s21  ;;  %v729_v21 = vpop.permute.xlu2 %728  ;;  %v260_v10 = vld [vmem:[%s5199_s19 + $0x4c] sm:$0xf] }
  0x84   : > { %832 = vst.msk [vmem:[#allocation2 + $0x3c] sm:$0xf] %vm826_vm7, %v729_v21  ;;  %v995_v21 = vrot.slane %v993_v15, 4 }
  0x85   : > { %297 = vst.msk [vmem:[#allocation2 + $0xe4] sm:$0xf] %vm277_vm3, %v260_v10 }
  0x86   : > { %v997_v35 = vsel %vm5360_vm6, %v995_v21, %v996_v14  ;;  %v271_v21 = vld [vmem:[%s5199_s19 + $0x78] sm:$0xf] }
  0x87   : > { %308 = vst.msk [vmem:[#allocation2 + $0x168] sm:$0xf] %vm277_vm3, %v271_v21 }
  0x89   : > { %1059 = vrot.lane.b32.xlu2 %v958_v28, %s5153_s21  ;;  %v992_v28 = vrot.slane %v990_v3, 4 }
  0x8a   : > { %1063 = vrot.lane.b32.xlu1 %v964_v22, %s5153_s21  ;;  %v264_v22 = vld [vmem:[%s5199_s19 + $0x5c] sm:$0xf] }
  0x8b   : > { %1061 = vrot.lane.b32.xlu0 %v961_v26, %s5153_s21  ;;  %v735_v39 = vpop.permute.xlu2 %734  ;;  %v884_v26 = vld [vmem:[%s5199_s19 + $0x54] sm:$0xf]  ;;  %301 = vst.msk [vmem:[#allocation2 + $0x114] sm:$0xf] %vm277_vm3, %v264_v22  ;;  %v994_v37 = vsel %vm5360_vm6, %v992_v28, %v993_v15  ;;  %v894_v15 = vld [vmem:[%s5199_s19 + $0x7c] sm:$0xf] }
  0x8c   : > { %v723_v33 = vpop.permute.xlu1 %722  ;;  %835 = vst.msk [vmem:[#allocation2 + $0x60] sm:$0xf] %vm826_vm7, %v735_v39  ;;  %v1002_v34 = vrot.slane %v884_v26, 5 }
  0x8d   : > { %829 = vst.msk [vmem:[#allocation2 + $0x18] sm:$0xf] %vm826_vm7, %v723_v33  ;;  %v719_v36 = vpop.permute.xlu0 %718  ;;  %v1005_v33 = vrot.slane %v885_v25, 5 }
  0x8e   : > { %827 = vst.msk [vmem:[#allocation2] sm:$0xf] %vm826_vm7, %v719_v36  ;;  %v886_v36 = vld [vmem:[%s5199_s19 + $0x5c] sm:$0xf]  ;;  %v1004_v40 = vrot.slane %v1002_v34, 4 }
  0x8f   : > { %v1007_v38 = vrot.slane %v1005_v33, 4  ;;  %v1008_v39 = vrot.slane %v886_v36, 5 }
  0x90   : > { %v1006_v54 = vsel %vm5360_vm6, %v1004_v40, %v1005_v33  ;;  %v274_v40 = vld [vmem:[%s5199_s19 + $0x84] sm:$0xf] }
  0x91   : > { %1065 = vrot.lane.b32.xlu2 %v967_v46, %s5153_s21  ;;  %v1001_v46 = vrot.slane %v999_v20, 4  ;;  %v1009_v51 = vsel %vm5360_vm6, %v1007_v38, %v1008_v39  ;;  %v275_v38 = vld [vmem:[%s5199_s19 + $0x88] sm:$0xf]  ;;  %311 = vst.msk [vmem:[#allocation2 + $0x18c] sm:$0xf] %vm277_vm3, %v274_v40 }
  0x92   : > { %1069 = vrot.lane.b32.xlu1 %v973_v41, %s5153_s21  ;;  %v267_v41 = vld [vmem:[%s5199_s19 + $0x68] sm:$0xf]  ;;  %312 = vst.msk [vmem:[#allocation2 + $0x198] sm:$0xf] %vm277_vm3, %v275_v38 }
  0x93   : > { %1067 = vrot.lane.b32.xlu0 %v970_v44, %s5153_s21  ;;  %v741_v58 = vpop.permute.xlu2 %740  ;;  %v887_v44 = vld [vmem:[%s5199_s19 + $0x60] sm:$0xf]  ;;  %304 = vst.msk [vmem:[#allocation2 + $0x138] sm:$0xf] %vm277_vm3, %v267_v41  ;;  %v1003_v56 = vsel %vm5360_vm6, %v1001_v46, %v1002_v34  ;;  %v897_v34 = vld [vmem:[%s5199_s19 + $0x88] sm:$0xf] }
  0x94   : > { %v725_v52 = vpop.permute.xlu1 %724  ;;  %838 = vst.msk [vmem:[#allocation2 + $0x84] sm:$0xf] %vm826_vm7, %v741_v58  ;;  %v1011_v53 = vrot.slane %v887_v44, 5  ;;  %v898_v44 = vld [vmem:[%s5199_s19 + $0x8c] sm:$0xf] }
  0x95   : > { %830 = vst.msk [vmem:[#allocation2 + $0x24] sm:$0xf] %vm826_vm7, %v725_v52  ;;  %v721_v55 = vpop.permute.xlu0 %720  ;;  %v1014_v52 = vrot.slane %v888_v43, 5  ;;  %v2002_v40 = vld [vmem:[%s5199_s19 + $0x8] sm:$0xc] }
  0x96   : > { %828 = vst.msk [vmem:[#allocation2 + $0xc] sm:$0xf] %vm826_vm7, %v721_v55  ;;  %v889_v55 = vld [vmem:[%s5199_s19 + $0x68] sm:$0xf]  ;;  %v1013_v59 = vrot.slane %v1011_v53, 4 }
  0x97   : > { %v1016_v57 = vrot.slane %v1014_v52, 4  ;;  %v1017_v58 = vrot.slane %v889_v55, 5 }
  0x98   : > { %v1015_v7 = vsel %vm5360_vm6, %v1013_v59, %v1014_v52  ;;  %v1195_v52 = vld [vmem:[%s5199_s19 + $0xc] sm:$0xf]  ;;  %v1196_v59 = vld [vmem:[%s5199_s19 + $0x10] sm:$0xf] }
  0x99   : > { %1071 = vrot.lane.b32.xlu2 %v976_v1, %s5153_s21  ;;  %v1010_v1 = vrot.slane %v1008_v39, 4  ;;  %v1018_v4 = vsel %vm5360_vm6, %v1016_v57, %v1017_v58  ;;  %v1270_v57 = vrot.slane %v1195_v52, 5  ;;  %v2333_v52 = vld [vmem:[%s5199_s19 + $0x14] sm:$0xf] }
  0x9a   : > { %1075 = vrot.lane.b32.xlu1 %v982_v60, %s5153_s21  ;;  %v270_v60 = vld [vmem:[%s5199_s19 + $0x74] sm:$0xf] }
  0x9b   : > { %1073 = vrot.lane.b32.xlu0 %v979_v63, %s5153_s21  ;;  %v747_v11 = vpop.permute.xlu2 %746  ;;  %v890_v63 = vld [vmem:[%s5199_s19 + $0x6c] sm:$0xf]  ;;  %307 = vst.msk [vmem:[#allocation2 + $0x15c] sm:$0xf] %vm277_vm3, %v270_v60  ;;  %v1012_v9 = vsel %vm5360_vm6, %v1010_v1, %v1011_v53  ;;  %v1194_v60 = vld [vmem:[%s5199_s19 + $0x8] sm:$0xe] }
  0x9c   : > { %v733_v5 = vpop.permute.xlu1 %732  ;;  %841 = vst.msk [vmem:[#allocation2 + $0xa8] sm:$0xf] %vm826_vm7, %v747_v11  ;;  %v1020_v6 = vrot.slane %v890_v63, 5  ;;  %v1272_v63 = vrot.slane %v1270_v57, 4  ;;  %v4586_v2 = vrot.slane %v1194_v60, 9 }
  0x9d   : > { %834 = vst.msk [vmem:[#allocation2 + $0x54] sm:$0xf] %vm826_vm7, %v733_v5  ;;  %v731_v8 = vpop.permute.xlu0 %730  ;;  %v1023_v5 = vrot.slane %v891_v62, 5  ;;  %v899_v62 = vld [vmem:[%s5199_s19 + $0x90] sm:$0x1] }
  0x9e   : > { %833 = vst.msk [vmem:[#allocation2 + $0x48] sm:$0xf] %vm826_vm7, %v731_v8  ;;  %v892_v8 = vld [vmem:[%s5199_s19 + $0x74] sm:$0xf]  ;;  %v1022_v12 = vrot.slane %v1020_v6, 4 }
  0x9f   : > { %v1025_v10 = vrot.slane %v1023_v5, 4  ;;  %v1026_v11 = vrot.slane %v892_v8, 5 }
  0xa0   : > { %v1024_v26 = vsel %vm5360_vm6, %v1022_v12, %v1023_v5 }
  0xa1   : > { %1077 = vrot.lane.b32.xlu2 %v985_v18, %s5153_s21  ;;  %v1019_v18 = vrot.slane %v1017_v58, 4  ;;  %v1027_v22 = vsel %vm5360_vm6, %v1025_v10, %v1026_v11  ;;  %v1271_v10 = vsel %vm5360_vm6, %v4586_v2, %v1270_v57  ;;  %v2659_v57 = vld [vmem:[%s5199_s19 + $0x10] sm:$0xc]  ;;  %v2661_v2 = vld [vmem:[%s5199_s19 + $0x18] sm:$0xf] }
  0xa2   : > { %1081 = vrot.lane.b32.xlu1 %v991_v13, %s5153_s21  ;;  %v273_v13 = vld [vmem:[%s5199_s19 + $0x80] sm:$0xf] }
  0xa3   : > { %1079 = vrot.lane.b32.xlu0 %v988_v16, %s5153_s21  ;;  %v753_v30 = vpop.permute.xlu2 %752  ;;  %v893_v16 = vld [vmem:[%s5199_s19 + $0x78] sm:$0xf]  ;;  %310 = vst.msk [vmem:[#allocation2 + $0x180] sm:$0xf] %vm277_vm3, %v273_v13  ;;  %v1021_v28 = vsel %vm5360_vm6, %v1019_v18, %v1020_v6  ;;  %v1047_v6 = vrot.slane %v899_v62, 5 }
  0xa4   : > { %v739_v23 = vpop.permute.xlu1 %738  ;;  %844 = vst.msk [vmem:[#allocation2 + $0xcc] sm:$0xf] %vm826_vm7, %v753_v30  ;;  %v1029_v25 = vrot.slane %v893_v16, 5  ;;  %v1201_v18 = vld [vmem:[%s5199_s19 + $0x24] sm:$0xf] }
  0xa5   : > { %837 = vst.msk [vmem:[#allocation2 + $0x78] sm:$0xf] %vm826_vm7, %v739_v23  ;;  %v737_v27 = vpop.permute.xlu0 %736  ;;  %v1032_v23 = vrot.slane %v894_v15, 5  ;;  %v2332_v62 = vld [vmem:[%s5199_s19 + $0x10] sm:$0xc] }
  0xa6   : > { %836 = vst.msk [vmem:[#allocation2 + $0x6c] sm:$0xf] %vm826_vm7, %v737_v27  ;;  %v895_v27 = vld [vmem:[%s5199_s19 + $0x80] sm:$0xf]  ;;  %v1031_v31 = vrot.slane %v1029_v25, 4 }
  0xa7   : > { %v1034_v29 = vrot.slane %v1032_v23, 4  ;;  %v1035_v30 = vrot.slane %v895_v27, 5  ;;  %v1202_v27 = vld [vmem:[%s5199_s19 + $0x28] sm:$0xf] }
  0xa8   : > { %v1033_v43 = vsel %vm5360_vm6, %v1031_v31, %v1032_v23  ;;  %v1291_v31 = vrot.slane %v1202_v27, 5 }
  0xa9   : > { %1083 = vrot.lane.b32.xlu2 %v994_v37, %s5153_s21  ;;  %v1028_v37 = vrot.slane %v1026_v11, 4  ;;  %v1036_v41 = vsel %vm5360_vm6, %v1034_v29, %v1035_v30  ;;  %v1199_v11 = vld [vmem:[%s5199_s19 + $0x1c] sm:$0xf] }
  0xaa   : > { %1087 = vrot.lane.b32.xlu1 %v1000_v32, %s5153_s21  ;;  %v276_v32 = vld [vmem:[%s5199_s19 + $0x8c] sm:$0xf]  ;;  %v1282_v15 = vrot.slane %v1199_v11, 5  ;;  %v2719_v11 = vshrl.u32 %v2661_v2, 16 }
  0xab   : > { %1085 = vrot.lane.b32.xlu0 %v997_v35, %s5153_s21  ;;  %v759_v48 = vpop.permute.xlu2 %758  ;;  %v896_v35 = vld [vmem:[%s5199_s19 + $0x84] sm:$0xf]  ;;  %313 = vst.msk [vmem:[#allocation2 + $0x1a4] sm:$0xf] %vm277_vm3, %v276_v32  ;;  %v1030_v46 = vsel %vm5360_vm6, %v1028_v37, %v1029_v25  ;;  %v1288_v25 = vrot.slane %v1201_v18, 5 }
  0xac   : > { %v745_v42 = vpop.permute.xlu1 %744  ;;  %847 = vst.msk [vmem:[#allocation2 + $0xf0] sm:$0xf] %vm826_vm7, %v759_v48  ;;  %v1044_v48 = vrot.slane %v898_v44, 5 }
  0xad   : > { %840 = vst.msk [vmem:[#allocation2 + $0x9c] sm:$0xf] %vm826_vm7, %v745_v42  ;;  %v743_v45 = vpop.permute.xlu0 %742  ;;  %v1041_v42 = vrot.slane %v897_v34, 5 }
  0xae   : > { %839 = vst.msk [vmem:[#allocation2 + $0x90] sm:$0xf] %vm826_vm7, %v743_v45  ;;  %v1038_v45 = vrot.slane %v896_v35, 5  ;;  %v1046_v5 = vrot.slane %v1044_v48, 4  ;;  %v1203_v35 = vld [vmem:[%s5199_s19 + $0x2c] sm:$0xf] }
  0xaf   : > { %v1043_v47 = vrot.slane %v1041_v42, 4 }
  0xb0   : > { %v1048_v13 = vsel %vm5360_vm6, %v1046_v5, %v1047_v6  ;;  %v4588_v6 = vrot.slane %v2332_v62, 10 }
  0xb1   : > { %1089 = vrot.lane.b32.xlu2 %v1003_v56, %s5153_s21  ;;  %v1045_v56 = vsel %vm5360_vm6, %v1043_v47, %v1044_v48 }
  0xb2   : > { %1093 = vrot.lane.b32.xlu1 %v1009_v51, %s5153_s21  ;;  %v1040_v51 = vrot.slane %v1038_v45, 4 }
  0xb3   : > { %1091 = vrot.lane.b32.xlu0 %v1006_v54, %s5153_s21  ;;  %v765_v3 = vpop.permute.xlu2 %764  ;;  %v1037_v54 = vrot.slane %v1035_v30, 4  ;;  %v1290_v30 = vrot.slane %v1288_v25, 4 }
  0xb4   : > { %v751_v61 = vpop.permute.xlu1 %750  ;;  %850 = vst.msk [vmem:[#allocation2 + $0x114] sm:$0xf] %vm826_vm7, %v765_v3  ;;  %v1042_v58 = vsel %vm5360_vm6, %v1040_v51, %v1041_v42  ;;  %v1198_v3 = vld [vmem:[%s5199_s19 + $0x18] sm:$0xf]  ;;  %v1294_v42 = vrot.slane %v1203_v35, 5 }
  0xb5   : > { %843 = vst.msk [vmem:[#allocation2 + $0xc0] sm:$0xf] %vm826_vm7, %v751_v61  ;;  %v749_v0 = vpop.permute.xlu0 %748  ;;  %v1039_v61 = vsel %vm5360_vm6, %v1037_v54, %v1038_v45  ;;  %v1292_v38 = vsel %vm5360_vm6, %v1290_v30, %v1291_v31  ;;  %v4587_v45 = vrot.slane %v2002_v40, 10  ;;  %v1293_v54 = vrot.slane %v1291_v31, 4 }
  0xb6   : > { %842 = vst.msk [vmem:[#allocation2 + $0xb4] sm:$0xf] %vm826_vm7, %v749_v0  ;;  %v1273_v0 = vrot.slane %v1196_v59, 5  ;;  %v2408_v59 = vrot.slane %v2333_v52, 6 }
  0xb8   : > { %v1274_v8 = vsel %vm5360_vm6, %v1272_v63, %v1273_v0  ;;  %v1275_v21 = vrot.slane %v1273_v0, 4 }
  0xb9   : > { %1095 = vrot.lane.b32.xlu2 %v1012_v9, %s5153_s21  ;;  %v1279_v9 = vrot.slane %v1198_v3, 5  ;;  %v2700_v3 = vshrl.u32 %v2659_v57, 16 }
  0xba   : > { %1099 = vrot.lane.b32.xlu1 %v1018_v4, %s5153_s21  ;;  %v1197_v4 = vld [vmem:[%s5199_s19 + $0x14] sm:$0xf] }
  0xbb   : > { %1097 = vrot.lane.b32.xlu0 %v1015_v7, %s5153_s21  ;;  %v771_v20 = vpop.permute.xlu2 %770  ;;  %v1276_v12 = vrot.slane %v1197_v4, 5  ;;  %v2410_v4 = vrot.slane %v2408_v59, 4 }
  0xbc   : > { %v757_v14 = vpop.permute.xlu1 %756  ;;  %853 = vst.msk [vmem:[#allocation2 + $0x138] sm:$0xf] %vm826_vm7, %v771_v20  ;;  %v1200_v20 = vld [vmem:[%s5199_s19 + $0x20] sm:$0xf] }
  0xbd   : > { %846 = vst.msk [vmem:[#allocation2 + $0xe4] sm:$0xf] %vm826_vm7, %v757_v14  ;;  %v755_v17 = vpop.permute.xlu0 %754  ;;  %v1281_v14 = vrot.slane %v1279_v9, 4  ;;  %v1277_v29 = vsel %vm5360_vm6, %v1275_v21, %v1276_v12  ;;  %v2005_v21 = vld [vmem:[%s5199_s19 + $0x14] sm:$0xf] }
  0xbe   : > { %845 = vst.msk [vmem:[#allocation2 + $0xd8] sm:$0xf] %vm826_vm7, %v755_v17  ;;  %v1278_v17 = vrot.slane %v1276_v12, 4  ;;  %v2722_v12 = vshll.u32 %v2661_v2, 16  ;;  %v4969_v2 = vld [vmem:[%s7716_s1 + $0x88] sm:$0xff] }
  0xbf   : > { %v1283_v23 = vsel %vm5360_vm6, %v1281_v14, %v1282_v15  ;;  %4218 = vmatpush.bf16.msra.mxu2 %v4969_v2 }
  0xc1   : > { %1101 = vrot.lane.b32.xlu2 %v1021_v28, %s5153_s21  ;;  %v1285_v28 = vrot.slane %v1200_v20, 5  ;;  %v2409_v20 = vsel %vm5649_vm11, %v4588_v6, %v2408_v59  ;;  %v2007_v6 = vld [vmem:[%s5199_s19 + $0x1c] sm:$0xf] }
  0xc2   : > { %1105 = vrot.lane.b32.xlu1 %v1027_v22, %s5153_s21 }
  0xc3   : > { %1103 = vrot.lane.b32.xlu0 %v1024_v26, %s5153_s21  ;;  %v777_v39 = vpop.permute.xlu2 %776  ;;  %v1280_v26 = vsel %vm5360_vm6, %v1278_v17, %v1279_v9 }
  0xc4   : > { %v763_v33 = vpop.permute.xlu1 %762  ;;  %856 = vst.msk [vmem:[#allocation2 + $0x15c] sm:$0xf] %vm826_vm7, %v777_v39 }
  0xc5   : > { %849 = vst.msk [vmem:[#allocation2 + $0x108] sm:$0xf] %vm826_vm7, %v763_v33  ;;  %v761_v36 = vpop.permute.xlu0 %760  ;;  %v1287_v33 = vrot.slane %v1285_v28, 4 }
  0xc6   : > { %848 = vst.msk [vmem:[#allocation2 + $0xfc] sm:$0xf] %vm826_vm7, %v761_v36  ;;  %v1284_v36 = vrot.slane %v1282_v15, 4  ;;  %v2702_v15 = vrot.slane %v2700_v3, 6  ;;  %v5727_v3 = vld [vmem:[%s5199_s19 + $0x18] sm:$0xf] }
  0xc7   : > { %v1289_v39 = vsel %vm5360_vm6, %v1287_v33, %v1288_v25  ;;  %v2724_v25 = vrot.slane %v2722_v12, 7  ;;  %v2335_v33 = vld [vmem:[%s5199_s19 + $0x1c] sm:$0xf] }
  0xc8   : > { %v1286_v44 = vsel %vm5360_vm6, %v1284_v36, %v1285_v28  ;;  %v2414_v40 = vrot.slane %v2335_v33, 6 }
  0xc9   : > { %1107 = vrot.lane.b32.xlu2 %v1030_v46, %s5153_s21 }
  0xca   : > { %1111 = vrot.lane.b32.xlu1 %v1036_v41, %s5153_s21  ;;  %v2003_v41 = vld [vmem:[%s5199_s19 + $0xc] sm:$0xf]  ;;  %v2416_v52 = vrot.slane %v2414_v40, 4 }
  0xcb   : > { %1109 = vrot.lane.b32.xlu0 %v1033_v43, %s5153_s21  ;;  %v783_v55 = vpop.permute.xlu2 %782  ;;  %v5643_v43 = vld [vmem:[%s5199_s19 + $0x30] sm:$0xf]  ;;  %v2081_v46 = vrot.slane %v2003_v41, 6 }
  0xcc   : > { %v769_v49 = vpop.permute.xlu1 %768  ;;  %859 = vst.msk [vmem:[#allocation2 + $0x180] sm:$0xf] %vm826_vm7, %v783_v55  ;;  %v1297_v51 = vrot.slane %v5643_v43, 5  ;;  %v2660_v55 = vld [vmem:[%s5199_s19 + $0x14] sm:$0xf] }
  0xcd   : > { %852 = vst.msk [vmem:[#allocation2 + $0x12c] sm:$0xf] %vm826_vm7, %v769_v49  ;;  %v767_v53 = vpop.permute.xlu0 %766  ;;  %v1296_v49 = vrot.slane %v1294_v42, 4  ;;  %v2709_v63 = vshrl.u32 %v2660_v55, 16  ;;  %v2712_v0 = vshll.u32 %v2660_v55, 16  ;;  %v2083_v14 = vrot.slane %v2081_v46, 4 }
  0xce   : > { %851 = vst.msk [vmem:[#allocation2 + $0x120] sm:$0xf] %vm826_vm7, %v767_v53 }
  0xcf   : > { %v1298_v60 = vsel %vm5360_vm6, %v1296_v49, %v1297_v51  ;;  %v2711_v9 = vrot.slane %v2709_v63, 6  ;;  %v3212_v49 = vld [vmem:[%s5199_s19 + $0x14] sm:$0xf]  ;;  %v3211_v63 = vld [vmem:[%s5199_s19 + $0x10] sm:$0x8] }
  0xd0   : > { %v4589_v12 = vrot.slane %v3211_v63, 11 }
  0xd1   : > { %1113 = vrot.lane.b32.xlu2 %v1039_v61, %s5153_s21  ;;  %v5668_v61 = vld [vmem:[%s5199_s19 + $0x18] sm:$0xf] }
  0xd2   : > { %1117 = vrot.lane.b32.xlu1 %v1045_v56, %s5153_s21  ;;  %v2411_v5 = vrot.slane %v5668_v61, 6 }
  0xd3   : > { %1115 = vrot.lane.b32.xlu0 %v1042_v58, %s5153_s21  ;;  %v789_v7 = vpop.permute.xlu2 %788  ;;  %v2082_v58 = vsel %vm5649_vm11, %v4587_v45, %v2081_v46 }
  0xd4   : > { %v775_v1 = vpop.permute.xlu1 %774  ;;  %862 = vst.msk [vmem:[#allocation2 + $0x1a4] sm:$0xf] %vm826_vm7, %v789_v7  ;;  %v2412_v18 = vsel %vm5649_vm11, %v2410_v4, %v2411_v5 }
  0xd5   : > { %855 = vst.msk [vmem:[#allocation2 + $0x150] sm:$0xf] %vm826_vm7, %v775_v1  ;;  %v773_v24 = vpop.permute.xlu0 %772  ;;  %v1295_v1 = vsel %vm5360_vm6, %v1293_v54, %v1294_v42  ;;  %v5709_v42 = vld [vmem:[%s5199_s19 + $0x20] sm:$0xf]  ;;  %v2413_v54 = vrot.slane %v2411_v5, 4 }
  0xd6   : > { %854 = vst.msk [vmem:[#allocation2 + $0x144] sm:$0xf] %vm826_vm7, %v773_v24  ;;  %v2703_v24 = vshll.u32 %v2659_v57, 16 }
  0xd7   : > { %v2415_v5 = vsel %vm5649_vm11, %v2413_v54, %v2414_v40  ;;  %v5788_v54 = vld [vmem:[%s5199_s19 + $0x20] sm:$0xf] }
  0xd8   : > { %v2096_v63 = vrot.slane %v5788_v54, 6 }
  0xd9   : > { %1119 = vrot.lane.b32.xlu2 %v1048_v13, %s5153_s21 }
  0xda   : > { %1379 = vrot.lane.b32.xlu1 %v1274_v8, %s5154_s22  ;;  %v2004_v8 = vld [vmem:[%s5199_s19 + $0x10] sm:$0xf] }
  0xdb   : > { %1377 = vrot.lane.b32.xlu0 %v1271_v10, %s5154_s22  ;;  %v1054_v22 = vpop.permute.xlu2 %1053  ;;  %v2714_v10 = vrot.slane %v2712_v0, 7  ;;  %v3290_v0 = vrot.slane %v3212_v49, 7 }
  0xdc   : > { %v781_v16 = vpop.permute.xlu1 %780  ;;  %1160 = vst.msk [vmem:[#allocation2 + $0x18] sm:$0xf] %vm1157_vm8, %v1054_v22 }
  0xdd   : > { %858 = vst.msk [vmem:[#allocation2 + $0x174] sm:$0xf] %vm826_vm7, %v781_v16  ;;  %v779_v19 = vpop.permute.xlu0 %778  ;;  %v2705_v16 = vrot.slane %v2703_v24, 7  ;;  %v2715_v22 = vor.u32 %v2714_v10, %v2711_v9 }
  0xde   : > { %857 = vst.msk [vmem:[#allocation2 + $0x168] sm:$0xf] %vm826_vm7, %v779_v19  ;;  %v2084_v19 = vrot.slane %v2004_v8, 6 }
  0xdf   : > { %v2706_v27 = vor.u32 %v2705_v16, %v2702_v15  ;;  %v2717_v31 = vrot.slane %v2715_v22, 4  ;;  %v2093_v16 = vrot.slane %v2007_v6, 6 }
  0xe0   : > { %v2086_v28 = vrot.slane %v2084_v19, 4 }
  0xe1   : > { %1381 = vrot.lane.b32.xlu2 %v1277_v29, %s5154_s22  ;;  %v2087_v29 = vrot.slane %v2005_v21, 6  ;;  %v2707_v36 = vrot.slane %v2706_v27, 4  ;;  %v2337_v21 = vld [vmem:[%s5199_s19 + $0x24] sm:$0xf] }
  0xe2   : > { %1385 = vrot.lane.b32.xlu1 %v1283_v23, %s5154_s22  ;;  %v2721_v23 = vrot.slane %v2719_v11, 6 }
  0xe3   : > { %1383 = vrot.lane.b32.xlu0 %v1280_v26, %s5154_s22  ;;  %v1060_v37 = vpop.permute.xlu2 %1059  ;;  %v2085_v26 = vsel %vm5649_vm11, %v2083_v14, %v2084_v19  ;;  %v2716_v46 = vsel %vm5696_vm14, %v2707_v36, %v2715_v22  ;;  %v2089_v62 = vrot.slane %v2087_v29, 4  ;;  %v3293_v14 = vrot.slane %v5727_v3, 7 }
  0xe4   : > { %v787_v32 = vpop.permute.xlu1 %786  ;;  %1163 = vst.msk [vmem:[#allocation2 + $0x3c] sm:$0xf] %vm1157_vm8, %v1060_v37  ;;  %v2662_v37 = vld [vmem:[%s5199_s19 + $0x1c] sm:$0xf] }
  0xe5   : > { %861 = vst.msk [vmem:[#allocation2 + $0x198] sm:$0xf] %vm826_vm7, %v787_v32  ;;  %v785_v34 = vpop.permute.xlu0 %784  ;;  %v5691_v32 = vor.u32 %v2724_v25, %v2721_v23  ;;  %v2732_v45 = vshll.u32 %v2662_v37, 16  ;;  %v2664_v25 = vld [vmem:[%s5199_s19 + $0x24] sm:$0xf] }
  0xe6   : > { %860 = vst.msk [vmem:[#allocation2 + $0x18c] sm:$0xf] %vm826_vm7, %v785_v34  ;;  %v2749_v33 = vshrl.u32 %v2664_v25, 16 }
  0xe7   : > { %v2726_v41 = vsel %vm5696_vm14, %v2717_v31, %v5691_v32  ;;  %v2727_v23 = vrot.slane %v5691_v32, 4  ;;  %v5771_v32 = vld [vmem:[%s5199_s19 + $0x28] sm:$0xf] }
  0xe8   : > { %v2423_v40 = vrot.slane %v5771_v32, 6 }
  0xe9   : > { %1387 = vrot.lane.b32.xlu2 %v1286_v44, %s5154_s22  ;;  %v2729_v44 = vshrl.u32 %v2662_v37, 16  ;;  %v2665_v37 = vld [vmem:[%s5199_s19 + $0x28] sm:$0xf] }
  0xea   : > { %1391 = vrot.lane.b32.xlu1 %v1292_v38, %s5154_s22  ;;  %v2759_v49 = vshrl.u32 %v2665_v37, 16 }
  0xeb   : > { %1389 = vrot.lane.b32.xlu0 %v1289_v39, %s5154_s22  ;;  %v1066_v56 = vpop.permute.xlu2 %1065  ;;  %v2088_v39 = vsel %vm5649_vm11, %v2086_v28, %v2087_v29  ;;  %v2731_v57 = vrot.slane %v2729_v44, 6  ;;  %v5784_v44 = vld [vmem:[%s5199_s19 + $0x78] sm:$0xf] }
  0xec   : > { %v1052_v47 = vpop.permute.xlu1 %1051  ;;  %1166 = vst.msk [vmem:[#allocation2 + $0x60] sm:$0xf] %vm1157_vm8, %v1066_v56  ;;  %v2006_v56 = vld [vmem:[%s5199_s19 + $0x18] sm:$0xf] }
  0xed   : > { %1159 = vst.msk [vmem:[#allocation2 + $0xc] sm:$0xf] %vm1157_vm8, %v1052_v47  ;;  %v1050_v53 = vpop.permute.xlu0 %1049  ;;  %v2663_v47 = vld [vmem:[%s5199_s19 + $0x20] sm:$0xf]  ;;  %v2090_v4 = vrot.slane %v2006_v56, 6  ;;  %v2095_v56 = vrot.slane %v2093_v16, 4 }
  0xee   : > { %1158 = vst.msk [vmem:[#allocation2] sm:$0xf] %vm1157_vm8, %v1050_v53  ;;  %v2417_v53 = vrot.slane %v5709_v42, 6  ;;  %v2739_v59 = vshrl.u32 %v2663_v47, 16 }
  0xef   : > { %v2091_v11 = vsel %vm5649_vm11, %v2089_v62, %v2090_v4  ;;  %v2092_v15 = vrot.slane %v2090_v4, 4  ;;  %v2097_v6 = vsel %vm5649_vm11, %v2095_v56, %v2096_v63 }
  0xf0   : > { %v2418_v24 = vsel %vm5649_vm11, %v2416_v52, %v2417_v53  ;;  %v2741_v8 = vrot.slane %v2739_v59, 6  ;;  %v2762_v52 = vshll.u32 %v2665_v37, 16  ;;  %v4959_v59 = vld [vmem:[%s7716_s1 + $0x38] sm:$0xff]  ;;  %v4956_v37 = vld [vmem:[%s7716_s1 + $0x20] sm:$0xff] }
  0xf1   : > { %1393 = vrot.lane.b32.xlu2 %v1295_v1, %s5154_s22  ;;  %v2094_v29 = vsel %vm5649_vm11, %v2092_v15, %v2093_v16  ;;  %4014 = vmatpush.bf16.msra.mxu0 %v4959_v59 }
  0xf2   : > { %2188 = vrot.lane.b32.xlu1 %v2082_v58, %s5152_s20  ;;  %v2734_v58 = vrot.slane %v2732_v45, 7  ;;  %v2764_v4 = vrot.slane %v2762_v52, 7  ;;  %5077 = vmatpush.bf16.msra.mxu3 %v4959_v59 }
  0xf3   : > { %1395 = vrot.lane.b32.xlu0 %v1298_v60, %s5154_s22  ;;  %v1072_v17 = vpop.permute.xlu2 %1071  ;;  %v2742_v60 = vshll.u32 %v2663_v47, 16 }
  0xf4   : > { %v1058_v7 = vpop.permute.xlu1 %1057  ;;  %1169 = vst.msk [vmem:[#allocation2 + $0x84] sm:$0xf] %vm1157_vm8, %v1072_v17  ;;  %v3291_v17 = vsel %vm5737_vm1, %v4589_v12, %v3290_v0 }
  0xf5   : > { %1162 = vst.msk [vmem:[#allocation2 + $0x30] sm:$0xf] %vm1157_vm8, %v1058_v7  ;;  %v1056_v13 = vpop.permute.xlu0 %1055  ;;  %v2735_v7 = vor.u32 %v2734_v58, %v2731_v57  ;;  %v2744_v9 = vrot.slane %v2742_v60, 7  ;;  %v5797_v60 = vld [vmem:[%s5199_s19 + $0x20] sm:$0xf] }
  0xf6   : > { %1161 = vst.msk [vmem:[#allocation2 + $0x24] sm:$0xf] %vm1157_vm8, %v1056_v13  ;;  %v3292_v13 = vrot.slane %v3290_v0, 4 }
  0xf7   : > { %v2737_v19 = vrot.slane %v2735_v7, 4  ;;  %3433 = vst.msk [vmem:[#allocation2 + $0x8] sm:$0xf] %vm277_vm3, %v3291_v17  ;;  %v2736_v36 = vsel %vm5696_vm14, %v2727_v23, %v2735_v7  ;;  %v3295_v7 = vrot.slane %v3293_v14, 4  ;;  %v2009_v17 = vld [vmem:[%s5199_s19 + $0x24] sm:$0xf] }
  0xf8   : > { %v3294_v27 = vsel %vm5737_vm1, %v3292_v13, %v3293_v14  ;;  %v4958_v13 = vld [vmem:[%s7716_s1 + $0x30] sm:$0xff]  ;;  %v4957_v23 = vld [vmem:[%s7716_s1 + $0x28] sm:$0xff] }
  0xf9   : > { %2190 = vrot.lane.b32.xlu2 %v2085_v26, %s5152_s20  ;;  %v4968_v26 = vld [vmem:[%s7716_s1 + $0x80] sm:$0xff]  ;;  %3434 = vst.msk [vmem:[#allocation2 + $0x14] sm:$0xf] %vm277_vm3, %v3294_v27  ;;  %4015 = vmatpush.bf16.msra.mxu0 %v4958_v13 }
  0xfa   : > { %2517 = vrot.lane.b32.xlu1 %v2412_v18, %s5153_s21  ;;  %4219 = vmatpush.bf16.msra.mxu2 %v4968_v26  ;;  %v2099_v26 = vrot.slane %v2009_v17, 6  ;;  %v2425_v17 = vrot.slane %v2423_v40, 4 }
  0xfb   : > { %2515 = vrot.lane.b32.xlu0 %v2409_v20, %s5153_s21  ;;  %v1078_v38 = vpop.permute.xlu2 %1077  ;;  %v5748_v20 = vor.u32 %v2744_v9, %v2741_v8  ;;  %v3299_v9 = vrot.slane %v5797_v60, 7  ;;  %5078 = vmatpush.bf16.msra.mxu3 %v4958_v13 }
  0xfc   : > { %v1064_v30 = vpop.permute.xlu1 %1063  ;;  %1172 = vst.msk [vmem:[#allocation2 + $0xa8] sm:$0xf] %vm1157_vm8, %v1078_v38  ;;  %v3214_v38 = vld [vmem:[%s5199_s19 + $0x1c] sm:$0xf] }
  0xfd   : > { %1165 = vst.msk [vmem:[#allocation2 + $0x54] sm:$0xf] %vm1157_vm8, %v1064_v30  ;;  %v1062_v34 = vpop.permute.xlu0 %1061  ;;  %v2420_v30 = vrot.slane %v2337_v21, 6  ;;  %v2746_v31 = vsel %vm5696_vm14, %v2737_v19, %v5748_v20  ;;  %v3296_v42 = vrot.slane %v3214_v38, 7  ;;  %v2747_v19 = vrot.slane %v5748_v20, 4  ;;  %4016 = vmatpush.bf16.msra.mxu0 %v4957_v23 }
  0xfe   : > { %1164 = vst.msk [vmem:[#allocation2 + $0x48] sm:$0xf] %vm1157_vm8, %v1062_v34  ;;  %v2752_v34 = vshll.u32 %v2664_v25, 16  ;;  %v4600_v57 = vld [vmem:[#allocation2 + $0x8] sm:$0xf]  ;;  %v3301_v54 = vrot.slane %v3299_v9, 4 }
  0xff   : > { %v3298_v8 = vrot.slane %v3296_v42, 4  ;;  %v3297_v3 = vsel %vm5737_vm1, %v3295_v7, %v3296_v42  ;;  %v2666_v20 = vld [vmem:[%s5199_s19 + $0x2c] sm:$0xf]  ;;  %5079 = vmatpush.bf16.msra.mxu3 %v4957_v23  ;;  %v3216_v38 = vld [vmem:[%s5199_s19 + $0x24] sm:$0xf]  ;;  %v4955_v42 = vld [vmem:[%s7716_s1 + $0x18] sm:$0xff] }
 0x100   : > { %v2754_v47 = vrot.slane %v2752_v34, 7  ;;  %v4900_v0 = vld [vmem:[#allocation2 + $0x10] sm:$0xf0]  ;;  %3435 = vst.msk [vmem:[#allocation2 + $0x20] sm:$0xf] %vm277_vm3, %v3297_v3 }
 0x101   : > { %3067 = vrot.lane.b32.xlu2 %v2716_v46, %s5154_s22  ;;  %v2751_v46 = vrot.slane %v2749_v33, 6  ;;  %v3300_v21 = vsel %vm5737_vm1, %v3298_v8, %v3299_v9  ;;  %v2101_v33 = vrot.slane %v2099_v26, 4  ;;  %4017 = vmatpush.bf16.msra.mxu0 %v4956_v37  ;;  %v2667_v9 = vld [vmem:[%s5199_s19 + $0x30] sm:$0xf] }
 0x102   : > { %2192 = vrot.lane.b32.xlu1 %v2088_v39, %s5152_s20  ;;  %v2422_v39 = vrot.slane %v2420_v30, 4  ;;  %3436 = vst.msk [vmem:[#allocation2 + $0x2c] sm:$0xf] %vm277_vm3, %v3300_v21  ;;  %v2782_v21 = vshll.u32 %v2667_v9, 16 }
 0x103   : > { %3069 = vrot.lane.b32.xlu0 %v2726_v41, %s5154_s22  ;;  %v1084_v1 = vpop.permute.xlu2 %1083  ;;  %v2419_v41 = vrot.slane %v2417_v53, 4  ;;  %v7720_v53 = vrot.slane %v5784_v44, 5  ;;  %v2755_v2 = vor.u32 %v2754_v47, %v2751_v46  ;;  %v5864_v46 = vld [vmem:[%s5199_s19 + $0x28] sm:$0xf]  ;;  %5080 = vmatpush.bf16.msra.mxu3 %v4956_v37  ;;  %v4952_v37 = vld [vmem:[%s7716_s1] sm:$0xff] }
 0x104   : > { %v1070_v55 = vpop.permute.xlu1 %1069  ;;  %1175 = vst.msk [vmem:[#allocation2 + $0xcc] sm:$0xf] %vm1157_vm8, %v1084_v1  ;;  %v1223_v1 = vld [vmem:[%s5199_s19 + $0x7c] sm:$0xf] }
 0x105   : > { %1168 = vst.msk [vmem:[#allocation2 + $0x78] sm:$0xf] %vm1157_vm8, %v1070_v55  ;;  %v1068_v61 = vpop.permute.xlu0 %1067  ;;  %v2421_v62 = vsel %vm5649_vm11, %v2419_v41, %v2420_v30  ;;  %v1354_v12 = vrot.slane %v1223_v1, 5  ;;  %v2757_v15 = vrot.slane %v2755_v2, 4  ;;  %v2769_v30 = vshrl.u32 %v2666_v20, 16  ;;  %4018 = vmatpush.bf16.msra.mxu0 %v4955_v42 }
 0x106   : > { %1167 = vst.msk [vmem:[#allocation2 + $0x6c] sm:$0xf] %vm1157_vm8, %v1068_v61  ;;  %v2424_v61 = vsel %vm5649_vm11, %v2422_v39, %v2423_v40  ;;  %v5858_v41 = vld [vmem:[%s5199_s19 + $0x2c] sm:$0xf] }
 0x107   : > { %v4612_v52 = vld [vmem:[#allocation2 + $0x20] sm:$0xf]  ;;  %5081 = vmatpush.bf16.msra.mxu3 %v4955_v42 }
 0x109   : > { %2194 = vrot.lane.b32.xlu2 %v2091_v11, %s5152_s20  ;;  %v1353_v11 = vrot.slane %v7720_v53, 4 }
 0x10a   : > { %2521 = vrot.lane.b32.xlu1 %v2418_v24, %s5153_s21  ;;  %v2761_v24 = vrot.slane %v2759_v49, 6  ;;  %v1356_v49 = vrot.slane %v1354_v12, 4 }
 0x10b   : > { %2519 = vrot.lane.b32.xlu0 %v2415_v5, %s5153_s21  ;;  %v1090_v28 = vpop.permute.xlu2 %1089  ;;  %v4601_v5 = vor.u32 %v4900_v0, %v4600_v57  ;;  %v1355_v25 = vsel %vm5360_vm6, %v1353_v11, %v1354_v12  ;;  %v2426_v0 = vrot.slane %v5858_v41, 6  ;;  %v4954_v11 = vld [vmem:[%s7716_s1 + $0x10] sm:$0xff]  ;;  %v5939_v41 = vld [vmem:[%s5199_s19 + $0x2c] sm:$0xf] }
 0x10c   : > { %v1076_v18 = vpop.permute.xlu1 %1075  ;;  %1178 = vst.msk [vmem:[#allocation2 + $0xf0] sm:$0xf] %vm1157_vm8, %v1090_v28  ;;  %v5823_v16 = vor.u32 %v2764_v4, %v2761_v24  ;;  %v5844_v28 = vld [vmem:[%s5199_s19 + $0x28] sm:$0xf]  ;;  %v5884_v24 = vld [vmem:[%s5199_s19 + $0x30] sm:$0xf]  ;;  %4019 = vmatpush.bf16.msra.mxu0 %v4954_v11  ;;  %5082 = vmatpush.bf16.msra.mxu3 %v4954_v11 }
 0x10d   : > { %1171 = vst.msk [vmem:[#allocation2 + $0x9c] sm:$0xf] %vm1157_vm8, %v1076_v18  ;;  %v1074_v22 = vpop.permute.xlu0 %1073  ;;  %4878 = vmatmul.msk.bf16.vlgmr.msra.gmra.mxu2 %vm3959_vm2, %v4601_v5  ;;  %v2102_v34 = vrot.slane %v5844_v28, 6  ;;  %v2428_v3 = vrot.slane %v2426_v0, 4  ;;  %v1522_v28 = vld [vmem:[%s5199_s19 + $0x8] sm:$0xe] }
 0x10e   : > { %1170 = vst.msk [vmem:[#allocation2 + $0x90] sm:$0xf] %vm1157_vm8, %v1074_v22  ;;  %v2766_v27 = vsel %vm5696_vm14, %v2757_v15, %v5823_v16  ;;  %v2767_v7 = vrot.slane %v5823_v16, 4 }
 0x10f   : > { %v2103_v59 = vsel %vm5649_vm11, %v2101_v33, %v2102_v34 }
 0x111   : > { %3071 = vrot.lane.b32.xlu2 %v2736_v36, %s5154_s22  ;;  %v2098_v36 = vrot.slane %v2096_v63, 4 }
 0x112   : > { %2196 = vrot.lane.b32.xlu1 %v2094_v29, %s5152_s20  ;;  %v2756_v29 = vsel %vm5696_vm14, %v2747_v19, %v2755_v2  ;;  %v2779_v19 = vshrl.u32 %v2667_v9, 16 }
 0x113   : > { %3073 = vrot.lane.b32.xlu0 %v2746_v31, %s5154_s22  ;;  %v1096_v58 = vpop.permute.xlu2 %1095  ;;  %v2772_v31 = vshll.u32 %v2666_v20, 16  ;;  %v2100_v63 = vsel %vm5649_vm11, %v2098_v36, %v2099_v26  ;;  %v2427_v26 = vsel %vm5649_vm11, %v2425_v17, %v2426_v0  ;;  %v2105_v0 = vrot.slane %v5939_v41, 6 }
 0x114   : > { %v1082_v45 = vpop.permute.xlu1 %1081  ;;  %1181 = vst.msk [vmem:[#allocation2 + $0x114] sm:$0xf] %vm1157_vm8, %v1096_v58  ;;  %v3302_v58 = vrot.slane %v3216_v38, 7 }
 0x115   : > { %1174 = vst.msk [vmem:[#allocation2 + $0xc0] sm:$0xf] %vm1157_vm8, %v1082_v45  ;;  %v1080_v55 = vpop.permute.xlu0 %1079  ;;  %v5861_v45 = vld [vmem:[%s5199_s19 + $0x80] sm:$0xf]  ;;  %v2774_v56 = vrot.slane %v2772_v31, 7 }
 0x116   : > { %1173 = vst.msk [vmem:[#allocation2 + $0xb4] sm:$0xf] %vm1157_vm8, %v1080_v55  ;;  %v2771_v55 = vrot.slane %v2769_v30, 6  ;;  %v1357_v60 = vrot.slane %v5861_v45, 5  ;;  %v3303_v2 = vsel %vm5737_vm1, %v3301_v54, %v3302_v58  ;;  %v3304_v5 = vrot.slane %v3302_v58, 4 }
 0x117   : > { %3437 = vst.msk [vmem:[#allocation2 + $0x38] sm:$0xf] %vm277_vm3, %v3303_v2  ;;  %v2784_v30 = vrot.slane %v2782_v21, 7  ;;  %v3218_v31 = vld [vmem:[%s5199_s19 + $0x2c] sm:$0xf]  ;;  %v4967_v21 = vld [vmem:[%s7716_s1 + $0x78] sm:$0xff] }
 0x118   : > { %v1358_v4 = vsel %vm5360_vm6, %v1356_v49, %v1357_v60  ;;  %v5896_v8 = vor.u32 %v2774_v56, %v2771_v55  ;;  %v3308_v38 = vrot.slane %v3218_v31, 7  ;;  %v2668_v45 = vld [vmem:[%s5199_s19 + $0x34] sm:$0xf]  ;;  %v5969_v2 = vld [vmem:[%s5199_s19 + $0x30] sm:$0xf]  ;;  %4113 = vmatpush.bf16.msra.mxu1 %v4967_v21 }
 0x119   : > { %2198 = vrot.lane.b32.xlu2 %v2097_v6, %s5152_s20  ;;  %v5891_v6 = vld [vmem:[%s5199_s19 + $0x84] sm:$0xf] }
 0x11a   : > { %2525 = vrot.lane.b32.xlu1 %v2424_v61, %s5153_s21  ;;  %v4903_v61 = vld [vmem:[#allocation2 + $0x28] sm:$0xf0]  ;;  %v1360_v16 = vrot.slane %v5891_v6, 5  ;;  %v2776_v23 = vsel %vm5696_vm14, %v2767_v7, %v5896_v8  ;;  %v3310_v55 = vrot.slane %v3308_v38, 4 }
 0x11b   : > { %2523 = vrot.lane.b32.xlu0 %v2421_v62, %s5153_s21  ;;  %v1102_v22 = vpop.permute.xlu2 %1101  ;;  %v3305_v62 = vrot.slane %v5864_v46, 7  ;;  %v4613_v1 = vor.u32 %v4903_v61, %v4612_v52  ;;  %v2777_v52 = vrot.slane %v5896_v8, 4  ;;  %v2792_v61 = vshll.u32 %v2668_v45, 16 }
 0x11c   : > { %v1088_v14 = vpop.permute.xlu1 %1087  ;;  %1184 = vst.msk [vmem:[#allocation2 + $0x138] sm:$0xf] %vm1157_vm8, %v1102_v22  ;;  %v4953_v22 = vld [vmem:[%s7716_s1 + $0x8] sm:$0xff]  ;;  %v1362_v40 = vrot.slane %v1360_v16, 4 }
 0x11d   : > { %1177 = vst.msk [vmem:[#allocation2 + $0xe4] sm:$0xf] %vm1157_vm8, %v1088_v14  ;;  %v1086_v18 = vpop.permute.xlu0 %1085  ;;  %4879 = vmatmul.msk.bf16.gmra.mxu2 %vm3959_vm2, %v4613_v1  ;;  %v3306_v12 = vsel %vm5737_vm1, %v3304_v5, %v3305_v62  ;;  %v2429_v14 = vrot.slane %v5884_v24, 6  ;;  %4020 = vmatpush.bf16.msra.mxu0 %v4953_v22  ;;  %v3307_v54 = vrot.slane %v3305_v62, 4  ;;  %v2669_v1 = vld [vmem:[%s5199_s19 + $0x38] sm:$0xf] }
 0x11e   : > { %1176 = vst.msk [vmem:[#allocation2 + $0xd8] sm:$0xf] %vm1157_vm8, %v1086_v18  ;;  %5083 = vmatpush.bf16.msra.mxu3 %v4953_v22  ;;  %v4624_v33 = vld [vmem:[#allocation2 + $0x38] sm:$0xf]  ;;  %v2794_v9 = vrot.slane %v2792_v61, 7  ;;  %v2799_v11 = vshrl.u32 %v2669_v1, 16 }
 0x11f   : > { %3438 = vst.msk [vmem:[#allocation2 + $0x44] sm:$0xf] %vm277_vm3, %v3306_v12  ;;  %v2430_v32 = vsel %vm5649_vm11, %v2428_v3, %v2429_v14  ;;  %v3309_v62 = vsel %vm5737_vm1, %v3307_v54, %v3308_v38  ;;  %v2431_v6 = vrot.slane %v2429_v14, 4  ;;  %v2802_v12 = vshll.u32 %v2669_v1, 16  ;;  %v1523_v24 = vld [vmem:[%s5199_s19 + $0xc] sm:$0xf] }
 0x120   : > { %3439 = vst.msk [vmem:[#allocation2 + $0x50] sm:$0xf] %vm277_vm3, %v3309_v62  ;;  %v2107_v3 = vrot.slane %v2105_v0, 4  ;;  %v1572_v17 = vshrl.u32 %v1523_v24, 16  ;;  %v1566_v1 = vshll.u32 %v1522_v28, 16 }
 0x121   : > { %3075 = vrot.lane.b32.xlu2 %v2756_v29, %s5154_s22  ;;  %v2781_v29 = vrot.slane %v2779_v19, 6  ;;  %4021 = vmatpush.bf16.msra.mxu0 %v4952_v37 }
 0x122   : > { %1433 = vrot.lane.b32.xlu1 %v1355_v25, %s5154_s22  ;;  %v5921_v25 = vld [vmem:[%s5199_s19 + $0x88] sm:$0xf]  ;;  %5084 = vmatpush.bf16.msra.mxu3 %v4952_v37 }
 0x123   : > { %3077 = vrot.lane.b32.xlu0 %v2766_v27, %s5154_s22  ;;  %v1108_v57 = vpop.permute.xlu2 %1107  ;;  %v1363_v20 = vrot.slane %v5921_v25, 5  ;;  %v1359_v27 = vrot.slane %v1357_v60, 4  ;;  %v5959_v46 = vor.u32 %v2784_v30, %v2781_v29  ;;  %v2789_v60 = vshrl.u32 %v2668_v45, 16 }
 0x124   : > { %v1094_v39 = vpop.permute.xlu1 %1093  ;;  %1187 = vst.msk [vmem:[#allocation2 + $0x15c] sm:$0xf] %vm1157_vm8, %v1108_v57  ;;  %v1563_v45 = vshrl.u32 %v1522_v28, 16  ;;  %v4964_v28 = vld [vmem:[%s7716_s1 + $0x60] sm:$0xff] }
 0x125   : > { %1180 = vst.msk [vmem:[#allocation2 + $0x108] sm:$0xf] %vm1157_vm8, %v1094_v39  ;;  %v1092_v47 = vpop.permute.xlu0 %1091  ;;  %v1364_v56 = vsel %vm5360_vm6, %v1362_v40, %v1363_v20  ;;  %v2791_v8 = vrot.slane %v2789_v60, 6  ;;  %v2804_v40 = vrot.slane %v2802_v12, 7  ;;  %v2787_v30 = vrot.slane %v5959_v46, 4 }
 0x126   : > { %1179 = vst.msk [vmem:[#allocation2 + $0xfc] sm:$0xf] %vm1157_vm8, %v1092_v47  ;;  %v4906_v36 = vld [vmem:[#allocation2 + $0x40] sm:$0xf0]  ;;  %v5943_v47 = vld [vmem:[%s5199_s19 + $0x30] sm:$0xf]  ;;  %5085 = vmatpush.bf16.msrb.mxu3 %v4967_v21 }
 0x127   : > { %v4625_v42 = vor.u32 %v4906_v36, %v4624_v33  ;;  %v3311_v58 = vrot.slane %v5943_v47, 7  ;;  %v6008_v33 = vld [vmem:[%s5199_s19 + $0x38] sm:$0xf]  ;;  %v4636_v36 = vld [vmem:[#allocation2 + $0x50] sm:$0xf]  ;;  %v4965_v47 = vld [vmem:[%s7716_s1 + $0x68] sm:$0xff] }
 0x128   : > { %v2435_v62 = vrot.slane %v6008_v33, 6  ;;  %v1230_v33 = vld [vmem:[%s5199_s19 + $0x98] sm:$0x1] }
 0x129   : > { %1435 = vrot.lane.b32.xlu2 %v1358_v4, %s5154_s22  ;;  %v2786_v4 = vsel %vm5696_vm14, %v2777_v52, %v5959_v46  ;;  %v3312_v5 = vsel %vm5737_vm1, %v3310_v55, %v3311_v58  ;;  %v4966_v55 = vld [vmem:[%s7716_s1 + $0x70] sm:$0xff] }
 0x12a   : > { %2202 = vrot.lane.b32.xlu1 %v2103_v59, %s5152_s20  ;;  %v5956_v59 = vld [vmem:[%s5199_s19 + $0x34] sm:$0xf]  ;;  %3440 = vst.msk [vmem:[#allocation2 + $0x5c] sm:$0xf] %vm277_vm3, %v3312_v5  ;;  %4114 = vmatpush.bf16.msra.mxu1 %v4966_v55 }
 0x12b   : > { %2200 = vrot.lane.b32.xlu0 %v2100_v63, %s5152_s20  ;;  %v1114_v18 = vpop.permute.xlu2 %1113  ;;  %v1361_v63 = vsel %vm5360_vm6, %v1359_v27, %v1360_v16  ;;  %v2432_v7 = vrot.slane %v5956_v59, 6  ;;  %v2104_v16 = vrot.slane %v2102_v34, 4  ;;  %v1574_v27 = vrot.slane %v1572_v17, 5  ;;  %5086 = vmatpush.bf16.msrb.mxu3 %v4966_v55 }
 0x12c   : > { %v1100_v13 = vpop.permute.xlu1 %1099  ;;  %1190 = vst.msk [vmem:[#allocation2 + $0x180] sm:$0xf] %vm1157_vm8, %v1114_v18  ;;  %v1575_v18 = vshll.u32 %v1523_v24, 16 }
 0x12d   : > { %1183 = vst.msk [vmem:[#allocation2 + $0x12c] sm:$0xf] %vm1157_vm8, %v1100_v13  ;;  %v1098_v15 = vpop.permute.xlu0 %1097  ;;  %4880 = vmatmul.msk.bf16.gmra.mxu2 %vm3959_vm2, %v4625_v42  ;;  %v2433_v22 = vsel %vm5649_vm11, %v2431_v6, %v2432_v7  ;;  %v2106_v31 = vsel %vm5649_vm11, %v2104_v16, %v2105_v0  ;;  %v2434_v42 = vrot.slane %v2432_v7, 4  ;;  %v1565_v0 = vrot.slane %v1563_v45, 5 }
 0x12e   : > { %1182 = vst.msk [vmem:[#allocation2 + $0x120] sm:$0xf] %vm1157_vm8, %v1098_v15  ;;  %v2108_v15 = vrot.slane %v5969_v2, 6  ;;  %v1577_v29 = vrot.slane %v1575_v18, 6  ;;  %4115 = vmatpush.bf16.msra.mxu1 %v4965_v47 }
 0x12f   : > { %v2436_v16 = vsel %vm5649_vm11, %v2434_v42, %v2435_v62  ;;  %5087 = vmatpush.bf16.msrb.mxu3 %v4965_v47 }
 0x130   : > { %v2109_v34 = vsel %vm5649_vm11, %v2107_v3, %v2108_v15 }
 0x131   : > { %2527 = vrot.lane.b32.xlu2 %v2427_v26, %s5153_s21  ;;  %v1524_v26 = vld [vmem:[%s5199_s19 + $0x10] sm:$0xf]  ;;  %v4909_v38 = vld [vmem:[#allocation2 + $0x58] sm:$0xf0] }
 0x132   : > { %3079 = vrot.lane.b32.xlu1 %v2776_v23, %s5154_s22  ;;  %v2795_v23 = vor.u32 %v2794_v9, %v2791_v8  ;;  %v1582_v37 = vshrl.u32 %v1524_v26, 16  ;;  %v1585_v41 = vshll.u32 %v1524_v26, 16  ;;  %v4637_v6 = vor.u32 %v4909_v38, %v4636_v36  ;;  %4116 = vmatpush.bf16.msra.mxu1 %v4964_v28 }
 0x133   : > { %2529 = vrot.lane.b32.xlu0 %v2430_v32, %s5153_s21  ;;  %v1120_v57 = vpop.permute.xlu2 %1119  ;;  %v2801_v32 = vrot.slane %v2799_v11, 6  ;;  %v1568_v11 = vrot.slane %v1566_v1, 6  ;;  %5088 = vmatpush.bf16.msrb.mxu3 %v4964_v28  ;;  %v2110_v1 = vrot.slane %v2108_v15, 4  ;;  %v6141_v28 = vld [vmem:[%s5199_s19 + $0x40] sm:$0xf] }
 0x134   : > { %v1106_v39 = vpop.permute.xlu1 %1105  ;;  %1193 = vst.msk [vmem:[#allocation2 + $0x1a4] sm:$0xf] %vm1157_vm8, %v1120_v57  ;;  %v2797_v52 = vrot.slane %v2795_v23, 4  ;;  %v6022_v57 = vld [vmem:[%s5199_s19 + $0x8c] sm:$0xf]  ;;  %v1584_v46 = vrot.slane %v1582_v37, 5  ;;  %v2796_v12 = vsel %vm5696_vm14, %v2787_v30, %v2795_v23 }
 0x135   : > { %1186 = vst.msk [vmem:[#allocation2 + $0x150] sm:$0xf] %vm1157_vm8, %v1106_v39  ;;  %v1104_v49 = vpop.permute.xlu0 %1103  ;;  %v6011_v39 = vor.u32 %v1577_v29, %v1574_v27  ;;  %v6015_v54 = vor.u32 %v2804_v40, %v2801_v32  ;;  %v1587_v60 = vrot.slane %v1585_v41, 6  ;;  %v1366_v3 = vrot.slane %v6022_v57, 5  ;;  %v1525_v29 = vld [vmem:[%s5199_s19 + $0x14] sm:$0xf] }
 0x136   : > { %1185 = vst.msk [vmem:[#allocation2 + $0x144] sm:$0xf] %vm1157_vm8, %v1104_v49  ;;  %v3220_v49 = vld [vmem:[%s5199_s19 + $0x34] sm:$0xf]  ;;  %v1569_v17 = vor.u32 %v1568_v11, %v1565_v0  ;;  %v1299_v23 = vrot.slane %v1297_v51, 4  ;;  %v1365_v51 = vrot.slane %v1363_v20, 4 }
 0x137   : > { %v1580_v59 = vrot.slane %v6011_v39, 4  ;;  %v6034_v7 = vor.u32 %v1587_v60, %v1584_v46  ;;  %v3314_v8 = vrot.slane %v3220_v49, 7  ;;  %v2806_v9 = vsel %vm5696_vm14, %v2797_v52, %v6015_v54  ;;  %v6092_v37 = vld [vmem:[%s5199_s19 + $0x38] sm:$0xf] }
 0x138   : > { %v1570_v40 = vrot.slane %v1569_v17, 4  ;;  %v1368_v26 = vrot.slane %v1366_v3, 4  ;;  %v1592_v45 = vshrl.u32 %v1525_v29, 16  ;;  %v1595_v25 = vshll.u32 %v1525_v29, 16  ;;  %v1526_v49 = vld [vmem:[%s5199_s19 + $0x18] sm:$0xf] }
 0x139   : > { %3081 = vrot.lane.b32.xlu2 %v2786_v4, %s5154_s22  ;;  %v3313_v4 = vrot.slane %v3311_v58, 4  ;;  %v6044_v58 = vld [vmem:[%s5199_s19 + $0x38] sm:$0xf]  ;;  %v1589_v24 = vsel %vm6027_vm10, %v1580_v59, %v6034_v7  ;;  %v3316_v21 = vrot.slane %v3314_v8, 4  ;;  %v2114_v57 = vrot.slane %v6092_v37, 6  ;;  %v4961_v29 = vld [vmem:[%s7716_s1 + $0x48] sm:$0xff] }
 0x13a   : > { %1439 = vrot.lane.b32.xlu1 %v1364_v56, %s5154_s22  ;;  %1967 = vst.msk [vmem:[#allocation2 + $0x10] sm:$0xf] %vm277_vm3, %v1589_v24  ;;  %v1579_v36 = vsel %vm6027_vm10, %v1570_v40, %v6011_v39  ;;  %v4963_v39 = vld [vmem:[%s7716_s1 + $0x58] sm:$0xff]  ;;  %v1367_v42 = vsel %vm5360_vm6, %v1365_v51, %v1366_v3  ;;  %v1594_v60 = vrot.slane %v1592_v45, 5  ;;  %v1602_v0 = vshrl.u32 %v1526_v49, 16 }
 0x13b   : > { %1437 = vrot.lane.b32.xlu0 %v1361_v63, %s5154_s22  ;;  %v1382_v19 = vpop.permute.xlu2 %1381  ;;  %v3315_v18 = vsel %vm5737_vm1, %v3313_v4, %v3314_v8  ;;  %1966 = vst.msk [vmem:[#allocation2 + $0x4] sm:$0xf] %vm277_vm3, %v1579_v36  ;;  %4117 = vmatpush.bf16.msra.mxu1 %v4963_v39  ;;  %v6118_v46 = vld [vmem:[%s5199_s19 + $0x38] sm:$0xf]  ;;  %v6124_v4 = vld [vmem:[%s5199_s19 + $0x3c] sm:$0xf] }
 0x13c   : > { %v1112_v13 = vpop.permute.xlu1 %1111  ;;  %1488 = vst.msk [vmem:[#allocation2 + $0x18] sm:$0xf] %vm1485_vm4, %v1382_v19  ;;  %v6067_v19 = vld [vmem:[%s5199_s19 + $0x34] sm:$0xf]  ;;  %5089 = vmatpush.bf16.msrb.mxu3 %v4963_v39  ;;  %v1590_v8 = vrot.slane %v6034_v7, 4  ;;  %v1604_v3 = vrot.slane %v1602_v0, 5 }
 0x13d   : > { %1189 = vst.msk [vmem:[#allocation2 + $0x174] sm:$0xf] %vm1157_vm8, %v1112_v13  ;;  %v1110_v14 = vpop.permute.xlu0 %1109  ;;  %v6049_v13 = vld [vmem:[%s5199_s19 + $0x34] sm:$0xf]  ;;  %4881 = vmatmul.msk.bf16.gmra.mxu2 %vm3959_vm2, %v4637_v6  ;;  %v2111_v43 = vrot.slane %v6067_v19, 6  ;;  %v1605_v6 = vshll.u32 %v1526_v49, 16 }
 0x13e   : > { %1188 = vst.msk [vmem:[#allocation2 + $0x168] sm:$0xf] %vm1157_vm8, %v1110_v14  ;;  %v6056_v14 = vld [vmem:[%s5199_s19 + $0x90] sm:$0xf]  ;;  %v1300_v32 = vrot.slane %v6049_v13, 5  ;;  %v1303_v24 = vrot.slane %v6118_v46, 5 }
 0x13f   : > { %3441 = vst.msk [vmem:[#allocation2 + $0x68] sm:$0xf] %vm277_vm3, %v3315_v18  ;;  %v1369_v27 = vrot.slane %v6056_v14, 5  ;;  %v6169_v45 = vld [vmem:[%s5199_s19 + $0x40] sm:$0xf] }
 0x140   : > { %v1301_v20 = vsel %vm5360_vm6, %v1299_v23, %v1300_v32 }
 0x141   : > { %2204 = vrot.lane.b32.xlu2 %v2106_v31, %s5152_s20  ;;  %v2670_v31 = vld [vmem:[%s5199_s19 + $0x3c] sm:$0xf]  ;;  %v1370_v52 = vsel %vm5360_vm6, %v1368_v26, %v1369_v27 }
 0x142   : > { %2531 = vrot.lane.b32.xlu1 %v2433_v22, %s5153_s21  ;;  %v3317_v22 = vrot.slane %v6044_v58, 7  ;;  %v2809_v55 = vshrl.u32 %v2670_v31, 16  ;;  %v2812_v59 = vshll.u32 %v2670_v31, 16  ;;  %v2671_v58 = vld [vmem:[%s5199_s19 + $0x40] sm:$0xf] }
 0x143   : > { %2206 = vrot.lane.b32.xlu0 %v2109_v34, %s5152_s20  ;;  %v1388_v5 = vpop.permute.xlu2 %1387  ;;  %v2819_v0 = vshrl.u32 %v2671_v58, 16 }
 0x144   : > { %v1118_v56 = vpop.permute.xlu1 %1117  ;;  %1491 = vst.msk [vmem:[#allocation2 + $0x3c] sm:$0xf] %vm1485_vm4, %v1388_v5  ;;  %v3318_v41 = vsel %vm5737_vm1, %v3316_v21, %v3317_v22  ;;  %v4962_v5 = vld [vmem:[%s7716_s1 + $0x50] sm:$0xff]  ;;  %v2811_v47 = vrot.slane %v2809_v55, 6  ;;  %v2814_v17 = vrot.slane %v2812_v59, 7  ;;  %v3319_v31 = vrot.slane %v3317_v22, 4 }
 0x145   : > { %1192 = vst.msk [vmem:[#allocation2 + $0x198] sm:$0xf] %vm1157_vm8, %v1118_v56  ;;  %v1116_v61 = vpop.permute.xlu0 %1115  ;;  %v2113_v56 = vrot.slane %v2111_v43, 4  ;;  %4118 = vmatpush.bf16.msra.mxu1 %v4962_v5  ;;  %5090 = vmatpush.bf16.msrb.mxu3 %v4962_v5 }
 0x146   : > { %1191 = vst.msk [vmem:[#allocation2 + $0x18c] sm:$0xf] %vm1157_vm8, %v1116_v61  ;;  %v1597_v61 = vrot.slane %v1595_v25, 6  ;;  %v4648_v21 = vld [vmem:[#allocation2 + $0x68] sm:$0xf]  ;;  %v3323_v25 = vrot.slane %v6169_v45, 7  ;;  %v6177_v39 = vor.u32 %v2814_v17, %v2811_v47 }
 0x147   : > { %3442 = vst.msk [vmem:[#allocation2 + $0x74] sm:$0xf] %vm277_vm3, %v3318_v41  ;;  %v2115_v40 = vsel %vm5649_vm11, %v2113_v56, %v2114_v57  ;;  %v2441_v56 = vrot.slane %v6141_v28, 6 }
 0x148   : > { %v1598_v13 = vor.u32 %v1597_v61, %v1594_v60  ;;  %v2437_v61 = vrot.slane %v2435_v62, 4  ;;  %v1528_v62 = vld [vmem:[%s5199_s19 + $0x20] sm:$0xf] }
 0x149   : > { %2533 = vrot.lane.b32.xlu2 %v2436_v16, %s5153_s21  ;;  %v1607_v16 = vrot.slane %v1605_v6, 6  ;;  %4119 = vmatpush.bf16.msra.mxu1 %v4961_v29  ;;  %v1527_v6 = vld [vmem:[%s5199_s19 + $0x1c] sm:$0xf] }
 0x14a   : > { %3085 = vrot.lane.b32.xlu1 %v2806_v9, %s5154_s22  ;;  %v1600_v23 = vrot.slane %v1598_v13, 4  ;;  %5091 = vmatpush.bf16.msrb.mxu3 %v4961_v29 }
 0x14b   : > { %3083 = vrot.lane.b32.xlu0 %v2796_v12, %s5154_s22  ;;  %v1394_v38 = vpop.permute.xlu2 %1393  ;;  %v1302_v12 = vrot.slane %v1300_v32, 4  ;;  %v1599_v32 = vsel %vm6027_vm10, %v1590_v8, %v1598_v13  ;;  %v6145_v26 = vor.u32 %v1607_v16, %v1604_v3  ;;  %v1612_v3 = vshrl.u32 %v1527_v6, 16 }
 0x14c   : > { %v1380_v34 = vpop.permute.xlu1 %1379  ;;  %1494 = vst.msk [vmem:[#allocation2 + $0x60] sm:$0xf] %vm1485_vm4, %v1394_v38  ;;  %v6162_v38 = vld [vmem:[%s5199_s19 + $0x94] sm:$0xf]  ;;  %v1615_v16 = vshll.u32 %v1527_v6, 16 }
 0x14d   : > { %1487 = vst.msk [vmem:[#allocation2 + $0xc] sm:$0xf] %vm1485_vm4, %v1380_v34  ;;  %v1378_v30 = vpop.permute.xlu0 %1377  ;;  %v2438_v34 = vrot.slane %v6124_v4, 6  ;;  %v1304_v36 = vsel %vm5360_vm6, %v1302_v12, %v1303_v24  ;;  %v1609_v19 = vsel %vm6027_vm10, %v1600_v23, %v6145_v26  ;;  %v2821_v12 = vrot.slane %v2819_v0, 6  ;;  %v3224_v23 = vld [vmem:[%s5199_s19 + $0x44] sm:$0xf] }
 0x14e   : > { %1486 = vst.msk [vmem:[#allocation2] sm:$0xf] %vm1485_vm4, %v1378_v30  ;;  %v2112_v30 = vsel %vm5649_vm11, %v2110_v1, %v2111_v43  ;;  %v4912_v51 = vld [vmem:[#allocation2 + $0x70] sm:$0xf0]  ;;  %v3222_v43 = vld [vmem:[%s5199_s19 + $0x3c] sm:$0xf] }
 0x14f   : > { %1968 = vst.msk [vmem:[#allocation2 + $0x1c] sm:$0xf] %vm277_vm3, %v1599_v32  ;;  %v4649_v41 = vor.u32 %v4912_v51, %v4648_v21  ;;  %v3320_v22 = vrot.slane %v3222_v43, 7  ;;  %v2440_v49 = vrot.slane %v2438_v34, 4  ;;  %v2822_v1 = vshll.u32 %v2671_v58, 16 }
 0x150   : > { %1969 = vst.msk [vmem:[#allocation2 + $0x28] sm:$0xf] %vm277_vm3, %v1609_v19  ;;  %v2439_v47 = vsel %vm5649_vm11, %v2437_v61, %v2438_v34  ;;  %v1625_v21 = vshll.u32 %v1528_v62, 16  ;;  %v1617_v34 = vrot.slane %v1615_v16, 6  ;;  %v2817_v51 = vrot.slane %v6177_v39, 4 }
 0x151   : > { %1441 = vrot.lane.b32.xlu2 %v1367_v42, %s5154_s22  ;;  %4882 = vmatmul.msk.bf16.gmra.mxu2 %vm3959_vm2, %v4649_v41  ;;  %v1372_v42 = vrot.slane %v6162_v38, 5  ;;  %v3322_v59 = vrot.slane %v3320_v22, 4  ;;  %v2824_v13 = vrot.slane %v2822_v1, 7  ;;  %v3326_v58 = vrot.slane %v3224_v23, 7  ;;  %v2672_v61 = vld [vmem:[%s5199_s19 + $0x44] sm:$0xf] }
 0x152   : > { %1397 = vrot.lane.b32.xlu1 %v1301_v20, %s5154_s22  ;;  %v2807_v20 = vrot.slane %v6015_v54, 4  ;;  %v3321_v54 = vsel %vm5737_vm1, %v3319_v31, %v3320_v22  ;;  %v6253_v1 = vld [vmem:[%s5199_s19 + $0x48] sm:$0xf] }
 0x153   : > { %1443 = vrot.lane.b32.xlu0 %v1370_v52, %s5154_s22  ;;  %v2191_v18 = vpop.permute.xlu2 %2190  ;;  %v4960_v52 = vld [vmem:[%s7716_s1 + $0x40] sm:$0xff]  ;;  %v3324_v5 = vsel %vm5737_vm1, %v3322_v59, %v3323_v25  ;;  %3443 = vst.msk [vmem:[#allocation2 + $0x80] sm:$0xf] %vm277_vm3, %v3321_v54  ;;  %v6224_v31 = vor.u32 %v2824_v13, %v2821_v12  ;;  %v3328_v6 = vrot.slane %v3326_v58, 4  ;;  %v2829_v12 = vshrl.u32 %v2672_v61, 16 }
 0x154   : > { %v1386_v9 = vpop.permute.xlu1 %1385  ;;  %v4899_v11 = vld [vmem:[#allocation2 + $0x8] sm:$0xf0]  ;;  %2297 = vst.msk [vmem:[#allocation2 + $0x10] sm:$0xf] %vm826_vm7, %v2191_v18  ;;  %4120 = vmatpush.bf16.msra.mxu1 %v4960_v52  ;;  %5092 = vmatpush.bf16.msrb.mxu3 %v4960_v52  ;;  %v2816_v8 = vsel %vm5696_vm14, %v2807_v20, %v6177_v39  ;;  %v1614_v18 = vrot.slane %v1612_v3, 5  ;;  %v2832_v13 = vshll.u32 %v2672_v61, 16 }
 0x155   : > { %1490 = vst.msk [vmem:[#allocation2 + $0x30] sm:$0xf] %vm1485_vm4, %v1386_v9  ;;  %v1384_v2 = vpop.permute.xlu0 %1383  ;;  %v4592_v15 = vld [vmem:[#allocation2] sm:$0xf]  ;;  %v2442_v9 = vsel %vm5649_vm11, %v2440_v49, %v2441_v56  ;;  %v6235_v49 = vld [vmem:[%s5199_s19 + $0x3c] sm:$0xf] }
 0x156   : > { %1489 = vst.msk [vmem:[#allocation2 + $0x24] sm:$0xf] %vm1485_vm4, %v1384_v2  ;;  %v4593_v7 = vor.u32 %v4899_v11, %v4592_v15  ;;  %v1374_v11 = vrot.slane %v1372_v42, 4  ;;  %v1375_v2 = vrot.slane %v1230_v33, 5  ;;  %v1371_v15 = vrot.slane %v1369_v27, 4 }
 0x157   : > { %3444 = vst.msk [vmem:[#allocation2 + $0x8c] sm:$0xf] %vm277_vm3, %v3324_v5  ;;  %v6221_v27 = vld [vmem:[%s5199_s19 + $0x3c] sm:$0xf]  ;;  %v1618_v43 = vor.u32 %v1617_v34, %v1614_v18  ;;  %v3325_v5 = vrot.slane %v3323_v25, 4  ;;  %v2117_v33 = vrot.slane %v6235_v49, 6 }
 0x158   : > { %4022 = vmatmul.bf16.vlgmr.msra.gmra.mxu0 %v4593_v7  ;;  %v1622_v7 = vshrl.u32 %v1528_v62, 16  ;;  %v1373_v22 = vsel %vm5360_vm6, %v1371_v15, %v1372_v42  ;;  %v1306_v52 = vrot.slane %v6221_v27, 5  ;;  %v2826_v42 = vsel %vm5696_vm14, %v2817_v51, %v6224_v31  ;;  %v2345_v25 = vld [vmem:[%s5199_s19 + $0x44] sm:$0xf]  ;;  %v3226_v51 = vld [vmem:[%s5199_s19 + $0x4c] sm:$0xf] }
 0x159   : > { %1399 = vrot.lane.b32.xlu2 %v1304_v36, %s5154_s22  ;;  %v1627_v36 = vrot.slane %v1625_v21, 6  ;;  %v1620_v54 = vrot.slane %v1618_v43, 4  ;;  %v3329_v62 = vrot.slane %v6253_v1, 7  ;;  %v3327_v3 = vsel %vm5737_vm1, %v3325_v5, %v3326_v58  ;;  %v6290_v21 = vld [vmem:[%s5199_s19 + $0x78] sm:$0xf] }
 0x15a   : > { %2210 = vrot.lane.b32.xlu1 %v2115_v40, %s5152_s20  ;;  %v4604_v40 = vld [vmem:[#allocation2 + $0x18] sm:$0xf]  ;;  %v1624_v29 = vrot.slane %v1622_v7, 5  ;;  %v4660_v19 = vld [vmem:[#allocation2 + $0x80] sm:$0xf]  ;;  %v2443_v27 = vrot.slane %v2441_v56, 4 }
 0x15b   : > { %2208 = vrot.lane.b32.xlu0 %v2112_v30, %s5152_s20  ;;  %v6192_v4 = vpop.permute.xlu2 %3067  ;;  %v1610_v30 = vrot.slane %v6145_v26, 4  ;;  %v1376_v26 = vsel %vm5360_vm6, %v1374_v11, %v1375_v2  ;;  %v1308_v11 = vrot.slane %v1306_v52, 4  ;;  %v6275_v2 = vld [vmem:[%s5199_s19 + $0x48] sm:$0xf]  ;;  %v3330_v16 = vsel %vm5737_vm1, %v3328_v6, %v3329_v62  ;;  %v4905_v7 = vld [vmem:[#allocation2 + $0x38] sm:$0xf0] }
 0x15c   : > { %v1392_v55 = vpop.permute.xlu1 %1391  ;;  %v6232_v39 = vor.u32 %v1627_v36, %v1624_v29  ;;  %3445 = vst.msk [vmem:[#allocation2 + $0x98] sm:$0xf] %vm277_vm3, %v3327_v3  ;;  %v6298_v29 = vld [vmem:[%s5199_s19 + $0x40] sm:$0xf]  ;;  %v1529_v58 = vld [vmem:[%s5199_s19 + $0x24] sm:$0xf] }
 0x15d   : > { %1493 = vst.msk [vmem:[#allocation2 + $0x54] sm:$0xf] %vm1485_vm4, %v1392_v55  ;;  %v1390_v60 = vpop.permute.xlu0 %1389  ;;  %v4902_v17 = vld [vmem:[#allocation2 + $0x20] sm:$0xf0]  ;;  %v1619_v59 = vsel %vm6027_vm10, %v1610_v30, %v1618_v43  ;;  %v2119_v28 = vrot.slane %v2117_v33, 4  ;;  %v2120_v56 = vrot.slane %v6298_v29, 6 }
 0x15e   : > { %1492 = vst.msk [vmem:[#allocation2 + $0x48] sm:$0xf] %vm1485_vm4, %v1390_v60  ;;  %v4605_v38 = vor.u32 %v4902_v17, %v4604_v40  ;;  %v4915_v20 = vld [vmem:[#allocation2 + $0x88] sm:$0xf0]  ;;  %v6241_v60 = vld [vmem:[%s5199_s19 + $0x40] sm:$0xf]  ;;  %v1629_v0 = vsel %vm6027_vm10, %v1620_v54, %v6232_v39 }
 0x15f   : > { %v4661_v55 = vor.u32 %v4915_v20, %v4660_v19  ;;  %1970 = vst.msk [vmem:[#allocation2 + $0x34] sm:$0xf] %vm277_vm3, %v1619_v59  ;;  %v1309_v45 = vrot.slane %v6241_v60, 5  ;;  %v2444_v17 = vrot.slane %v2345_v25, 6  ;;  %v2834_v40 = vrot.slane %v2832_v13, 7 }
 0x160   : > { %1971 = vst.msk [vmem:[#allocation2 + $0x40] sm:$0xf] %vm277_vm3, %v1629_v0  ;;  %v7722_v19 = vrot.slane %v6290_v21, 6  ;;  %v3331_v54 = vrot.slane %v3329_v62, 4  ;;  %v3332_v59 = vrot.slane %v3226_v51, 7  ;;  %v2827_v51 = vrot.slane %v6224_v31, 4 }
 0x161   : > { %2535 = vrot.lane.b32.xlu2 %v2439_v47, %s5153_s21  ;;  %4883 = vmatmul.msk.bf16.gmra.mxu2 %vm3959_vm2, %v4661_v55  ;;  %v2673_v47 = vld [vmem:[%s5199_s19 + $0x48] sm:$0xf]  ;;  %v1310_v18 = vsel %vm5360_vm6, %v1308_v11, %v1309_v45  ;;  %3446 = vst.msk [vmem:[#allocation2 + $0xa4] sm:$0xf] %vm277_vm3, %v3330_v16  ;;  %v2446_v30 = vrot.slane %v2444_v17, 4  ;;  %v1635_v55 = vshll.u32 %v1529_v58, 16  ;;  %v2445_v1 = vsel %vm5649_vm11, %v2443_v27, %v2444_v17 }
 0x162   : > { %3087 = vrot.lane.b32.xlu1 %v2816_v8, %s5154_s22  ;;  %v2116_v8 = vrot.slane %v2114_v57, 4  ;;  %v1305_v57 = vrot.slane %v1303_v24, 4  ;;  %v4616_v24 = vld [vmem:[#allocation2 + $0x30] sm:$0xf]  ;;  %v2839_v23 = vshrl.u32 %v2673_v47, 16  ;;  %v2842_v34 = vshll.u32 %v2673_v47, 16 }
 0x163   : > { %2537 = vrot.lane.b32.xlu0 %v2442_v9, %s5153_s21  ;;  %v2195_v41 = vpop.permute.xlu2 %2194  ;;  %v6322_v61 = vld [vmem:[%s5199_s19 + $0x84] sm:$0xf]  ;;  %v4672_v0 = vld [vmem:[#allocation2 + $0x98] sm:$0xf]  ;;  %v2164_v5 = vrot.slane %v7722_v19, 4  ;;  %v1630_v17 = vrot.slane %v6232_v39, 4 }
 0x164   : > { %v2189_v32 = vpop.permute.xlu1 %2188  ;;  %2299 = vst.msk [vmem:[#allocation2 + $0x28] sm:$0xf] %vm826_vm7, %v2195_v41  ;;  %v2118_v46 = vsel %vm5649_vm11, %v2116_v8, %v2117_v33  ;;  %v6307_v41 = vld [vmem:[%s5199_s19 + $0x7c] sm:$0xf]  ;;  %v2841_v43 = vrot.slane %v2839_v23, 6  ;;  %v2844_v20 = vrot.slane %v2842_v34, 7  ;;  %v3333_v8 = vsel %vm5737_vm1, %v3331_v54, %v3332_v59 }
 0x165   : > { %2296 = vst.msk [vmem:[#allocation2 + $0x4] sm:$0xf] %vm826_vm7, %v2189_v32  ;;  %v1396_v14 = vpop.permute.xlu0 %1395  ;;  %v2831_v32 = vrot.slane %v2829_v12, 6  ;;  %v2165_v33 = vrot.slane %v6307_v41, 6  ;;  %v1530_v25 = vld [vmem:[%s5199_s19 + $0x28] sm:$0xf] }
 0x166   : > { %1495 = vst.msk [vmem:[#allocation2 + $0x6c] sm:$0xf] %vm1485_vm4, %v1396_v14  ;;  %v2447_v14 = vrot.slane %v6275_v2, 6  ;;  %v6338_v47 = vld [vmem:[%s5199_s19 + $0x50] sm:$0xf]  ;;  %v1637_v12 = vrot.slane %v1635_v55, 6  ;;  %v6344_v16 = vor.u32 %v2844_v20, %v2841_v43 }
 0x167   : > { %v1642_v13 = vshrl.u32 %v1530_v25, 16  ;;  %3447 = vst.msk [vmem:[#allocation2 + $0xb0] sm:$0xf] %vm277_vm3, %v3333_v8  ;;  %v2687_v34 = vld [vmem:[%s5199_s19 + $0x80] sm:$0xf]  ;;  %v2166_v31 = vsel %vm5649_vm11, %v2164_v5, %v2165_v33 }
 0x168   : > { %4027 = vmatmul.bf16.gmra.mxu0 %v4605_v38  ;;  %v4617_v38 = vor.u32 %v4905_v7, %v4616_v24  ;;  %v4918_v6 = vld [vmem:[#allocation2 + $0xa0] sm:$0xf0]  ;;  %v1645_v7 = vshll.u32 %v1530_v25, 16 }
 0x169   : > { %3089 = vrot.lane.b32.xlu2 %v2826_v42, %s5154_s22  ;;  %v2448_v42 = vsel %vm5649_vm11, %v2446_v30, %v2447_v14  ;;  %v4673_v11 = vor.u32 %v4918_v6, %v4672_v0  ;;  %v2688_v24 = vld [vmem:[%s5199_s19 + $0x84] sm:$0xf]  ;;  %v4628_v0 = vld [vmem:[#allocation2 + $0x48] sm:$0xf] }
 0x16a   : > { %1447 = vrot.lane.b32.xlu1 %v1376_v26, %s5154_s22 }
 0x16b   : > { %1445 = vrot.lane.b32.xlu0 %v1373_v22, %s5154_s22  ;;  %v6277_v15 = vpop.permute.xlu2 %3071  ;;  %v6312_v22 = vor.u32 %v2834_v40, %v2831_v32  ;;  %v3334_v32 = vrot.slane %v3332_v59, 4  ;;  %v3335_v40 = vrot.slane %v6338_v47, 7 }
 0x16c   : > { %v2518_v9 = vpop.permute.xlu1 %2517 }
 0x16d   : > { %2624 = vst.msk [vmem:[#allocation2 + $0x10] sm:$0xf] %vm1157_vm8, %v2518_v9  ;;  %v2516_v37 = vpop.permute.xlu0 %2515  ;;  %v2837_v62 = vrot.slane %v6312_v22, 4  ;;  %v2121_v9 = vsel %vm5649_vm11, %v2119_v28, %v2120_v56  ;;  %v3336_v20 = vsel %vm5737_vm1, %v3334_v32, %v3335_v40  ;;  %v2689_v28 = vld [vmem:[%s5199_s19 + $0x88] sm:$0xf]  ;;  %v2836_v6 = vsel %vm5696_vm14, %v2827_v51, %v6312_v22 }
 0x16e   : > { %2623 = vst.msk [vmem:[#allocation2 + $0x4] sm:$0xf] %vm1157_vm8, %v2516_v37  ;;  %v2492_v37 = vrot.slane %v6322_v61, 6  ;;  %v3002_v47 = vshll.u32 %v2689_v28, 16  ;;  %v3337_v32 = vrot.slane %v3335_v40, 4 }
 0x16f   : > { %3175 = vst.msk [vmem:[#allocation2 + $0x4] sm:$0xf] %vm1485_vm4, %v6192_v4  ;;  %v1307_v4 = vsel %vm5360_vm6, %v1305_v57, %v1306_v52  ;;  %v1632_v52 = vshrl.u32 %v1529_v58, 16  ;;  %v2846_v54 = vsel %vm5696_vm14, %v2837_v62, %v6344_v16 }
 0x170   : > { %3448 = vst.msk [vmem:[#allocation2 + $0xbc] sm:$0xf] %vm277_vm3, %v3336_v20  ;;  %v2494_v62 = vrot.slane %v2492_v37, 4  ;;  %v1209_v20 = vld [vmem:[%s5199_s19 + $0x44] sm:$0xf] }
 0x171   : > { %1401 = vrot.lane.b32.xlu2 %v1307_v4, %s5154_s22  ;;  %v1634_v57 = vrot.slane %v1632_v52, 5  ;;  %4884 = vmatmul.msk.bf16.gmra.mxu2 %vm3959_vm2, %v4673_v11  ;;  %v1644_v4 = vrot.slane %v1642_v13, 5  ;;  %v2992_v52 = vshll.u32 %v2688_v24, 16  ;;  %v6393_v11 = vld [vmem:[%s5199_s19 + $0x80] sm:$0xf] }
 0x172   : > { %2212 = vrot.lane.b32.xlu1 %v2118_v46, %s5152_s20  ;;  %v6347_v46 = vld [vmem:[%s5199_s19 + $0x80] sm:$0xf] }
 0x173   : > { %1403 = vrot.lane.b32.xlu0 %v1310_v18, %s5154_s22  ;;  %v2199_v49 = vpop.permute.xlu2 %2198  ;;  %v1638_v23 = vor.u32 %v1637_v12, %v1634_v57  ;;  %v7719_v59 = vrot.slane %v6347_v46, 6  ;;  %v2994_v25 = vrot.slane %v2992_v52, 7  ;;  %v3228_v57 = vld [vmem:[%s5199_s19 + $0x54] sm:$0xf] }
 0x174   : > { %v2193_v36 = vpop.permute.xlu1 %2192  ;;  %2301 = vst.msk [vmem:[#allocation2 + $0x40] sm:$0xf] %vm826_vm7, %v2199_v49  ;;  %v2989_v49 = vshrl.u32 %v2688_v24, 16 }
 0x175   : > { %2298 = vst.msk [vmem:[#allocation2 + $0x1c] sm:$0xf] %vm826_vm7, %v2193_v36  ;;  %v3070_v26 = vpop.permute.xlu0 %3069  ;;  %v1647_v36 = vrot.slane %v1645_v7, 6  ;;  %v1640_v58 = vrot.slane %v1638_v23, 4  ;;  %v2491_v13 = vrot.slane %v7719_v59, 4 }
 0x176   : > { %3176 = vst.msk [vmem:[#allocation2 + $0x10] sm:$0xf] %vm1485_vm4, %v3070_v26  ;;  %v4898_v3 = vld [vmem:[#allocation2 + $0x4] sm:$0xf]  ;;  %v1639_v26 = vsel %vm6027_vm10, %v1630_v17, %v1638_v23  ;;  %v2991_v22 = vrot.slane %v2989_v49, 6  ;;  %v3338_v17 = vrot.slane %v3228_v57, 7 }
 0x177   : > { %v6374_v55 = vor.u32 %v1647_v36, %v1644_v4  ;;  %1972 = vst.msk [vmem:[#allocation2 + $0x4c] sm:$0xf] %vm277_vm3, %v1639_v26  ;;  %v6402_v7 = vld [vmem:[%s5199_s19 + $0x58] sm:$0xf]  ;;  %v2167_v23 = vrot.slane %v2165_v33, 4  ;;  %v2168_v4 = vrot.slane %v6393_v11, 6  ;;  %v2493_v26 = vsel %vm5649_vm11, %v2491_v13, %v2492_v37 }
 0x178   : > { %4032 = vmatmul.bf16.gmra.mxu0 %v4617_v38  ;;  %v6359_v38 = vld [vmem:[%s5199_s19 + $0x88] sm:$0xf]  ;;  %v4684_v36 = vld [vmem:[#allocation2 + $0xb0] sm:$0xf]  ;;  %v2995_v41 = vor.u32 %v2994_v25, %v2991_v22  ;;  %v3004_v33 = vrot.slane %v3002_v47, 7  ;;  %v3339_v40 = vsel %vm5737_vm1, %v3337_v32, %v3338_v17  ;;  %v1311_v37 = vrot.slane %v1309_v45, 4 }
 0x179   : > { %2214 = vrot.lane.b32.xlu2 %v2121_v9, %s5152_s20  ;;  %v2495_v5 = vrot.slane %v6359_v38, 6  ;;  %v1649_v8 = vsel %vm6027_vm10, %v1640_v58, %v6374_v55  ;;  %v2999_v9 = vshrl.u32 %v2689_v28, 16  ;;  %v3341_v58 = vrot.slane %v6402_v7, 7  ;;  %v4921_v28 = vld [vmem:[#allocation2 + $0xb8] sm:$0xf0] }
 0x17a   : > { %2541 = vrot.lane.b32.xlu1 %v2448_v42, %s5153_s21  ;;  %v2982_v42 = vshll.u32 %v2687_v34, 16  ;;  %1973 = vst.msk [vmem:[#allocation2 + $0x58] sm:$0xf] %vm277_vm3, %v1649_v8  ;;  %v2169_v52 = vsel %vm5649_vm11, %v2167_v23, %v2168_v4  ;;  %v2674_v45 = vld [vmem:[%s5199_s19 + $0x4c] sm:$0xf]  ;;  %v1650_v22 = vrot.slane %v6374_v55, 4 }
 0x17b   : > { %2539 = vrot.lane.b32.xlu0 %v2445_v1, %s5153_s21  ;;  %v6361_v43 = vpop.permute.xlu2 %3075  ;;  %v4908_v1 = vld [vmem:[#allocation2 + $0x50] sm:$0xf0]  ;;  %3449 = vst.msk [vmem:[#allocation2 + $0xc8] sm:$0xf] %vm277_vm3, %v3339_v40  ;;  %v2849_v32 = vshrl.u32 %v2674_v45, 16 }
 0x17c   : > { %v2522_v18 = vpop.permute.xlu1 %2521  ;;  %v2984_v24 = vrot.slane %v2982_v42, 7  ;;  %v3230_v40 = vld [vmem:[%s5199_s19 + $0x5c] sm:$0xf] }
 0x17d   : > { %2626 = vst.msk [vmem:[#allocation2 + $0x28] sm:$0xf] %vm1157_vm8, %v2522_v18  ;;  %v2520_v30 = vpop.permute.xlu0 %2519  ;;  %v4594_v27 = vld [vmem:[#allocation2 + $0xc] sm:$0xf0] }
 0x17e   : > { %2625 = vst.msk [vmem:[#allocation2 + $0x1c] sm:$0xf] %vm1157_vm8, %v2520_v30  ;;  %v4597_v39 = vor.u32 %v4898_v3, %v4594_v27  ;;  %v2496_v30 = vsel %vm5649_vm11, %v2494_v62, %v2495_v5  ;;  %v3001_v27 = vrot.slane %v2999_v9, 6 }
 0x17f   : > { %3177 = vst.msk [vmem:[#allocation2 + $0x1c] sm:$0xf] %vm1485_vm4, %v6277_v15  ;;  %v2979_v15 = vshrl.u32 %v2687_v34, 16  ;;  %v4629_v34 = vor.u32 %v4908_v1, %v4628_v0  ;;  %v1312_v1 = vrot.slane %v1209_v20, 5  ;;  %v2122_v20 = vrot.slane %v2120_v56, 4 }
 0x180   : > { %4121 = vmatmul.bf16.vlgmr.msra.gmra.mxu1 %v4597_v39  ;;  %v3340_v39 = vrot.slane %v3338_v17, 4  ;;  %v6442_v8 = vor.u32 %v3004_v33, %v3001_v27  ;;  %v4911_v27 = vld [vmem:[#allocation2 + $0x68] sm:$0xf0]  ;;  %v6475_v33 = vld [vmem:[%s5199_s19 + $0x48] sm:$0xf] }
 0x181   : > { %3091 = vrot.lane.b32.xlu2 %v2836_v6, %s5154_s22  ;;  %v2981_v3 = vrot.slane %v2979_v15, 6  ;;  %v1531_v15 = vld [vmem:[%s5199_s19 + $0x2c] sm:$0xf]  ;;  %v2997_v6 = vrot.slane %v2995_v41, 4  ;;  %v1313_v55 = vsel %vm5360_vm6, %v1311_v37, %v1312_v1  ;;  %v1314_v37 = vrot.slane %v1312_v1, 4 }
 0x182   : > { %2244 = vrot.lane.b32.xlu1 %v2166_v31, %s5152_s20  ;;  %v6423_v31 = vld [vmem:[%s5199_s19 + $0x44] sm:$0xf]  ;;  %v3342_v61 = vsel %vm5737_vm1, %v3340_v39, %v3341_v58  ;;  %v1652_v42 = vshrl.u32 %v1531_v15, 16  ;;  %v1655_v0 = vshll.u32 %v1531_v15, 16  ;;  %v2852_v39 = vshll.u32 %v2674_v45, 16 }
 0x183   : > { %3093 = vrot.lane.b32.xlu0 %v2846_v54, %s5154_s22  ;;  %v1436_v51 = vpop.permute.xlu2 %1435  ;;  %v6425_v49 = vor.u32 %v2984_v24, %v2981_v3  ;;  %v4685_v54 = vor.u32 %v4921_v28, %v4684_v36  ;;  %3450 = vst.msk [vmem:[#allocation2 + $0xd4] sm:$0xf] %vm277_vm3, %v3342_v61  ;;  %v2123_v62 = vrot.slane %v6423_v31, 6  ;;  %v3006_v23 = vsel %vm5696_vm14, %v2997_v6, %v6442_v8  ;;  %v6482_v28 = vld [vmem:[%s5199_s19 + $0x4c] sm:$0xf] }
 0x184   : > { %v2197_v12 = vpop.permute.xlu1 %2196  ;;  %1515 = vst.msk [vmem:[#allocation2 + $0x15c] sm:$0xf] %vm1485_vm4, %v1436_v51  ;;  %v1654_v25 = vrot.slane %v1652_v42, 5  ;;  %v1657_v47 = vrot.slane %v1655_v0, 6  ;;  %v2851_v61 = vrot.slane %v2849_v32, 6  ;;  %v1315_v29 = vrot.slane %v6475_v33, 5 }
 0x185   : > { %2300 = vst.msk [vmem:[#allocation2 + $0x34] sm:$0xf] %vm826_vm7, %v2197_v12  ;;  %v3074_v18 = vpop.permute.xlu0 %3073  ;;  %4885 = vmatmul.msk.bf16.gmra.mxu2 %vm3959_vm2, %v4685_v54  ;;  %v2987_v60 = vrot.slane %v6425_v49, 4  ;;  %v3344_v54 = vrot.slane %v3230_v40, 7  ;;  %v4696_v42 = vld [vmem:[#allocation2 + $0xc8] sm:$0xf] }
 0x186   : > { %3178 = vst.msk [vmem:[#allocation2 + $0x28] sm:$0xf] %vm1485_vm4, %v3074_v18  ;;  %v4901_v12 = vld [vmem:[#allocation2 + $0x1c] sm:$0xf]  ;;  %v1658_v17 = vor.u32 %v1657_v47, %v1654_v25  ;;  %v6459_v18 = vld [vmem:[%s5199_s19 + $0x48] sm:$0xf]  ;;  %v1316_v32 = vsel %vm5360_vm6, %v1314_v37, %v1315_v29 }
 0x187   : > { %v2996_v51 = vsel %vm5696_vm14, %v2987_v60, %v2995_v41  ;;  %v2126_v36 = vrot.slane %v6459_v18, 6  ;;  %v2450_v25 = vrot.slane %v6482_v28, 6  ;;  %v2449_v40 = vrot.slane %v2447_v14, 4  ;;  %v1536_v18 = vld [vmem:[%s5199_s19 + $0x40] sm:$0xf] }
 0x188   : > { %4037 = vmatmul.bf16.gmra.mxu0 %v4629_v34  ;;  %v1659_v34 = vsel %vm6027_vm10, %v1650_v22, %v1658_v17  ;;  %v1660_v56 = vrot.slane %v1658_v17, 4  ;;  %v2854_v22 = vrot.slane %v2852_v39, 7  ;;  %v3343_v17 = vrot.slane %v3341_v58, 4  ;;  %v6528_v39 = vld [vmem:[%s5199_s19 + $0x84] sm:$0xf] }
 0x189   : > { %2246 = vrot.lane.b32.xlu2 %v2169_v52, %s5152_s20  ;;  %1974 = vst.msk [vmem:[#allocation2 + $0x64] sm:$0xf] %vm277_vm3, %v1659_v34 }
 0x18a   : > { %2573 = vrot.lane.b32.xlu1 %v2496_v30, %s5153_s21  ;;  %v1532_v30 = vld [vmem:[%s5199_s19 + $0x30] sm:$0xf]  ;;  %v4924_v0 = vld [vmem:[#allocation2 + $0xd0] sm:$0xf0]  ;;  %v3345_v7 = vsel %vm5737_vm1, %v3343_v17, %v3344_v54 }
 0x18b   : > { %2571 = vrot.lane.b32.xlu0 %v2493_v26, %s5153_s21  ;;  %v6452_v24 = vpop.permute.xlu2 %2527  ;;  %v4640_v26 = vld [vmem:[#allocation2 + $0x60] sm:$0xf]  ;;  %v1662_v52 = vshrl.u32 %v1532_v30, 16  ;;  %v1665_v41 = vshll.u32 %v1532_v30, 16  ;;  %v2675_v30 = vld [vmem:[%s5199_s19 + $0x50] sm:$0xf] }
 0x18c   : > { %v2526_v9 = vpop.permute.xlu1 %2525  ;;  %v4641_v45 = vor.u32 %v4911_v27, %v4640_v26  ;;  %v4941_v31 = vld [vmem:[#allocation2 + $0x158] sm:$0xf0]  ;;  %3451 = vst.msk [vmem:[#allocation2 + $0xe0] sm:$0xf] %vm277_vm3, %v3345_v7  ;;  %v2859_v28 = vshrl.u32 %v2675_v30, 16 }
 0x18d   : > { %2628 = vst.msk [vmem:[#allocation2 + $0x40] sm:$0xf] %vm1157_vm8, %v2526_v9  ;;  %v2524_v57 = vpop.permute.xlu0 %2523  ;;  %v4606_v13 = vld [vmem:[#allocation2 + $0x24] sm:$0xf0]  ;;  %v1664_v9 = vrot.slane %v1662_v52, 5  ;;  %v1667_v60 = vrot.slane %v1665_v41, 6 }
 0x18e   : > { %2627 = vst.msk [vmem:[#allocation2 + $0x34] sm:$0xf] %vm1157_vm8, %v2524_v57  ;;  %v4609_v3 = vor.u32 %v4901_v12, %v4606_v13  ;;  %v6496_v57 = vld [vmem:[%s5199_s19 + $0x60] sm:$0xf]  ;;  %v6499_v12 = vld [vmem:[%s5199_s19 + $0x50] sm:$0xf]  ;;  %v4697_v13 = vor.u32 %v4924_v0, %v4696_v42 }
 0x18f   : > { %3179 = vst.msk [vmem:[#allocation2 + $0x34] sm:$0xf] %vm1485_vm4, %v6361_v43  ;;  %v2125_v43 = vrot.slane %v2123_v62, 4  ;;  %v3347_v58 = vrot.slane %v6496_v57, 7  ;;  %v2453_v27 = vrot.slane %v6499_v12, 6  ;;  %v2862_v52 = vshll.u32 %v2675_v30, 16 }
 0x190   : > { %4126 = vmatmul.bf16.gmra.mxu1 %v4609_v3  ;;  %v6501_v3 = vor.u32 %v1667_v60, %v1664_v9  ;;  %v2690_v42 = vld [vmem:[%s5199_s19 + $0x8c] sm:$0xf]  ;;  %v6556_v9 = vld [vmem:[%s5199_s19 + $0x88] sm:$0xf]  ;;  %v2451_v60 = vsel %vm5649_vm11, %v2449_v40, %v2450_v25  ;;  %v1533_v7 = vld [vmem:[%s5199_s19 + $0x34] sm:$0xf] }
 0x191   : > { %3123 = vrot.lane.b32.xlu2 %v2996_v51, %s5154_s22  ;;  %v2127_v1 = vsel %vm5649_vm11, %v2125_v43, %v2126_v36  ;;  %v6525_v43 = vor.u32 %v2854_v22, %v2851_v61  ;;  %v2452_v51 = vrot.slane %v2450_v25, 4  ;;  %v2864_v22 = vrot.slane %v2862_v52, 7 }
 0x192   : > { %1405 = vrot.lane.b32.xlu1 %v1313_v55, %s5154_s22  ;;  %v3346_v55 = vrot.slane %v3344_v54, 4  ;;  %v1669_v34 = vsel %vm6027_vm10, %v1660_v56, %v6501_v3  ;;  %v1672_v40 = vshrl.u32 %v1533_v7, 16 }
 0x193   : > { %3125 = vrot.lane.b32.xlu0 %v3006_v23, %s5154_s22  ;;  %v6493_v47 = vpop.permute.xlu2 %3081  ;;  %v2124_v23 = vsel %vm5649_vm11, %v2122_v20, %v2123_v62  ;;  %v2847_v62 = vrot.slane %v6344_v16, 4  ;;  %1975 = vst.msk [vmem:[#allocation2 + $0x70] sm:$0xf] %vm277_vm3, %v1669_v34  ;;  %v2454_v56 = vsel %vm5649_vm11, %v2452_v51, %v2453_v27  ;;  %v4708_v25 = vld [vmem:[#allocation2 + $0xe0] sm:$0xf] }
 0x194   : > { %v1434_v15 = vpop.permute.xlu1 %1433  ;;  %v3348_v16 = vsel %vm5737_vm1, %v3346_v55, %v3347_v58  ;;  %v2174_v55 = vrot.slane %v6556_v9, 6 }
 0x195   : > { %1514 = vst.msk [vmem:[#allocation2 + $0x150] sm:$0xf] %vm1485_vm4, %v1434_v15  ;;  %v3078_v6 = vpop.permute.xlu0 %3077  ;;  %4886 = vmatmul.msk.bf16.gmra.mxu2 %vm3959_vm2, %v4697_v13  ;;  %v6541_v15 = vpop.f32.mrf.mxu2  ;;  %v2856_v0 = vsel %vm5696_vm14, %v2847_v62, %v6525_v43  ;;  %v3012_v13 = vshll.u32 %v2690_v42, 16 }
 0x196   : > { %3180 = vst.msk [vmem:[#allocation2 + $0x40] sm:$0xf] %vm1485_vm4, %v3078_v6  ;;  %v4904_v41 = vld [vmem:[#allocation2 + $0x34] sm:$0xf]  ;;  %v2171_v6 = vrot.slane %v6528_v39, 6 }
 0x197   : > { %3452 = vst.msk [vmem:[#allocation2 + $0xec] sm:$0xf] %vm277_vm3, %v3348_v16  ;;  %v3014_v16 = vrot.slane %v3012_v13, 7 }
 0x198   : > { %4042 = vmatmul.bf16.gmra.mxu0 %v4641_v45  ;;  %v3009_v45 = vshrl.u32 %v2690_v42, 16  ;;  %v2173_v17 = vrot.slane %v2171_v6, 4 }
 0x199   : > { %1407 = vrot.lane.b32.xlu2 %v1316_v32, %s5154_s22  ;;  %v6570_v32 = vld [vmem:[%s5199_s19 + $0x8c] sm:$0xf] }
 0x19a   : > { %2218 = vrot.lane.b32.xlu1 %v2127_v1, %s5152_s20  ;;  %v2861_v1 = vrot.slane %v2859_v28, 6  ;;  %v3011_v11 = vrot.slane %v3009_v45, 6  ;;  %v1534_v28 = vld [vmem:[%s5199_s19 + $0x38] sm:$0xf]  ;;  %v1670_v45 = vrot.slane %v6501_v3, 4 }
 0x19b   : > { %2216 = vrot.lane.b32.xlu0 %v2124_v23, %s5152_s20  ;;  %v2205_v37 = vpop.permute.xlu2 %2204  ;;  %v2170_v23 = vrot.slane %v2168_v4, 4  ;;  %v2857_v4 = vrot.slane %v6525_v43, 4  ;;  %v2175_v43 = vsel %vm5649_vm11, %v2173_v17, %v2174_v55  ;;  %v1685_v42 = vshll.u32 %v1534_v28, 16 }
 0x19c   : > { %v2203_v26 = vpop.permute.xlu1 %2202  ;;  %v4760_v20 = vld [vmem:[#allocation2 + $0x150] sm:$0xf]  ;;  %2304 = vst.msk [vmem:[#allocation2 + $0x64] sm:$0xf] %vm826_vm7, %v2205_v37  ;;  %v6579_v51 = vor.u32 %v2864_v22, %v2861_v1  ;;  %v1682_v37 = vshrl.u32 %v1534_v28, 16  ;;  %v3349_v17 = vrot.slane %v3347_v58, 4 }
 0x19d   : > { %2303 = vst.msk [vmem:[#allocation2 + $0x58] sm:$0xf] %vm826_vm7, %v2203_v26  ;;  %v2201_v2 = vpop.permute.xlu0 %2200  ;;  %v4761_v14 = vor.u32 %v4941_v31, %v4760_v20  ;;  %v4618_v54 = vld [vmem:[#allocation2 + $0x3c] sm:$0xf0]  ;;  %v6581_v39 = vpop.f32.mrf.mxu2  ;;  %v2498_v26 = vrot.slane %v6570_v32, 6  ;;  %v1687_v13 = vrot.slane %v1685_v42, 6 }
 0x19e   : > { %2302 = vst.msk [vmem:[#allocation2 + $0x4c] sm:$0xf] %vm826_vm7, %v2201_v2  ;;  %v4621_v61 = vor.u32 %v4904_v41, %v4618_v54  ;;  %v4927_v30 = vld [vmem:[#allocation2 + $0xe8] sm:$0xf0]  ;;  %v5126_v31 = vld [vmem:[%s7716_s1 + $0x80] sm:$0xff]  ;;  %v2172_v2 = vsel %vm5649_vm11, %v2170_v23, %v2171_v6  ;;  %v1674_v54 = vrot.slane %v1672_v40, 5 }
 0x19f   : > { %2629 = vst.msk [vmem:[#allocation2 + $0x4c] sm:$0xf] %vm1157_vm8, %v6452_v24  ;;  %4092 = vmatmul.bf16.vlgmr.msra.gmra.mxu3 %v4761_v14  ;;  %v5125_v24 = vld [vmem:[%s7716_s1 + $0x88] sm:$0xff]  ;;  %v4709_v52 = vor.u32 %v4927_v30, %v4708_v25  ;;  %v3007_v14 = vrot.slane %v6442_v8, 4  ;;  %v6598_v41 = vld [vmem:[%s5199_s19 + $0x90] sm:$0xf] }
 0x1a0   : > { %4131 = vmatmul.bf16.gmra.mxu1 %v4621_v61  ;;  %5093 = vmatpush.bf16.msra.mxu3 %v5125_v24  ;;  %v1675_v61 = vshll.u32 %v1533_v7, 16  ;;  %v6608_v24 = vor.u32 %v3014_v16, %v3011_v11  ;;  %v2500_v6 = vrot.slane %v2498_v26, 4  ;;  %v2691_v8 = vld [vmem:[%s5199_s19 + $0x90] sm:$0xf]  ;;  %v2501_v1 = vrot.slane %v6598_v41, 6 }
 0x1a1   : > { %2543 = vrot.lane.b32.xlu2 %v2451_v60, %s5153_s21  ;;  %v1684_v22 = vrot.slane %v1682_v37, 5  ;;  %v3019_v57 = vshrl.u32 %v2691_v8, 16  ;;  %v3022_v58 = vshll.u32 %v2691_v8, 16 }
 0x1a2   : > { %3095 = vrot.lane.b32.xlu1 %v2856_v0, %s5154_s22  ;;  %v3232_v0 = vld [vmem:[%s5199_s19 + $0x64] sm:$0xf]  ;;  %v1677_v60 = vrot.slane %v1675_v61, 6  ;;  %v3016_v38 = vsel %vm5696_vm14, %v3007_v14, %v6608_v24  ;;  %v2502_v61 = vsel %vm5649_vm11, %v2500_v6, %v2501_v1  ;;  %v3017_v33 = vrot.slane %v6608_v24, 4 }
 0x1a3   : > { %2545 = vrot.lane.b32.xlu0 %v2454_v56, %s5153_s21  ;;  %v6585_v20 = vpop.permute.xlu2 %2533  ;;  %v6605_v56 = vld [vmem:[%s5199_s19 + $0x68] sm:$0xf]  ;;  %v3350_v30 = vrot.slane %v3232_v0, 7  ;;  %v6627_v11 = vor.u32 %v1687_v13, %v1684_v22  ;;  %v3021_v0 = vrot.slane %v3019_v57, 6  ;;  %v3024_v6 = vrot.slane %v3022_v58, 7 }
 0x1a4   : > { %v3080_v34 = vpop.permute.xlu1 %3079  ;;  %5094 = vmatpush.bf16.msra.mxu3 %v5126_v31  ;;  %v1678_v25 = vor.u32 %v1677_v60, %v1674_v54  ;;  %v3353_v3 = vrot.slane %v6605_v56, 7  ;;  %v2497_v31 = vrot.slane %v2495_v5, 4  ;;  %v6636_v5 = vld [vmem:[%s5199_s19 + $0x50] sm:$0xf] }
 0x1a5   : > { %3181 = vst.msk [vmem:[#allocation2 + $0x4c] sm:$0xf] %vm1485_vm4, %v3080_v34  ;;  %v2530_v62 = vpop.permute.xlu0 %2529  ;;  %4887 = vmatmul.msk.bf16.gmra.mxu2 %vm3959_vm2, %v4709_v52  ;;  %v6619_v34 = vld [vmem:[%s5199_s19 + $0x4c] sm:$0xf]  ;;  %v3351_v54 = vsel %vm5737_vm1, %v3349_v17, %v3350_v30  ;;  %v1321_v8 = vrot.slane %v6636_v5, 5 }
 0x1a6   : > { %2630 = vst.msk [vmem:[#allocation2 + $0x58] sm:$0xf] %vm1157_vm8, %v2530_v62  ;;  %v6625_v62 = vpop.f32.mrf.mxu2  ;;  %v1680_v16 = vrot.slane %v1678_v25, 4  ;;  %v1679_v28 = vsel %vm6027_vm10, %v1670_v45, %v1678_v25  ;;  %v2499_v42 = vsel %vm5649_vm11, %v2497_v31, %v2498_v26  ;;  %v1317_v45 = vrot.slane %v1315_v29, 4  ;;  %v6681_v57 = vld [vmem:[%s5199_s19 + $0x50] sm:$0xf] }
 0x1a7   : > { %3182 = vst.msk [vmem:[#allocation2 + $0x58] sm:$0xf] %vm1485_vm4, %v6493_v47  ;;  %v2866_v47 = vsel %vm5696_vm14, %v2857_v4, %v6579_v51  ;;  %v6675_v29 = vor.u32 %v3024_v6, %v3021_v0  ;;  %v2132_v0 = vrot.slane %v6681_v57, 6 }
 0x1a8   : > { %v1689_v37 = vsel %vm6027_vm10, %v1680_v16, %v6627_v11  ;;  %1976 = vst.msk [vmem:[#allocation2 + $0x7c] sm:$0xf] %vm277_vm3, %v1679_v28 }
 0x1a9   : > { %3097 = vrot.lane.b32.xlu2 %v2866_v47, %s5154_s22  ;;  %v2676_v47 = vld [vmem:[%s5199_s19 + $0x54] sm:$0xf]  ;;  %1977 = vst.msk [vmem:[#allocation2 + $0x88] sm:$0xf] %vm277_vm3, %v1689_v37 }
 0x1aa   : > { %2250 = vrot.lane.b32.xlu1 %v2175_v43, %s5152_s20  ;;  %v3352_v43 = vrot.slane %v3350_v30, 4  ;;  %3453 = vst.msk [vmem:[#allocation2 + $0xf8] sm:$0xf] %vm277_vm3, %v3351_v54  ;;  %v2869_v26 = vshrl.u32 %v2676_v47, 16  ;;  %v2872_v22 = vshll.u32 %v2676_v47, 16  ;;  %v3355_v47 = vrot.slane %v3353_v3, 4 }
 0x1ab   : > { %2248 = vrot.lane.b32.xlu0 %v2172_v2, %s5152_s20  ;;  %v1442_v40 = vpop.permute.xlu2 %1441  ;;  %v1318_v2 = vrot.slane %v6619_v34, 5  ;;  %v6672_v30 = vld [vmem:[%s5199_s19 + $0x54] sm:$0xf]  ;;  %v3235_v54 = vld [vmem:[%s5199_s19 + $0x70] sm:$0xf] }
 0x1ac   : > { %v1440_v23 = vpop.permute.xlu1 %1439  ;;  %v4907_v32 = vld [vmem:[#allocation2 + $0x4c] sm:$0xf]  ;;  %1518 = vst.msk [vmem:[#allocation2 + $0x180] sm:$0xf] %vm1485_vm4, %v1442_v40  ;;  %v3354_v14 = vsel %vm5737_vm1, %v3352_v43, %v3353_v3  ;;  %v2871_v16 = vrot.slane %v2869_v26, 6  ;;  %v2874_v28 = vrot.slane %v2872_v22, 7 }
 0x1ad   : > { %1517 = vst.msk [vmem:[#allocation2 + $0x174] sm:$0xf] %vm1485_vm4, %v1440_v23  ;;  %v1438_v7 = vpop.permute.xlu0 %1437  ;;  %v1320_v60 = vrot.slane %v1318_v2, 4  ;;  %v6667_v23 = vld [vmem:[%s5199_s19 + $0x4c] sm:$0xf]  ;;  %v1319_v43 = vsel %vm5360_vm6, %v1317_v45, %v1318_v2  ;;  %v2455_v2 = vrot.slane %v2453_v27, 4 }
 0x1ae   : > { %1516 = vst.msk [vmem:[#allocation2 + $0x168] sm:$0xf] %vm1485_vm4, %v1438_v7  ;;  %v4630_v4 = vld [vmem:[#allocation2 + $0x54] sm:$0xf0]  ;;  %v6677_v7 = vpop.f32.mrf.mxu2  ;;  %v2129_v40 = vrot.slane %v6667_v23, 6  ;;  %v6709_v22 = vor.u32 %v2874_v28, %v2871_v16  ;;  %v2128_v23 = vrot.slane %v2126_v36, 4 }
 0x1af   : > { %v4633_v52 = vor.u32 %v4907_v32, %v4630_v4  ;;  %3454 = vst.msk [vmem:[#allocation2 + $0x104] sm:$0xf] %vm277_vm3, %v3354_v14  ;;  %v2677_v32 = vld [vmem:[%s5199_s19 + $0x58] sm:$0xf]  ;;  %v3234_v4 = vld [vmem:[%s5199_s19 + $0x6c] sm:$0xf]  ;;  %v1322_v24 = vsel %vm5360_vm6, %v1320_v60, %v1321_v8 }
 0x1b0   : > { %v3356_v37 = vrot.slane %v3234_v4, 7  ;;  %v3359_v14 = vrot.slane %v3235_v54, 7  ;;  %v2131_v60 = vrot.slane %v2129_v40, 4  ;;  %v2877_v4 = vrot.slane %v6709_v22, 4 }
 0x1b1   : > { %4136 = vmatmul.bf16.gmra.mxu1 %v4633_v52  ;;  %2575 = vrot.lane.b32.xlu2 %v2499_v42, %s5153_s21  ;;  %v2879_v52 = vshrl.u32 %v2677_v32, 16  ;;  %v2456_v42 = vrot.slane %v6672_v30, 6  ;;  %v2130_v28 = vsel %vm5649_vm11, %v2128_v23, %v2129_v40 }
 0x1b2   : > { %3127 = vrot.lane.b32.xlu1 %v3016_v38, %s5154_s22  ;;  %v2882_v38 = vshll.u32 %v2677_v32, 16  ;;  %v3357_v56 = vsel %vm5737_vm1, %v3355_v47, %v3356_v37  ;;  %v3358_v3 = vrot.slane %v3356_v37, 4  ;;  %v2133_v36 = vsel %vm5649_vm11, %v2131_v60, %v2132_v0  ;;  %v3236_v37 = vld [vmem:[%s5199_s19 + $0x74] sm:$0xf] }
 0x1b3   : > { %2577 = vrot.lane.b32.xlu0 %v2502_v61, %s5153_s21  ;;  %v1400_v58 = vpop.permute.xlu2 %1399  ;;  %v4720_v61 = vld [vmem:[#allocation2 + $0xf8] sm:$0xf]  ;;  %v2881_v12 = vrot.slane %v2879_v52, 6  ;;  %3455 = vst.msk [vmem:[#allocation2 + $0x110] sm:$0xf] %vm277_vm3, %v3357_v56  ;;  %v1705_v47 = vshll.u32 %v1536_v18, 16 }
 0x1b4   : > { %v2532_v13 = vpop.permute.xlu1 %2531  ;;  %v4944_v17 = vld [vmem:[#allocation2 + $0x170] sm:$0xf0]  ;;  %1497 = vst.msk [vmem:[#allocation2 + $0x84] sm:$0xf] %vm1485_vm4, %v1400_v58  ;;  %v2884_v27 = vrot.slane %v2882_v38, 7  ;;  %v3362_v60 = vrot.slane %v3236_v37, 7 }
 0x1b5   : > { %2631 = vst.msk [vmem:[#allocation2 + $0x64] sm:$0xf] %vm1157_vm8, %v2532_v13  ;;  %v2207_v34 = vpop.permute.xlu0 %2206  ;;  %v4772_v25 = vld [vmem:[#allocation2 + $0x168] sm:$0xf]  ;;  %v1535_v13 = vld [vmem:[%s5199_s19 + $0x3c] sm:$0xf] }
 0x1b6   : > { %2305 = vst.msk [vmem:[#allocation2 + $0x70] sm:$0xf] %vm826_vm7, %v2207_v34  ;;  %v4773_v31 = vor.u32 %v4944_v17, %v4772_v25  ;;  %v4930_v6 = vld [vmem:[#allocation2 + $0x100] sm:$0xf0]  ;;  %v6717_v32 = vpop.f32.mrf.mxu2  ;;  %v3360_v34 = vsel %vm5737_vm1, %v3358_v3, %v3359_v14  ;;  %v1692_v25 = vshrl.u32 %v1535_v13, 16  ;;  %v1695_v30 = vshll.u32 %v1535_v13, 16 }
 0x1b7   : > { %2632 = vst.msk [vmem:[#allocation2 + $0x70] sm:$0xf] %vm1157_vm8, %v6585_v20  ;;  %v3026_v20 = vsel %vm5696_vm14, %v3017_v33, %v6675_v29  ;;  %v4721_v45 = vor.u32 %v4930_v6, %v4720_v61  ;;  %v6727_v58 = vld [vmem:[%s5199_s19 + $0x8c] sm:$0xf]  ;;  %v6737_v16 = vor.u32 %v2884_v27, %v2881_v12  ;;  %v1702_v61 = vshrl.u32 %v1536_v18, 16 }
 0x1b8   : > { %4097 = vmatmul.bf16.gmra.mxu3 %v4773_v31  ;;  %v2457_v31 = vsel %vm5649_vm11, %v2455_v2, %v2456_v42  ;;  %3456 = vst.msk [vmem:[#allocation2 + $0x11c] sm:$0xf] %vm277_vm3, %v3360_v34  ;;  %v1694_v52 = vrot.slane %v1692_v25, 5  ;;  %v1697_v38 = vrot.slane %v1695_v30, 6  ;;  %v2177_v54 = vrot.slane %v6727_v58, 6 }
 0x1b9   : > { %3129 = vrot.lane.b32.xlu2 %v3026_v20, %s5154_s22  ;;  %4888 = vmatmul.msk.bf16.gmra.mxu2 %vm3959_vm2, %v4721_v45  ;;  %v2458_v20 = vrot.slane %v2456_v42, 4  ;;  %v3361_v2 = vrot.slane %v3359_v14, 4  ;;  %v1690_v6 = vrot.slane %v6627_v11, 4  ;;  %v1704_v42 = vrot.slane %v1702_v61, 5  ;;  %v6753_v13 = vld [vmem:[%s5199_s19 + $0x94] sm:$0xf] }
 0x1ba   : > { %1411 = vrot.lane.b32.xlu1 %v1322_v24, %s5154_s22  ;;  %v2867_v24 = vrot.slane %v6579_v51, 4  ;;  %v2692_v51 = vld [vmem:[%s5199_s19 + $0x94] sm:$0xf]  ;;  %v1698_v40 = vor.u32 %v1697_v38, %v1694_v52  ;;  %v4732_v3 = vld [vmem:[#allocation2 + $0x110] sm:$0xf]  ;;  %v3364_v37 = vrot.slane %v3362_v60, 4 }
 0x1bb   : > { %1409 = vrot.lane.b32.xlu0 %v1319_v43, %s5154_s22  ;;  %v6722_v33 = vpop.permute.xlu2 %2535  ;;  %v6742_v43 = vld [vmem:[%s5199_s19 + $0x58] sm:$0xf]  ;;  %v6756_v14 = vld [vmem:[%s5199_s19 + $0x90] sm:$0xf]  ;;  %v3029_v38 = vshrl.u32 %v2692_v51, 16  ;;  %v3032_v61 = vshll.u32 %v2692_v51, 16 }
 0x1bc   : > { %v3086_v26 = vpop.permute.xlu1 %3085  ;;  %v2693_v11 = vld [vmem:[%s5199_s19 + $0x98] sm:$0xf]  ;;  %v1700_v34 = vrot.slane %v1698_v40, 4  ;;  %v1699_v25 = vsel %vm6027_vm10, %v1690_v6, %v1698_v40  ;;  %v2503_v51 = vrot.slane %v2501_v1, 4  ;;  %v2179_v1 = vrot.slane %v2177_v54, 4 }
 0x1bd   : > { %3184 = vst.msk [vmem:[#allocation2 + $0x70] sm:$0xf] %vm1485_vm4, %v3086_v26  ;;  %v3084_v17 = vpop.permute.xlu0 %3083  ;;  %v1707_v26 = vrot.slane %v1705_v47, 6  ;;  %v6773_v52 = vld [vmem:[%s5199_s19 + $0x78] sm:$0xf]  ;;  %v3363_v47 = vsel %vm5737_vm1, %v3361_v2, %v3362_v60  ;;  %v3042_v41 = vshll.u32 %v2693_v11, 16 }
 0x1be   : > { %3183 = vst.msk [vmem:[#allocation2 + $0x64] sm:$0xf] %vm1485_vm4, %v3084_v17  ;;  %v2459_v17 = vrot.slane %v6742_v43, 6  ;;  %v6760_v23 = vpop.f32.mrf.mxu2  ;;  %v3365_v60 = vrot.slane %v6773_v52, 7  ;;  %v6837_v58 = vld [vmem:[%s5199_s19 + $0x54] sm:$0xf] }
 0x1bf   : > { %1978 = vst.msk [vmem:[#allocation2 + $0x94] sm:$0xf] %vm277_vm3, %v1699_v25  ;;  %v2176_v25 = vrot.slane %v2174_v55, 4  ;;  %v6886_v52 = vld [vmem:[%s5199_s19 + $0x5c] sm:$0xf] }
 0x1c0   : > { %3457 = vst.msk [vmem:[#allocation2 + $0x128] sm:$0xf] %vm277_vm3, %v3363_v47  ;;  %v2460_v2 = vsel %vm5649_vm11, %v2458_v20, %v2459_v17  ;;  %v3031_v20 = vrot.slane %v3029_v38, 6  ;;  %v3044_v38 = vrot.slane %v3042_v41, 7  ;;  %v1551_v47 = vld [vmem:[%s5199_s19 + $0x7c] sm:$0xf] }
 0x1c1   : > { %2220 = vrot.lane.b32.xlu2 %v2130_v28, %s5152_s20  ;;  %v6770_v28 = vor.u32 %v1707_v26, %v1704_v42  ;;  %v3366_v42 = vsel %vm5737_vm1, %v3364_v37, %v3365_v60 }
 0x1c2   : > { %2547 = vrot.lane.b32.xlu1 %v2457_v31, %s5153_s21  ;;  %v2886_v31 = vsel %vm5696_vm14, %v2877_v4, %v6737_v16  ;;  %v2876_v4 = vsel %vm5696_vm14, %v2867_v24, %v6709_v22  ;;  %v4914_v22 = vld [vmem:[#allocation2 + $0x80] sm:$0xf0]  ;;  %v2504_v24 = vrot.slane %v6753_v13, 6  ;;  %3458 = vst.msk [vmem:[#allocation2 + $0x134] sm:$0xf] %vm277_vm3, %v3366_v42 }
 0x1c3   : > { %2222 = vrot.lane.b32.xlu0 %v2133_v36, %s5152_s20  ;;  %v6768_v18 = vpop.permute.xlu2 %3089  ;;  %v4933_v36 = vld [vmem:[#allocation2 + $0x118] sm:$0xf0]  ;;  %v1709_v40 = vsel %vm6027_vm10, %v1700_v34, %v6770_v28 }
 0x1c4   : > { %v1398_v45 = vpop.permute.xlu1 %1397  ;;  %v4642_v56 = vld [vmem:[#allocation2 + $0x6c] sm:$0xf0]  ;;  %v4733_v6 = vor.u32 %v4933_v36, %v4732_v3  ;;  %1979 = vst.msk [vmem:[#allocation2 + $0xa0] sm:$0xf] %vm277_vm3, %v1709_v40  ;;  %v3034_v3 = vrot.slane %v3032_v61, 7  ;;  %v2505_v9 = vsel %vm5649_vm11, %v2503_v51, %v2504_v24  ;;  %v1855_v51 = vshll.u32 %v1551_v47, 16 }
 0x1c5   : > { %1496 = vst.msk [vmem:[#allocation2 + $0x78] sm:$0xf] %vm1485_vm4, %v1398_v45  ;;  %v1444_v12 = vpop.permute.xlu0 %1443  ;;  %v4910_v27 = vld [vmem:[#allocation2 + $0x64] sm:$0xf]  ;;  %v2180_v45 = vrot.slane %v6756_v14, 6 }
 0x1c6   : > { %1519 = vst.msk [vmem:[#allocation2 + $0x18c] sm:$0xf] %vm1485_vm4, %v1444_v12  ;;  %v4645_v30 = vor.u32 %v4910_v27, %v4642_v56  ;;  %v3039_v56 = vshrl.u32 %v2693_v11, 16  ;;  %v4784_v27 = vld [vmem:[#allocation2 + $0x180] sm:$0xf]  ;;  %v3035_v55 = vor.u32 %v3034_v3, %v3031_v20 }
 0x1c7   : > { %v2181_v37 = vsel %vm5649_vm11, %v2179_v1, %v2180_v45  ;;  %v1552_v40 = vld [vmem:[%s5199_s19 + $0x80] sm:$0xf]  ;;  %v1550_v1 = vld [vmem:[%s5199_s19 + $0x78] sm:$0xf] }
 0x1c8   : > { %4141 = vmatmul.bf16.gmra.mxu1 %v4645_v30  ;;  %v6809_v30 = vpop.f32.mrf.mxu2  ;;  %v3041_v36 = vrot.slane %v3039_v56, 6  ;;  %v1862_v56 = vshrl.u32 %v1552_v40, 16  ;;  %v1865_v41 = vshll.u32 %v1552_v40, 16  ;;  %v1842_v3 = vshrl.u32 %v1550_v1, 16 }
 0x1c9   : > { %2549 = vrot.lane.b32.xlu2 %v2460_v2, %s5153_s21  ;;  %4889 = vmatmul.msk.bf16.gmra.mxu2 %vm3959_vm2, %v4733_v6  ;;  %v1852_v2 = vshrl.u32 %v1551_v47, 16 }
 0x1ca   : > { %3101 = vrot.lane.b32.xlu1 %v2886_v31, %s5154_s22  ;;  %v6829_v6 = vor.u32 %v3044_v38, %v3041_v36  ;;  %v1844_v38 = vrot.slane %v1842_v3, 5 }
 0x1cb   : > { %3099 = vrot.lane.b32.xlu0 %v2876_v4, %s5154_s22  ;;  %v1402_v61 = vpop.permute.xlu2 %1401  ;;  %v3027_v4 = vrot.slane %v6675_v29, 4  ;;  %v3037_v29 = vrot.slane %v3035_v55, 4  ;;  %v1854_v20 = vrot.slane %v1852_v2, 5  ;;  %v6854_v2 = vld [vmem:[%s5199_s19 + $0x54] sm:$0xf] }
 0x1cc   : > { %v2211_v26 = vpop.permute.xlu1 %2210  ;;  %v4652_v12 = vld [vmem:[#allocation2 + $0x78] sm:$0xf]  ;;  %1498 = vst.msk [vmem:[#allocation2 + $0x90] sm:$0xf] %vm1485_vm4, %v1402_v61  ;;  %v2135_v3 = vrot.slane %v6854_v2, 6 }
 0x1cd   : > { %2307 = vst.msk [vmem:[#allocation2 + $0x88] sm:$0xf] %vm826_vm7, %v2211_v26  ;;  %v2209_v13 = vpop.permute.xlu0 %2208  ;;  %v4653_v11 = vor.u32 %v4914_v22, %v4652_v12  ;;  %v4947_v34 = vld [vmem:[#allocation2 + $0x188] sm:$0xf0]  ;;  %v6832_v22 = vld [vmem:[%s5199_s19 + $0x98] sm:$0xf]  ;;  %v3046_v40 = vsel %vm5696_vm14, %v3037_v29, %v6829_v6 }
 0x1ce   : > { %2306 = vst.msk [vmem:[#allocation2 + $0x7c] sm:$0xf] %vm826_vm7, %v2209_v13  ;;  %v4785_v31 = vor.u32 %v4947_v34, %v4784_v27  ;;  %v2506_v26 = vrot.slane %v2504_v24, 4  ;;  %v1864_v12 = vrot.slane %v1862_v56, 5  ;;  %v1867_v27 = vrot.slane %v1865_v41, 6 }
 0x1cf   : > { %2633 = vst.msk [vmem:[#allocation2 + $0x7c] sm:$0xf] %vm1157_vm8, %v6722_v33  ;;  %4047 = vmatmul.bf16.gmra.mxu0 %v4653_v11  ;;  %v2178_v33 = vsel %vm5649_vm11, %v2176_v25, %v2177_v54  ;;  %v1857_v54 = vrot.slane %v1855_v51, 6  ;;  %v1845_v13 = vshll.u32 %v1550_v1, 16  ;;  %v3238_v11 = vld [vmem:[%s5199_s19 + $0x7c] sm:$0xf]  ;;  %v3036_v41 = vsel %vm5696_vm14, %v3027_v4, %v3035_v55 }
 0x1d0   : > { %4102 = vmatmul.bf16.gmra.mxu3 %v4785_v31  ;;  %v2507_v25 = vrot.slane %v6832_v22, 6  ;;  %v4744_v31 = vld [vmem:[#allocation2 + $0x128] sm:$0xf]  ;;  %v6844_v47 = vpop.f32.mrf.mxu2  ;;  %v4936_v24 = vld [vmem:[#allocation2 + $0x130] sm:$0xf0]  ;;  %v1324_v51 = vrot.slane %v6837_v58, 5 }
 0x1d1   : > { %2252 = vrot.lane.b32.xlu2 %v2178_v33, %s5152_s20  ;;  %v1858_v36 = vor.u32 %v1857_v54, %v1854_v20  ;;  %v3368_v33 = vrot.slane %v3238_v11, 7  ;;  %v6860_v1 = vld [vmem:[%s5199_s19 + $0x58] sm:$0xf]  ;;  %v4745_v29 = vor.u32 %v4936_v24, %v4744_v31  ;;  %v6873_v54 = vld [vmem:[%s5199_s19 + $0x80] sm:$0xf]  ;;  %v3367_v55 = vrot.slane %v3365_v60, 4 }
 0x1d2   : > { %2579 = vrot.lane.b32.xlu1 %v2505_v9, %s5153_s21  ;;  %v6846_v9 = vor.u32 %v1867_v27, %v1864_v12  ;;  %v2134_v4 = vrot.slane %v2132_v0, 4  ;;  %v1326_v12 = vrot.slane %v1324_v51, 4  ;;  %v1327_v27 = vrot.slane %v6860_v1, 5  ;;  %v2678_v11 = vld [vmem:[%s5199_s19 + $0x5c] sm:$0xf] }
 0x1d3   : > { %2254 = vrot.lane.b32.xlu0 %v2181_v37, %s5152_s20  ;;  %v2215_v61 = vpop.permute.xlu2 %2214  ;;  %v1847_v37 = vrot.slane %v1845_v13, 6  ;;  %v1860_v56 = vrot.slane %v1858_v36, 4  ;;  %v3369_v60 = vsel %vm5737_vm1, %v3367_v55, %v3368_v33  ;;  %v3371_v57 = vrot.slane %v6873_v54, 7  ;;  %v2694_v54 = vld [vmem:[%s5199_s19 + $0x9c] sm:$0xf] }
 0x1d4   : > { %v3088_v42 = vpop.permute.xlu1 %3087  ;;  %2309 = vst.msk [vmem:[#allocation2 + $0xa0] sm:$0xf] %vm826_vm7, %v2215_v61  ;;  %v2462_v24 = vrot.slane %v6886_v52, 6  ;;  %v2136_v5 = vsel %vm5649_vm11, %v2134_v4, %v2135_v3  ;;  %v2889_v2 = vshrl.u32 %v2678_v11, 16 }
 0x1d5   : > { %3185 = vst.msk [vmem:[#allocation2 + $0x7c] sm:$0xf] %vm1485_vm4, %v3088_v42  ;;  %v2538_v34 = vpop.permute.xlu0 %2537  ;;  %v6863_v20 = vor.u32 %v1847_v37, %v1844_v38  ;;  %v1869_v58 = vsel %vm6027_vm10, %v1860_v56, %v6846_v9  ;;  %v1323_v38 = vrot.slane %v1321_v8, 4  ;;  %v6913_v8 = vld [vmem:[%s5199_s19 + $0x60] sm:$0xf]  ;;  %v2892_v56 = vshll.u32 %v2678_v11, 16 }
 0x1d6   : > { %2634 = vst.msk [vmem:[#allocation2 + $0x88] sm:$0xf] %vm1157_vm8, %v2538_v34  ;;  %v2464_v55 = vrot.slane %v2462_v24, 4  ;;  %v2465_v4 = vrot.slane %v6913_v8, 6  ;;  %v2137_v11 = vrot.slane %v2135_v3, 4 }
 0x1d7   : > { %3186 = vst.msk [vmem:[#allocation2 + $0x88] sm:$0xf] %vm1485_vm4, %v6768_v18  ;;  %v2508_v18 = vsel %vm5649_vm11, %v2506_v26, %v2507_v25  ;;  %v1850_v42 = vrot.slane %v6863_v20, 4  ;;  %v3370_v26 = vrot.slane %v3368_v33, 4 }
 0x1d8   : > { %1995 = vst.msk [vmem:[#allocation2 + $0x160] sm:$0xf] %vm277_vm3, %v1869_v58  ;;  %v6908_v33 = vpop.f32.mrf.mxu2  ;;  %v6925_v58 = vld [vmem:[%s5199_s19 + $0x58] sm:$0xf]  ;;  %v2466_v3 = vsel %vm5649_vm11, %v2464_v55, %v2465_v4 }
 0x1d9   : > { %2581 = vrot.lane.b32.xlu2 %v2508_v18, %s5153_s21  ;;  %v1859_v34 = vsel %vm6027_vm10, %v1850_v42, %v1858_v36  ;;  %3459 = vst.msk [vmem:[#allocation2 + $0x140] sm:$0xf] %vm277_vm3, %v3369_v60  ;;  %4890 = vmatmul.msk.bf16.gmra.mxu2 %vm3959_vm2, %v4745_v29  ;;  %v3372_v61 = vsel %vm5737_vm1, %v3370_v26, %v3371_v57  ;;  %v2679_v18 = vld [vmem:[%s5199_s19 + $0x60] sm:$0xf]  ;;  %v2461_v42 = vrot.slane %v2459_v17, 4  ;;  %v2891_v26 = vrot.slane %v2889_v2, 6 }
 0x1da   : > { %3133 = vrot.lane.b32.xlu1 %v3046_v40, %s5154_s22  ;;  %1994 = vst.msk [vmem:[#allocation2 + $0x154] sm:$0xf] %vm277_vm3, %v1859_v34  ;;  %v1325_v29 = vsel %vm5360_vm6, %v1323_v38, %v1324_v51  ;;  %v2899_v52 = vshrl.u32 %v2679_v18, 16  ;;  %v2902_v60 = vshll.u32 %v2679_v18, 16  ;;  %v6934_v51 = vld [vmem:[%s5199_s19 + $0x94] sm:$0xf] }
 0x1db   : > { %3131 = vrot.lane.b32.xlu0 %v3036_v41, %s5154_s22  ;;  %v6906_v37 = vpop.permute.xlu2 %3091  ;;  %v1328_v41 = vsel %vm5360_vm6, %v1326_v12, %v1327_v27  ;;  %3460 = vst.msk [vmem:[#allocation2 + $0x14c] sm:$0xf] %vm277_vm3, %v3372_v61  ;;  %v2894_v12 = vrot.slane %v2892_v56, 7  ;;  %v2138_v34 = vrot.slane %v6925_v58, 6  ;;  %v1537_v38 = vld [vmem:[%s5199_s19 + $0x44] sm:$0xf] }
 0x1dc   : > { %v1448_v0 = vpop.permute.xlu1 %1447  ;;  %v4913_v13 = vld [vmem:[#allocation2 + $0x7c] sm:$0xf]  ;;  %v1715_v2 = vshll.u32 %v1537_v38, 16  ;;  %v3240_v56 = vld [vmem:[%s5199_s19 + $0x84] sm:$0xf]  ;;  %v2901_v18 = vrot.slane %v2899_v52, 6  ;;  %v6961_v52 = vpop.f32.mrf.mxu0 }
 0x1dd   : > { %1521 = vst.msk [vmem:[#allocation2 + $0x1a4] sm:$0xf] %vm1485_vm4, %v1448_v0  ;;  %v1446_v31 = vpop.permute.xlu0 %1445  ;;  %v2183_v59 = vrot.slane %v6934_v51, 6  ;;  %v2139_v55 = vsel %vm5649_vm11, %v2137_v11, %v2138_v34 }
 0x1de   : > { %1520 = vst.msk [vmem:[#allocation2 + $0x198] sm:$0xf] %vm1485_vm4, %v1446_v31  ;;  %v4654_v36 = vld [vmem:[#allocation2 + $0x84] sm:$0xf0] }
 0x1df   : > { %v4657_v40 = vor.u32 %v4913_v13, %v4654_v36 }
 0x1e0   : > { %v4756_v31 = vld [vmem:[#allocation2 + $0x140] sm:$0xf] }
 0x1e1   : > { %4146 = vmatmul.bf16.gmra.mxu1 %v4657_v40  ;;  %1413 = vrot.lane.b32.xlu2 %v1325_v29, %s5154_s22  ;;  %v6940_v40 = vpop.f32.mrf.mxu2 }
 0x1e2   : > { %2224 = vrot.lane.b32.xlu1 %v2136_v5, %s5152_s20  ;;  %v1712_v5 = vshrl.u32 %v1537_v38, 16  ;;  %v4939_v29 = vld [vmem:[#allocation2 + $0x148] sm:$0xf0]  ;;  %v1538_v38 = vld [vmem:[%s5199_s19 + $0x48] sm:$0xf] }
 0x1e3   : > { %1415 = vrot.lane.b32.xlu0 %v1328_v41, %s5154_s22  ;;  %v2247_v36 = vpop.permute.xlu2 %2246  ;;  %v2895_v41 = vor.u32 %v2894_v12, %v2891_v26  ;;  %v4757_v26 = vor.u32 %v4939_v29, %v4756_v31  ;;  %v3374_v12 = vrot.slane %v3240_v56, 7  ;;  %v1725_v31 = vshll.u32 %v1538_v38, 16 }
 0x1e4   : > { %v2213_v0 = vpop.permute.xlu1 %2212  ;;  %v4950_v13 = vld [vmem:[#allocation2 + $0x1a0] sm:$0xf0]  ;;  %2325 = vst.msk [vmem:[#allocation2 + $0x160] sm:$0xf] %vm826_vm7, %v2247_v36  ;;  %v1714_v14 = vrot.slane %v1712_v5, 5  ;;  %v1710_v36 = vrot.slane %v6770_v28, 4 }
 0x1e5   : > { %2308 = vst.msk [vmem:[#allocation2 + $0x94] sm:$0xf] %vm826_vm7, %v2213_v0  ;;  %v1404_v43 = vpop.permute.xlu0 %1403  ;;  %v4796_v17 = vld [vmem:[#allocation2 + $0x198] sm:$0xf]  ;;  %v2463_v0 = vsel %vm5649_vm11, %v2461_v42, %v2462_v24  ;;  %v1722_v24 = vshrl.u32 %v1538_v38, 16  ;;  %v3373_v42 = vrot.slane %v3371_v57, 4 }
 0x1e6   : > { %1499 = vst.msk [vmem:[#allocation2 + $0x9c] sm:$0xf] %vm1485_vm4, %v1404_v43  ;;  %v4797_v61 = vor.u32 %v4950_v13, %v4796_v17  ;;  %v2182_v13 = vrot.slane %v2180_v45, 4  ;;  %v2904_v43 = vrot.slane %v2902_v60, 7  ;;  %v6953_v17 = vld [vmem:[%s5199_s19 + $0x9c] sm:$0xf] }
 0x1e7   : > { %v1717_v45 = vrot.slane %v1715_v2, 6  ;;  %v4664_v60 = vld [vmem:[#allocation2 + $0x90] sm:$0xf]  ;;  %v2510_v11 = vrot.slane %v6953_v17, 6  ;;  %v2887_v5 = vrot.slane %v6737_v16, 4  ;;  %v1724_v2 = vrot.slane %v1722_v24, 5 }
 0x1e8   : > { %4107 = vmatmul.bf16.gmra.mxu3 %v4797_v61  ;;  %v2897_v61 = vrot.slane %v2895_v41, 4  ;;  %v6969_v29 = vor.u32 %v2904_v43, %v2901_v18  ;;  %v2184_v28 = vsel %vm5649_vm11, %v2182_v13, %v2183_v59  ;;  %v2368_v18 = vld [vmem:[%s5199_s19 + $0xa0] sm:$0x3]  ;;  %v1727_v43 = vrot.slane %v1725_v31, 6 }
 0x1e9   : > { %2226 = vrot.lane.b32.xlu2 %v2139_v55, %s5152_s20  ;;  %v1718_v57 = vor.u32 %v1717_v45, %v1714_v14  ;;  %4891 = vmatmul.msk.bf16.gmra.mxu2 %vm3959_vm2, %v4757_v26  ;;  %v3376_v16 = vrot.slane %v3374_v12, 4  ;;  %v2695_v14 = vld [vmem:[%s5199_s19 + $0xa0] sm:$0x7]  ;;  %v6988_v45 = vpop.f32.mrf.mxu2  ;;  %v3375_v13 = vsel %vm5737_vm1, %v3373_v42, %v3374_v12  ;;  %v3049_v26 = vshrl.u32 %v2694_v54, 16 }
 0x1ea   : > { %2553 = vrot.lane.b32.xlu1 %v2466_v3, %s5153_s21  ;;  %v6975_v3 = vld [vmem:[%s5199_s19 + $0x88] sm:$0xf]  ;;  %v3052_v31 = vshll.u32 %v2694_v54, 16  ;;  %v2896_v12 = vsel %vm5696_vm14, %v2887_v5, %v2895_v41  ;;  %3461 = vst.msk [vmem:[#allocation2 + $0x158] sm:$0xf] %vm277_vm3, %v3375_v13  ;;  %v2512_v41 = vrot.slane %v2510_v11, 4 }
 0x1eb   : > { %2551 = vrot.lane.b32.xlu0 %v2463_v0, %s5153_s21  ;;  %v6985_v55 = vpop.permute.xlu2 %3123  ;;  %v1720_v24 = vrot.slane %v1718_v57, 4  ;;  %v2038_v54 = vld [vmem:[%s5199_s19 + $0x98] sm:$0x3]  ;;  %v3051_v5 = vrot.slane %v3049_v26, 6 }
 0x1ec   : > { %v2542_v56 = vpop.permute.xlu1 %2541 }
 0x1ed   : > { %2636 = vst.msk [vmem:[#allocation2 + $0xa0] sm:$0xf] %vm1157_vm8, %v2542_v56  ;;  %v2540_v0 = vpop.permute.xlu0 %2539  ;;  %v4917_v53 = vld [vmem:[#allocation2 + $0x98] sm:$0xf0]  ;;  %v1719_v56 = vsel %vm6027_vm10, %v1710_v36, %v1718_v57  ;;  %v2513_v36 = vrot.slane %v2368_v18, 6  ;;  %v3054_v57 = vrot.slane %v3052_v31, 7 }
 0x1ee   : > { %2635 = vst.msk [vmem:[#allocation2 + $0x94] sm:$0xf] %vm1157_vm8, %v2540_v0  ;;  %v4665_v38 = vor.u32 %v4917_v53, %v4664_v60  ;;  %v6996_v0 = vor.u32 %v1727_v43, %v1724_v2  ;;  %v7721_v53 = vrot.slane %v6975_v3, 7  ;;  %v2906_v60 = vsel %vm5696_vm14, %v2897_v61, %v6969_v29  ;;  %v7020_v43 = vpop.f32.mrf.mxu0 }
 0x1ef   : > { %3187 = vst.msk [vmem:[#allocation2 + $0x94] sm:$0xf] %vm1485_vm4, %v6906_v37  ;;  %v3059_v61 = vshrl.u32 %v2695_v14, 16  ;;  %v3062_v2 = vshll.u32 %v2695_v14, 16  ;;  %v2509_v18 = vrot.slane %v2507_v25, 4  ;;  %v2514_v22 = vsel %vm5649_vm11, %v2512_v41, %v2513_v36 }
 0x1f0   : > { %4052 = vmatmul.bf16.gmra.mxu0 %v4665_v38  ;;  %1980 = vst.msk [vmem:[#allocation2 + $0xac] sm:$0xf] %vm277_vm3, %v1719_v56  ;;  %v1729_v37 = vsel %vm6027_vm10, %v1720_v24, %v6996_v0  ;;  %v3378_v42 = vsel %vm5737_vm1, %v3376_v16, %v7721_v53  ;;  %v2185_v38 = vrot.slane %v2183_v59, 4  ;;  %v2186_v24 = vrot.slane %v2038_v54, 6  ;;  %v1553_v56 = vld [vmem:[%s5199_s19 + $0x84] sm:$0xf] }
 0x1f1   : > { %1981 = vst.msk [vmem:[#allocation2 + $0xb8] sm:$0xf] %vm277_vm3, %v1729_v37  ;;  %3103 = vrot.lane.b32.xlu2 %v2896_v12, %s5154_s22  ;;  %v3061_v14 = vrot.slane %v3059_v61, 6  ;;  %v7030_v26 = vpop.f32.mrf.mxu2  ;;  %v7035_v25 = vld [vmem:[%s5199_s19 + $0x5c] sm:$0xf]  ;;  %v3055_v31 = vor.u32 %v3054_v57, %v3051_v5  ;;  %v1872_v51 = vshrl.u32 %v1553_v56, 16  ;;  %v2511_v59 = vsel %vm5649_vm11, %v2509_v18, %v2510_v11 }
 0x1f2   : > { %2256 = vrot.lane.b32.xlu1 %v2184_v28, %s5152_s20  ;;  %3462 = vst.msk [vmem:[#allocation2 + $0x164] sm:$0xf] %vm277_vm3, %v3378_v42  ;;  %v4768_v12 = vld [vmem:[#allocation2 + $0x158] sm:$0xf]  ;;  %v1875_v37 = vshll.u32 %v1553_v56, 16  ;;  %v1329_v36 = vrot.slane %v1327_v27, 4  ;;  %v2187_v61 = vsel %vm5649_vm11, %v2185_v38, %v2186_v24 }
 0x1f3   : > { %3105 = vrot.lane.b32.xlu0 %v2906_v60, %s5154_s22  ;;  %v1408_v13 = vpop.permute.xlu2 %1407  ;;  %v3064_v60 = vrot.slane %v3062_v2, 7  ;;  %v7045_v42 = vld [vmem:[%s7717_s2] ss:$0 sm:$0xff]  ;;  %v1554_v54 = vld [vmem:[%s5199_s19 + $0x88] sm:$0xf]  ;;  %v1874_v41 = vrot.slane %v1872_v51, 5 }
 0x1f4   : > { %v2245_v28 = vpop.permute.xlu1 %2244  ;;  %1501 = vst.msk [vmem:[#allocation2 + $0xb4] sm:$0xf] %vm1485_vm4, %v1408_v13  ;;  %v1330_v17 = vrot.slane %v7035_v25, 5  ;;  %v1877_v5 = vrot.slane %v1875_v37, 6  ;;  %v1882_v57 = vshrl.u32 %v1554_v54, 16  ;;  %v1885_v2 = vshll.u32 %v1554_v54, 16 }
 0x1f5   : > { %2324 = vst.msk [vmem:[#allocation2 + $0x154] sm:$0xf] %vm826_vm7, %v2245_v28  ;;  %v3094_v16 = vpop.permute.xlu0 %3093  ;;  %v3057_v28 = vrot.slane %v3055_v31, 4  ;;  %v3065_v18 = vor.u32 %v3064_v60, %v3061_v14  ;;  %v1870_v27 = vrot.slane %v6846_v9, 4  ;;  %v2023_v38 = vld [vmem:[%s5199_s19 + $0x5c] sm:$0xf]  ;;  %v4024_v9 = vadd.f32 %v7045_v42, %v6961_v52 }
 0x1f6   : > { %3188 = vst.msk [vmem:[#allocation2 + $0xa0] sm:$0xf] %vm1485_vm4, %v3094_v16  ;;  %v3047_v24 = vrot.slane %v6829_v6, 4  ;;  %v1878_v56 = vor.u32 %v1877_v5, %v1874_v41  ;;  %v1884_v13 = vrot.slane %v1882_v57, 5  ;;  %v7063_v14 = vpop.f32.mrf.mxu0  ;;  %v1331_v41 = vsel %vm5360_vm6, %v1329_v36, %v1330_v17 }
 0x1f8   : > { %v1879_v5 = vsel %vm6027_vm10, %v1870_v27, %v1878_v56  ;;  %v3056_v36 = vsel %vm5696_vm14, %v3047_v24, %v3055_v31  ;;  %v7101_v24 = vld [vmem:[%s5199_s19 + $0x64] sm:$0xf] }
 0x1f9   : > { %v4942_v11 = vld [vmem:[#allocation2 + $0x160] sm:$0xf0]  ;;  %2258 = vrot.lane.b32.xlu2 %v2187_v61, %s5152_s20  ;;  %v1880_v61 = vrot.slane %v1878_v56, 4  ;;  %v7075_v52 = vpop.f32.mrf.mxu2  ;;  %1996 = vst.msk [vmem:[#allocation2 + $0x16c] sm:$0xf] %vm277_vm3, %v1879_v5  ;;  %v4026_v56 = vadd.f32 %v7045_v42, %v7020_v43 }
 0x1fa   : > { %2585 = vrot.lane.b32.xlu1 %v2514_v22, %s5153_s21  ;;  %v4769_v1 = vor.u32 %v4942_v11, %v4768_v12  ;;  %v1887_v22 = vrot.slane %v1885_v2, 6  ;;  %v2680_v12 = vld [vmem:[%s5199_s19 + $0x64] sm:$0xf]  ;;  %v2141_v11 = vrot.slane %v2023_v38, 6  ;;  %v3066_v2 = vsel %vm5696_vm14, %v3057_v28, %v3065_v18 }
 0x1fb   : > { %2583 = vrot.lane.b32.xlu0 %v2511_v59, %s5153_s21  ;;  %v4916_v59 = vld [vmem:[#allocation2 + $0x94] sm:$0xf]  ;;  %v7066_v60 = vpop.permute.xlu2 %2543  ;;  %v2912_v27 = vshll.u32 %v2680_v12, 16  ;;  %v2140_v38 = vrot.slane %v2138_v34, 4 }
 0x1fc   : > { %v2574_v16 = vpop.permute.xlu1 %2573  ;;  %4892 = vmatmul.msk.bf16.gmra.mxu2 %vm3959_vm2, %v4769_v1  ;;  %v7069_v54 = vor.u32 %v1887_v22, %v1884_v13  ;;  %v7082_v1 = vld [vmem:[%s5199_s19 + $0x60] sm:$0xf]  ;;  %v2143_v28 = vrot.slane %v2141_v11, 4 }
 0x1fd   : > { %2652 = vst.msk [vmem:[#allocation2 + $0x160] sm:$0xf] %vm1157_vm8, %v2574_v16  ;;  %v4122_v25 = vpop.f32.mrf.mxu1  ;;  %v2572_v51 = vpop.permute.xlu0 %2571  ;;  %v4666_v37 = vld [vmem:[#allocation2 + $0x9c] sm:$0xf0]  ;;  %v2909_v16 = vshrl.u32 %v2680_v12, 16  ;;  %v2144_v18 = vrot.slane %v7082_v1, 6 }
 0x1fe   : > { %2651 = vst.msk [vmem:[#allocation2 + $0x154] sm:$0xf] %vm1157_vm8, %v2572_v51  ;;  %v4669_v6 = vor.u32 %v4916_v59, %v4666_v37  ;;  %v4123_v57 = vadd.f32 %v4122_v25, %v4024_v9  ;;  %v7104_v22 = vld [vmem:[%s5199_s19 + $0x60] sm:$0xf]  ;;  %v2914_v34 = vrot.slane %v2912_v27, 7  ;;  %v1332_v59 = vrot.slane %v1330_v17, 4 }
 0x1ff   : > { %3203 = vst.msk [vmem:[#allocation2 + $0x154] sm:$0xf] %vm1485_vm4, %v6985_v55  ;;  %v1889_v55 = vsel %vm6027_vm10, %v1880_v61, %v7069_v54  ;;  %v2911_v58 = vrot.slane %v2909_v16, 6  ;;  %v2145_v37 = vsel %vm5649_vm11, %v2143_v28, %v2144_v18  ;;  %v2142_v9 = vsel %vm5649_vm11, %v2140_v38, %v2141_v11  ;;  %v1539_v17 = vld [vmem:[%s5199_s19 + $0x4c] sm:$0xf] }
 0x200   : > { %4151 = vmatmul.bf16.gmra.mxu1 %v4669_v6  ;;  %1997 = vst.msk [vmem:[#allocation2 + $0x178] sm:$0xf] %vm277_vm3, %v1889_v55  ;;  %v4222_v13 = vadd.f32 %v6541_v15, %v4123_v57  ;;  %v2468_v6 = vrot.slane %v7101_v24, 6  ;;  %v1333_v12 = vrot.slane %v7104_v22, 5  ;;  %v1732_v55 = vshrl.u32 %v1539_v17, 16 }
 0x201   : > { %3135 = vrot.lane.b32.xlu2 %v3056_v36, %s5154_s22  ;;  %v7118_v61 = vpop.f32.mrf.mxu2  ;;  %v1735_v36 = vshll.u32 %v1539_v17, 16  ;;  %v2907_v11 = vrot.slane %v6969_v29, 4  ;;  %v7129_v16 = vor.u32 %v2914_v34, %v2911_v58  ;;  %v7139_v29 = vld [vmem:[%s5199_s19 + $0x64] sm:$0xf] }
 0x202   : > { %1417 = vrot.lane.b32.xlu1 %v1331_v41, %s5154_s22  ;;  %v7121_v41 = vpop.f32.mrf.mxu0  ;;  %v4311_v5 = vmul.f32 0.1, %v4222_v13  ;;  %v1334_v27 = vsel %vm5360_vm6, %v1332_v59, %v1333_v12  ;;  %v1734_v38 = vrot.slane %v1732_v55, 5  ;;  %v7160_v55 = vld [vmem:[%s5199_s19 + $0x68] sm:$0xf] }
 0x203   : > { %3137 = vrot.lane.b32.xlu0 %v3066_v2, %s5154_s22  ;;  %v7108_v15 = vpop.permute.xlu2 %3097  ;;  %v7125_v2 = vld [vmem:[%s5199_s19 + $0x68] sm:$0xf] }
 0x204   : > { %v1406_v31 = vpop.permute.xlu1 %1405  ;;  %v2471_v24 = vrot.slane %v7125_v2, 6 }
 0x205   : > { %1500 = vst.msk [vmem:[#allocation2 + $0xa8] sm:$0xf] %vm1485_vm4, %v1406_v31  ;;  %v4124_v25 = vpop.f32.mrf.mxu1  ;;  %v3126_v51 = vpop.permute.xlu0 %3125  ;;  %v2470_v31 = vrot.slane %v2468_v6, 4 }
 0x206   : > { %v4125_v43 = vadd.f32 %v4124_v25, %v4026_v56  ;;  %3204 = vst.msk [vmem:[#allocation2 + $0x160] sm:$0xf] %vm1485_vm4, %v3126_v51  ;;  %v1737_v56 = vrot.slane %v1735_v36, 6  ;;  %v2467_v25 = vrot.slane %v2465_v4, 4  ;;  %v4347_v51 = vmax.f32 %v4222_v13, %v4311_v5  ;;  %v4940_v5 = vld [vmem:[#allocation2 + $0x154] sm:$0xf] }
 0x208   : > { %v4224_v57 = vadd.f32 %v6581_v39, %v4125_v43  ;;  %v4920_v39 = vld [vmem:[#allocation2 + $0xb0] sm:$0xf0]  ;;  %v2681_v43 = vld [vmem:[%s5199_s19 + $0x68] sm:$0xf]  ;;  %v7146_v17 = vor.u32 %v1737_v56, %v1734_v38  ;;  %v1540_v38 = vld [vmem:[%s5199_s19 + $0x50] sm:$0xf] }
 0x209   : > { %1419 = vrot.lane.b32.xlu2 %v1334_v27, %s5154_s22  ;;  %v1336_v27 = vrot.slane %v7139_v29, 5  ;;  %v2919_v56 = vshrl.u32 %v2681_v43, 16 }
 0x20a   : > { %v4312_v28 = vmul.f32 0.1, %v4224_v57  ;;  %2230 = vrot.lane.b32.xlu1 %v2145_v37, %s5152_s20  ;;  %v1730_v37 = vrot.slane %v6996_v0, 4  ;;  %v2916_v0 = vsel %vm5696_vm14, %v2907_v11, %v7129_v16  ;;  %v7172_v11 = vpop.f32.mrf.mxu2 }
 0x20b   : > { %2228 = vrot.lane.b32.xlu0 %v2142_v9, %s5152_s20  ;;  %v4029_v9 = vadd.f32 %v7045_v42, %v7063_v14 }
 0x20c   : > { %v4348_v58 = vmax.f32 %v4224_v57, %v4312_v28  ;;  %v2219_v34 = vpop.permute.xlu1 %2218  ;;  %v4676_v59 = vld [vmem:[#allocation2 + $0xa8] sm:$0xf]  ;;  %v7164_v28 = vpop.permute.xlu2 %2575 }
 0x20d   : > { %2311 = vst.msk [vmem:[#allocation2 + $0xb8] sm:$0xf] %vm826_vm7, %v2219_v34  ;;  %v4127_v8 = vpop.f32.mrf.mxu1  ;;  %v2217_v4 = vpop.permute.xlu0 %2216  ;;  %v4677_v13 = vor.u32 %v4920_v39, %v4676_v59  ;;  %v4762_v57 = vld [vmem:[#allocation2 + $0x15c] sm:$0xf0]  ;;  %v1739_v39 = vsel %vm6027_vm10, %v1730_v37, %v7146_v17  ;;  %v1745_v34 = vshll.u32 %v1540_v38, 16  ;;  %v2472_v59 = vsel %vm5649_vm11, %v2470_v31, %v2471_v24 }
 0x20e   : > { %v4973_v14 = vpack.c.bf16 %v4348_v58, %v4347_v51  ;;  %2310 = vst.msk [vmem:[#allocation2 + $0xac] sm:$0xf] %vm826_vm7, %v2217_v4  ;;  %v4765_v36 = vor.u32 %v4940_v5, %v4762_v57  ;;  %v2922_v51 = vshll.u32 %v2681_v43, 16  ;;  %v1742_v58 = vshrl.u32 %v1540_v38, 16 }
 0x20f   : > { %2637 = vst.msk [vmem:[#allocation2 + $0xac] sm:$0xf] %vm1157_vm8, %v7066_v60  ;;  %4057 = vmatmul.bf16.gmra.mxu0 %v4677_v13  ;;  %v4128_v29 = vadd.f32 %v4127_v8, %v4029_v9  ;;  %v2469_v37 = vsel %vm5649_vm11, %v2467_v25, %v2468_v6  ;;  %v7182_v60 = vpop.f32.mrf.mxu0  ;;  %v7723_v43 = vrot.slane %v7160_v55, 5  ;;  %v1335_v9 = vrot.slane %v1333_v12, 4  ;;  %v7190_v6 = vld [vmem:[%s5199_s19 + $0x64] sm:$0xf] }
 0x210   : > { %4974 = vst [vmem:[%s7153_s29] sm:$0xff] %v4973_v14   ;;  %4191 = vmatmul.bf16.vlgmr.msrb.gmra.mxu3 %v4765_v36  ;;  %v1744_v8 = vrot.slane %v1742_v58, 5  ;;  %v1747_v4 = vrot.slane %v1745_v34, 6  ;;  %v1338_v31 = vrot.slane %v1336_v27, 4  ;;  %v2921_v25 = vrot.slane %v2919_v56, 6  ;;  %v7198_v12 = vld [vmem:[%s5199_s19 + $0x6c] sm:$0xf] }
 0x211   : > { %1982 = vst.msk [vmem:[#allocation2 + $0xc4] sm:$0xf] %vm277_vm3, %v1739_v39  ;;  %v2924_v13 = vrot.slane %v2922_v51, 7  ;;  %v1740_v5 = vrot.slane %v7146_v17, 4  ;;  %v4031_v57 = vadd.f32 %v7045_v42, %v7121_v41  ;;  %2555 = vrot.lane.b32.xlu2 %v2469_v37, %s5153_s21  ;;  %v2682_v14 = vld [vmem:[%s5199_s19 + $0x6c] sm:$0xf] }
 0x212   : > { %3107 = vrot.lane.b32.xlu1 %v2916_v0, %s5154_s22  ;;  %v4227_v0 = vadd.f32 %v6625_v62, %v4128_v29  ;;  %v7201_v36 = vor.u32 %v1747_v4, %v1744_v8  ;;  %v7205_v17 = vld [vmem:[%s5199_s19 + $0x68] sm:$0xf]  ;;  %v2917_v41 = vrot.slane %v7129_v16, 4  ;;  %v1337_v62 = vsel %vm5360_vm6, %v1335_v9, %v1336_v27  ;;  %v2683_v34 = vld [vmem:[%s5199_s19 + $0x70] sm:$0xf]  ;;  %v7226_v9 = vpop.f32.mrf.mxu2 }
 0x213   : > { %2557 = vrot.lane.b32.xlu0 %v2472_v59, %s5153_s21  ;;  %v2147_v51 = vrot.slane %v7190_v6, 6  ;;  %v1340_v16 = vsel %vm5360_vm6, %v1338_v31, %v7723_v43  ;;  %v7224_v59 = vor.u32 %v2924_v13, %v2921_v25  ;;  %v2929_v27 = vshrl.u32 %v2682_v14, 16  ;;  %v1555_v8 = vld [vmem:[%s5199_s19 + $0x8c] sm:$0xf] }
 0x214   : > { %v3096_v22 = vpop.permute.xlu1 %3095  ;;  %v7212_v58 = vpop.permute.xlu2 %3129  ;;  %v1749_v29 = vsel %vm6027_vm10, %v1740_v5, %v7201_v36  ;;  %v2932_v37 = vshll.u32 %v2682_v14, 16  ;;  %v4313_v4 = vmul.f32 0.1, %v4227_v0  ;;  %v1892_v5 = vshrl.u32 %v1555_v8, 16 }
 0x215   : > { %3189 = vst.msk [vmem:[#allocation2 + $0xac] sm:$0xf] %vm1485_vm4, %v3096_v22  ;;  %v4129_v39 = vpop.f32.mrf.mxu1  ;;  %v2546_v38 = vpop.permute.xlu0 %2545  ;;  %v1895_v22 = vshll.u32 %v1555_v8, 16  ;;  %v2926_v25 = vsel %vm5696_vm14, %v2917_v41, %v7224_v59  ;;  %v2939_v14 = vshrl.u32 %v2683_v34, 16  ;;  %v2149_v2 = vrot.slane %v2147_v51, 4 }
 0x216   : > { %v4130_v56 = vadd.f32 %v4129_v39, %v4031_v57  ;;  %2638 = vst.msk [vmem:[#allocation2 + $0xb8] sm:$0xf] %vm1157_vm8, %v2546_v38  ;;  %v2474_v39 = vrot.slane %v7198_v12, 6  ;;  %v4349_v53 = vmax.f32 %v4227_v0, %v4313_v4  ;;  %v1890_v41 = vrot.slane %v7069_v54, 4 }
 0x217   : > { %3190 = vst.msk [vmem:[#allocation2 + $0xb8] sm:$0xf] %vm1485_vm4, %v7108_v15  ;;  %v2473_v15 = vrot.slane %v2471_v24, 4  ;;  %v1897_v38 = vrot.slane %v1895_v22, 6  ;;  %v2931_v24 = vrot.slane %v2929_v27, 6  ;;  %v4035_v8 = vpop.f32.mrf.mxu0  ;;  %v4034_v0 = vadd.f32 %v7045_v42, %v7182_v60 }
 0x218   : > { %v4229_v57 = vadd.f32 %v6677_v7, %v4130_v56  ;;  %1983 = vst.msk [vmem:[#allocation2 + $0xd0] sm:$0xf] %vm277_vm3, %v1749_v29  ;;  %v1894_v7 = vrot.slane %v1892_v5, 5  ;;  %v2934_v56 = vrot.slane %v2932_v37, 7  ;;  %v2942_v29 = vshll.u32 %v2683_v34, 16 }
 0x219   : > { %3109 = vrot.lane.b32.xlu2 %v2926_v25, %s5154_s22  ;;  %v2146_v34 = vrot.slane %v2144_v18, 4  ;;  %v2475_v54 = vsel %vm5649_vm11, %v2473_v15, %v2474_v39  ;;  %v7737_v25 = vrot.slane %v7205_v17, 6  ;;  %v2684_v17 = vld [vmem:[%s5199_s19 + $0x74] sm:$0xf] }
 0x21a   : > { %v4314_v13 = vmul.f32 0.1, %v4229_v57  ;;  %1423 = vrot.lane.b32.xlu1 %v1340_v16, %s5154_s22  ;;  %v7244_v16 = vor.u32 %v1897_v38, %v1894_v7  ;;  %v2944_v18 = vrot.slane %v2942_v29, 7  ;;  %v7258_v22 = vpop.f32.mrf.mxu2  ;;  %v7287_v29 = vld [vmem:[%s5199_s19 + $0x70] sm:$0xf] }
 0x21b   : > { %1421 = vrot.lane.b32.xlu0 %v1337_v62, %s5154_s22  ;;  %v2151_v15 = vsel %vm5649_vm11, %v2149_v2, %v7737_v25  ;;  %v2927_v2 = vrot.slane %v7224_v59, 4  ;;  %v2476_v59 = vrot.slane %v2474_v39, 4  ;;  %v2477_v39 = vrot.slane %v7287_v29, 6 }
 0x21c   : > { %v4350_v19 = vmax.f32 %v4229_v57, %v4314_v13  ;;  %v2251_v43 = vpop.permute.xlu1 %2250  ;;  %v4919_v31 = vld [vmem:[#allocation2 + $0xac] sm:$0xf]  ;;  %v2221_v4 = vpop.permute.xlu2 %2220  ;;  %v2935_v57 = vor.u32 %v2934_v56, %v2931_v24  ;;  %v4036_v24 = vadd.f32 %v7045_v42, %v4035_v8 }
 0x21d   : > { %2327 = vst.msk [vmem:[#allocation2 + $0x178] sm:$0xf] %vm826_vm7, %v2251_v43  ;;  %v4132_v62 = vpop.f32.mrf.mxu1  ;;  %v2249_v5 = vpop.permute.xlu0 %2248  ;;  %v2941_v43 = vrot.slane %v2939_v14, 6 }
 0x21e   : > { %v4978_v27 = vpack.c.bf16 %v4350_v19, %v4349_v53  ;;  %2326 = vst.msk [vmem:[#allocation2 + $0x16c] sm:$0xf] %vm826_vm7, %v2249_v5  ;;  %v4678_v37 = vld [vmem:[#allocation2 + $0xb4] sm:$0xf0]  ;;  %v1899_v19 = vsel %vm6027_vm10, %v1890_v41, %v7244_v16  ;;  %v1556_v53 = vld [vmem:[%s5199_s19 + $0x90] sm:$0xf]  ;;  %v4133_v60 = vadd.f32 %v4132_v62, %v4034_v0 }
 0x21f   : > { %2653 = vst.msk [vmem:[#allocation2 + $0x16c] sm:$0xf] %vm1157_vm8, %v7164_v28  ;;  %v4681_v1 = vor.u32 %v4919_v31, %v4678_v37  ;;  %v1902_v13 = vshrl.u32 %v1556_v53, 16  ;;  %v1905_v28 = vshll.u32 %v1556_v53, 16  ;;  %v2148_v31 = vsel %vm5649_vm11, %v2146_v34, %v2147_v51  ;;  %v7284_v51 = vld [vmem:[%s5199_s19 + $0x6c] sm:$0xf] }
 0x220   : > { %5060 = vst [vmem:[%s7153_s29 + $0x8] sm:$0xff] %v4978_v27   ;;  %v2937_v7 = vrot.slane %v2935_v57, 4  ;;  %v7277_v38 = vor.u32 %v2944_v18, %v2941_v43  ;;  %v4232_v56 = vadd.f32 %v6717_v32, %v4133_v60  ;;  %v1900_v41 = vrot.slane %v7244_v16, 4  ;;  %v4038_v32 = vpop.f32.mrf.mxu0  ;;  %v7304_v37 = vld [vmem:[%s5199_s19 + $0x6c] sm:$0xf] }
 0x221   : > { %4156 = vmatmul.bf16.gmra.mxu1 %v4681_v1  ;;  %2312 = vst.msk [vmem:[#allocation2 + $0xc4] sm:$0xf] %vm826_vm7, %v2221_v4  ;;  %v1904_v14 = vrot.slane %v1902_v13, 5  ;;  %2232 = vrot.lane.b32.xlu2 %v2148_v31, %s5152_s20  ;;  %v1907_v62 = vrot.slane %v1905_v28, 6  ;;  %v1342_v12 = vrot.slane %v7284_v51, 5  ;;  %v2936_v1 = vsel %vm5696_vm14, %v2927_v2, %v2935_v57 }
 0x222   : > { %2559 = vrot.lane.b32.xlu1 %v2475_v54, %s5153_s21  ;;  %1998 = vst.msk [vmem:[#allocation2 + $0x184] sm:$0xf] %vm277_vm3, %v1899_v19  ;;  %v2946_v16 = vsel %vm5696_vm14, %v2937_v7, %v7277_v38  ;;  %v7308_v54 = vpop.f32.mrf.mxu2  ;;  %v4315_v43 = vmul.f32 0.1, %v4232_v56  ;;  %v7314_v18 = vld [vmem:[%s5199_s19 + $0x70] sm:$0xf]  ;;  %v2478_v53 = vsel %vm5649_vm11, %v2476_v59, %v2477_v39 }
 0x223   : > { %2234 = vrot.lane.b32.xlu0 %v2151_v15, %s5152_s20  ;;  %v7296_v27 = vor.u32 %v1907_v62, %v1904_v14  ;;  %v1344_v15 = vrot.slane %v1342_v12, 4  ;;  %v7724_v13 = vrot.slane %v7314_v18, 5  ;;  %v7739_v51 = vrot.slane %v7160_v55, 5 }
 0x224   : > { %v3128_v6 = vpop.permute.xlu1 %3127  ;;  %v7294_v0 = vpop.permute.xlu2 %2549  ;;  %v4351_v31 = vmax.f32 %v4232_v56, %v4315_v43  ;;  %v4039_v62 = vadd.f32 %v7045_v42, %v4038_v32  ;;  %v2949_v32 = vshrl.u32 %v2684_v17, 16 }
 0x225   : > { %3205 = vst.msk [vmem:[#allocation2 + $0x16c] sm:$0xf] %vm1485_vm4, %v3128_v6  ;;  %v4134_v5 = vpop.f32.mrf.mxu1  ;;  %v2578_v34 = vpop.permute.xlu0 %2577  ;;  %v1909_v19 = vsel %vm6027_vm10, %v1900_v41, %v7296_v27  ;;  %v1341_v29 = vrot.slane %v7739_v51, 4  ;;  %v1541_v41 = vld [vmem:[%s5199_s19 + $0x54] sm:$0xf]  ;;  %v1346_v55 = vsel %vm5360_vm6, %v1344_v15, %v7724_v13 }
 0x226   : > { %v4135_v8 = vadd.f32 %v4134_v5, %v4036_v24  ;;  %2654 = vst.msk [vmem:[#allocation2 + $0x178] sm:$0xf] %vm1157_vm8, %v2578_v34  ;;  %v7334_v24 = vld [vmem:[%s5199_s19 + $0x78] sm:$0xf] }
 0x227   : > { %3206 = vst.msk [vmem:[#allocation2 + $0x178] sm:$0xf] %vm1485_vm4, %v7212_v58  ;;  %v7317_v58 = vld [vmem:[%s5199_s19 + $0x74] sm:$0xf]  ;;  %v2483_v15 = vrot.slane %v7334_v24, 6 }
 0x228   : > { %v4234_v4 = vadd.f32 %v6760_v23, %v4135_v8  ;;  %1999 = vst.msk [vmem:[#allocation2 + $0x190] sm:$0xf] %vm277_vm3, %v1909_v19  ;;  %v7738_v23 = vmov %v7737_v25  ;;  %v2153_v25 = vrot.slane %v7304_v37, 6  ;;  %v2480_v28 = vrot.slane %v7317_v58, 6  ;;  %v1542_v19 = vld [vmem:[%s5199_s19 + $0x58] sm:$0xf] }
 0x229   : > { %v2152_v57 = vrot.slane %v7738_v23, 4  ;;  %2561 = vrot.lane.b32.xlu2 %v2478_v53, %s5153_s21  ;;  %v4040_v53 = vpop.f32.mrf.mxu0  ;;  %v1752_v23 = vshrl.u32 %v1541_v41, 16  ;;  %v1765_v13 = vshll.u32 %v1542_v19, 16 }
 0x22a   : > { %v4316_v60 = vmul.f32 0.1, %v4234_v4  ;;  %3113 = vrot.lane.b32.xlu1 %v2946_v16, %s5154_s22  ;;  %v2685_v16 = vld [vmem:[%s5199_s19 + $0x78] sm:$0xf] }
 0x22b   : > { %3111 = vrot.lane.b32.xlu0 %v2936_v1, %s5154_s22  ;;  %v2154_v59 = vsel %vm5649_vm11, %v2152_v57, %v2153_v25  ;;  %v7353_v1 = vpop.f32.mrf.mxu2  ;;  %v1755_v57 = vshll.u32 %v1541_v41, 16  ;;  %v2479_v41 = vrot.slane %v2477_v39, 4 }
 0x22c   : > { %v4352_v14 = vmax.f32 %v4234_v4, %v4316_v60  ;;  %v1412_v7 = vpop.permute.xlu1 %1411  ;;  %v4943_v2 = vld [vmem:[#allocation2 + $0x16c] sm:$0xf]  ;;  %v2253_v8 = vpop.permute.xlu2 %2252  ;;  %v2952_v4 = vshll.u32 %v2684_v17, 16  ;;  %v2482_v60 = vrot.slane %v2480_v28, 4  ;;  %v2962_v17 = vshll.u32 %v2685_v16, 16 }
 0x22d   : > { %1503 = vst.msk [vmem:[#allocation2 + $0xcc] sm:$0xf] %vm1485_vm4, %v1412_v7  ;;  %v1410_v6 = vpop.permute.xlu0 %1409  ;;  %v1343_v7 = vsel %vm5360_vm6, %v1341_v29, %v1342_v12  ;;  %v1757_v51 = vrot.slane %v1755_v57, 6 }
 0x22e   : > { %v4983_v56 = vpack.c.bf16 %v4352_v14, %v4351_v31  ;;  %1502 = vst.msk [vmem:[#allocation2 + $0xc0] sm:$0xf] %vm1485_vm4, %v1410_v6  ;;  %v4137_v5 = vpop.f32.mrf.mxu1  ;;  %v4774_v34 = vld [vmem:[#allocation2 + $0x174] sm:$0xf0]  ;;  %v1762_v31 = vshrl.u32 %v1542_v19, 16  ;;  %v1754_v6 = vrot.slane %v1752_v23, 5  ;;  %v2484_v39 = vsel %vm5649_vm11, %v2482_v60, %v2483_v15 }
 0x22f   : > { %v4777_v43 = vor.u32 %v4943_v2, %v4774_v34  ;;  %2328 = vst.msk [vmem:[#allocation2 + $0x184] sm:$0xf] %vm826_vm7, %v2253_v8  ;;  %v4138_v14 = vadd.f32 %v4137_v5, %v4039_v62  ;;  %v2959_v2 = vshrl.u32 %v2685_v16, 16  ;;  %v2951_v34 = vrot.slane %v2949_v32, 6  ;;  %v7366_v62 = vld [vmem:[%s5199_s19 + $0x70] sm:$0xf] }
 0x230   : > { %5061 = vst [vmem:[%s7153_s29 + $0x10] sm:$0xff] %v4983_v56   ;;  %v4041_v56 = vadd.f32 %v7045_v42, %v4040_v53  ;;  %v2954_v8 = vrot.slane %v2952_v4, 7  ;;  %v1758_v12 = vor.u32 %v1757_v51, %v1754_v6  ;;  %v1764_v29 = vrot.slane %v1762_v31, 5 }
 0x231   : > { %4196 = vmatmul.bf16.gmra.mxu3 %v4777_v43  ;;  %1425 = vrot.lane.b32.xlu2 %v1343_v7, %s5154_s22  ;;  %v4237_v16 = vadd.f32 %v6809_v30, %v4138_v14  ;;  %v2961_v32 = vrot.slane %v2959_v2, 6  ;;  %v2155_v4 = vrot.slane %v2153_v25, 4  ;;  %v2964_v23 = vrot.slane %v2962_v17, 7  ;;  %v1221_v17 = vld [vmem:[%s5199_s19 + $0x74] sm:$0xf] }
 0x232   : > { %2236 = vrot.lane.b32.xlu1 %v2154_v59, %s5152_s20  ;;  %v1750_v59 = vrot.slane %v7201_v36, 4  ;;  %v1760_v57 = vrot.slane %v1758_v12, 4  ;;  %v1767_v31 = vrot.slane %v1765_v13, 6  ;;  %v2955_v7 = vor.u32 %v2954_v8, %v2951_v34 }
 0x233   : > { %1427 = vrot.lane.b32.xlu0 %v1346_v55, %s5154_s22  ;;  %v2156_v60 = vrot.slane %v7366_v62, 6  ;;  %v7384_v2 = vpop.f32.mrf.mxu2  ;;  %v2481_v25 = vsel %vm5649_vm11, %v2479_v41, %v2480_v28  ;;  %v1348_v34 = vrot.slane %v1221_v17, 5  ;;  %v7406_v62 = vor.u32 %v2964_v23, %v2961_v32  ;;  %v4043_v32 = vpop.f32.mrf.mxu0  ;;  %v2686_v23 = vld [vmem:[%s5199_s19 + $0x7c] sm:$0xf] }
 0x234   : > { %v2548_v5 = vpop.permute.xlu1 %2547  ;;  %v4923_v43 = vld [vmem:[#allocation2 + $0xc8] sm:$0xf0]  ;;  %v7379_v30 = vpop.permute.xlu2 %2581  ;;  %v1759_v37 = vsel %vm6027_vm10, %v1750_v59, %v1758_v12  ;;  %v7393_v13 = vor.u32 %v1767_v31, %v1764_v29  ;;  %v2957_v8 = vrot.slane %v2955_v7, 4  ;;  %v2947_v29 = vrot.slane %v7277_v38, 4  ;;  %v1557_v59 = vld [vmem:[%s5199_s19 + $0x94] sm:$0xf] }
 0x235   : > { %2639 = vst.msk [vmem:[#allocation2 + $0xc4] sm:$0xf] %vm1157_vm8, %v2548_v5  ;;  %v2223_v53 = vpop.permute.xlu0 %2222  ;;  %v4688_v55 = vld [vmem:[#allocation2 + $0xc0] sm:$0xf]  ;;  %v2157_v51 = vsel %vm5649_vm11, %v2155_v4, %v2156_v60  ;;  %v2029_v5 = vld [vmem:[%s5199_s19 + $0x74] sm:$0xf] }
 0x236   : > { %2313 = vst.msk [vmem:[#allocation2 + $0xd0] sm:$0xf] %vm826_vm7, %v2223_v53  ;;  %v4139_v19 = vpop.f32.mrf.mxu1  ;;  %v4689_v36 = vor.u32 %v4923_v43, %v4688_v55  ;;  %v1769_v28 = vsel %vm6027_vm10, %v1760_v57, %v7393_v13  ;;  %v1912_v55 = vshrl.u32 %v1557_v59, 16  ;;  %v1558_v38 = vld [vmem:[%s5199_s19 + $0x98] sm:$0x3]  ;;  %v2956_v17 = vsel %vm5696_vm14, %v2947_v29, %v2955_v7 }
 0x237   : > { %2640 = vst.msk [vmem:[#allocation2 + $0xd0] sm:$0xf] %vm1157_vm8, %v7294_v0  ;;  %v4140_v14 = vadd.f32 %v4139_v19, %v4041_v56  ;;  %v4317_v0 = vmul.f32 0.1, %v4237_v16  ;;  %v7740_v56 = vrot.slane %v7314_v18, 5  ;;  %v2966_v19 = vsel %vm5696_vm14, %v2957_v8, %v7406_v62 }
 0x238   : > { %4062 = vmatmul.bf16.gmra.mxu0 %v4689_v36  ;;  %1984 = vst.msk [vmem:[#allocation2 + $0xdc] sm:$0xf] %vm277_vm3, %v1759_v37  ;;  %v2159_v36 = vrot.slane %v2029_v5, 6  ;;  %v1914_v31 = vrot.slane %v1912_v55, 5  ;;  %v1922_v37 = vshrl.u32 %v1558_v38, 16  ;;  %v4044_v55 = vadd.f32 %v7045_v42, %v4043_v32 }
 0x239   : > { %v4239_v6 = vadd.f32 %v6844_v47, %v4140_v14  ;;  %v1347_v58 = vrot.slane %v7740_v56, 4  ;;  %1985 = vst.msk [vmem:[#allocation2 + $0xe8] sm:$0xf] %vm277_vm3, %v1769_v28  ;;  %2238 = vrot.lane.b32.xlu2 %v2157_v51, %s5152_s20  ;;  %v4353_v18 = vmax.f32 %v4237_v16, %v4317_v0  ;;  %v2972_v28 = vshll.u32 %v2686_v23, 16  ;;  %v2359_v5 = vld [vmem:[%s5199_s19 + $0x7c] sm:$0xf] }
 0x23a   : > { %2565 = vrot.lane.b32.xlu1 %v2484_v39, %s5153_s21  ;;  %v1915_v39 = vshll.u32 %v1557_v59, 16  ;;  %v2161_v56 = vrot.slane %v2159_v36, 4  ;;  %v1350_v59 = vrot.slane %v1348_v34, 4 }
 0x23b   : > { %v4318_v41 = vmul.f32 0.1, %v4239_v6  ;;  %2563 = vrot.lane.b32.xlu0 %v2481_v25, %s5153_s21  ;;  %v1349_v16 = vsel %vm5360_vm6, %v1347_v58, %v1348_v34  ;;  %v1925_v25 = vshll.u32 %v1558_v38, 16  ;;  %v2969_v58 = vshrl.u32 %v2686_v23, 16 }
 0x23c   : > { %v3102_v47 = vpop.permute.xlu1 %3101  ;;  %v1414_v53 = vpop.permute.xlu2 %1413  ;;  %v1917_v14 = vrot.slane %v1915_v39, 6  ;;  %v2974_v38 = vrot.slane %v2972_v28, 7 }
 0x23d   : > { %v4354_v43 = vmax.f32 %v4239_v6, %v4318_v41  ;;  %3192 = vst.msk [vmem:[#allocation2 + $0xd0] sm:$0xf] %vm1485_vm4, %v3102_v47  ;;  %v3100_v12 = vpop.permute.xlu0 %3099  ;;  %v7423_v57 = vpop.f32.mrf.mxu2  ;;  %v1924_v6 = vrot.slane %v1922_v37, 5  ;;  %v1927_v51 = vrot.slane %v1925_v25, 6  ;;  %v2158_v47 = vrot.slane %v2156_v60, 4 }
 0x23e   : > { %3191 = vst.msk [vmem:[#allocation2 + $0xc4] sm:$0xf] %vm1485_vm4, %v3100_v12  ;;  %v1918_v0 = vor.u32 %v1917_v14, %v1914_v31  ;;  %v2971_v34 = vrot.slane %v2969_v58, 6  ;;  %v2486_v31 = vrot.slane %v2359_v5, 6  ;;  %v4045_v14 = vpop.f32.mrf.mxu0  ;;  %v7456_v25 = vpop.f32.mrf.mxu3  ;;  %v2485_v58 = vrot.slane %v2483_v15, 4 }
 0x23f   : > { %v4988_v4 = vpack.c.bf16 %v4354_v43, %v4353_v18  ;;  %1504 = vst.msk [vmem:[#allocation2 + $0xd8] sm:$0xf] %vm1485_vm4, %v1414_v53  ;;  %v1928_v43 = vor.u32 %v1927_v51, %v1924_v6  ;;  %v1910_v53 = vrot.slane %v7296_v27, 4  ;;  %v2160_v23 = vsel %vm5649_vm11, %v2158_v47, %v2159_v36 }
 0x240   : > { %v1920_v18 = vrot.slane %v1918_v0, 4  ;;  %v2967_v36 = vrot.slane %v7406_v62, 4  ;;  %v2488_v6 = vrot.slane %v2486_v31, 4  ;;  %v7743_v47 = vrot.slane %v6347_v46, 6 }
 0x241   : > { %5062 = vst [vmem:[%s7153_s29 + $0x18] sm:$0xff] %v4988_v4   ;;  %3115 = vrot.lane.b32.xlu2 %v2956_v17, %s5154_s22  ;;  %v1919_v27 = vsel %vm6027_vm10, %v1910_v53, %v1918_v0  ;;  %v2975_v17 = vor.u32 %v2974_v38, %v2971_v34  ;;  %v2487_v24 = vsel %vm5649_vm11, %v2485_v58, %v2486_v31  ;;  %v1543_v53 = vld [vmem:[%s5199_s19 + $0x5c] sm:$0xf] }
 0x242   : > { %1429 = vrot.lane.b32.xlu1 %v1349_v16, %s5154_s22  ;;  %v1929_v60 = vsel %vm6027_vm10, %v1920_v18, %v1928_v43  ;;  %v7741_v16 = vrot.slane %v6290_v21, 6  ;;  %2000 = vst.msk [vmem:[#allocation2 + $0x19c] sm:$0xf] %vm277_vm3, %v1919_v27  ;;  %v2490_v5 = vsel %vm5649_vm11, %v2488_v6, %v7743_v47  ;;  %v3242_v47 = vld [vmem:[%s5199_s19 + $0x8c] sm:$0xf] }
 0x243   : > { %3117 = vrot.lane.b32.xlu0 %v2966_v19, %s5154_s22  ;;  %2001 = vst.msk [vmem:[#allocation2 + $0x1a8] sm:$0xf] %vm277_vm3, %v1929_v60  ;;  %v2977_v48 = vrot.slane %v2975_v17, 4  ;;  %v1544_v60 = vld [vmem:[%s5199_s19 + $0x60] sm:$0xf] }
 0x244   : > { %v2580_v41 = vpop.permute.xlu1 %2579  ;;  %v4690_v8 = vld [vmem:[#allocation2 + $0xcc] sm:$0xf0]  ;;  %v2227_v4 = vpop.permute.xlu2 %2226  ;;  %v2163_v19 = vsel %vm5649_vm11, %v2161_v56, %v7741_v16  ;;  %v1772_v16 = vshrl.u32 %v1543_v53, 16  ;;  %v1782_v34 = vshrl.u32 %v1544_v60, 16  ;;  %v1785_v38 = vshll.u32 %v1544_v60, 16 }
 0x245   : > { %2655 = vst.msk [vmem:[#allocation2 + $0x184] sm:$0xf] %vm1157_vm8, %v2580_v41  ;;  %v4142_v7 = vpop.f32.mrf.mxu1  ;;  %v2255_v12 = vpop.permute.xlu0 %2254  ;;  %v4922_v29 = vld [vmem:[#allocation2 + $0xc4] sm:$0xf]  ;;  %v2976_v41 = vsel %vm5696_vm14, %v2967_v36, %v2975_v17  ;;  %v2986_v31 = vsel %vm5696_vm14, %v2977_v48, %v6425_v49  ;;  %v1770_v17 = vrot.slane %v7393_v13, 4 }
 0x246   : > { %2329 = vst.msk [vmem:[#allocation2 + $0x190] sm:$0xf] %vm826_vm7, %v2255_v12  ;;  %v4693_v39 = vor.u32 %v4922_v29, %v4690_v8  ;;  %v4143_v32 = vadd.f32 %v4142_v7, %v4044_v55  ;;  %v7453_v37 = vpop.f32.mrf.mxu2  ;;  %v7482_v43 = vpop.f32.mrf.mxu3 }
 0x247   : > { %2656 = vst.msk [vmem:[#allocation2 + $0x190] sm:$0xf] %vm1157_vm8, %v7379_v30  ;;  %v7742_v30 = vrot.slane %v5784_v44, 5  ;;  %v4046_v44 = vadd.f32 %v7045_v42, %v4045_v14  ;;  %v1784_v14 = vrot.slane %v1782_v34, 5 }
 0x248   : > { %4161 = vmatmul.bf16.gmra.mxu1 %v4693_v39  ;;  %2315 = vst.msk [vmem:[#allocation2 + $0xe8] sm:$0xf] %vm826_vm7, %v2227_v4  ;;  %v4242_v50 = vadd.f32 %v6908_v33, %v4143_v32  ;;  %v1774_v32 = vrot.slane %v1772_v16, 5  ;;  %v1545_v16 = vld [vmem:[%s5199_s19 + $0x64] sm:$0xf] }
 0x249   : > { %v1352_v21 = vsel %vm5360_vm6, %v1350_v59, %v7742_v30  ;;  %v1787_v30 = vrot.slane %v1785_v38, 6  ;;  %v1795_v34 = vshll.u32 %v1545_v16, 16 }
 0x24a   : > { %2242 = vrot.lane.b32.xlu1 %v2163_v19, %s5152_s20  ;;  %1431 = vrot.lane.b32.xlu2 %v1352_v21, %s5154_s22  ;;  %v4319_v8 = vmul.f32 0.1, %v4242_v50  ;;  %v1775_v19 = vshll.u32 %v1543_v53, 16 }
 0x24b   : > { %2240 = vrot.lane.b32.xlu0 %v2160_v23, %s5152_s20  ;;  %v7494_v36 = vor.u32 %v1787_v30, %v1784_v14 }
 0x24c   : > { %v3134_v0 = vpop.permute.xlu1 %3133  ;;  %v3104_v62 = vpop.permute.xlu2 %3103  ;;  %v1777_v23 = vrot.slane %v1775_v19, 6  ;;  %v1792_v19 = vshrl.u32 %v1545_v16, 16 }
 0x24d   : > { %3208 = vst.msk [vmem:[#allocation2 + $0x190] sm:$0xf] %vm1485_vm4, %v3134_v0  ;;  %v4144_v51 = vpop.f32.mrf.mxu1  ;;  %v3132_v56 = vpop.permute.xlu0 %3131  ;;  %v1790_v30 = vrot.slane %v7494_v36, 4 }
 0x24e   : > { %v4145_v28 = vadd.f32 %v4144_v51, %v4046_v44  ;;  %3207 = vst.msk [vmem:[#allocation2 + $0x184] sm:$0xf] %vm1485_vm4, %v3132_v56  ;;  %v7480_v18 = vpop.f32.mrf.mxu2  ;;  %v4048_v27 = vpop.f32.mrf.mxu0  ;;  %v1778_v21 = vor.u32 %v1777_v23, %v1774_v32  ;;  %v4700_v51 = vld [vmem:[#allocation2 + $0xd8] sm:$0xf]  ;;  %v1794_v32 = vrot.slane %v1792_v19, 5  ;;  %v1797_v23 = vrot.slane %v1795_v34, 6 }
 0x24f   : > { %v7497_v44 = vpop.f32.mrf.mxu3 }
 0x250   : > { %v4244_v33 = vadd.f32 %v6940_v40, %v4145_v28  ;;  %v4355_v40 = vmax.f32 %v4242_v50, %v4319_v8  ;;  %v1780_v0 = vrot.slane %v1778_v21, 4  ;;  %v4049_v8 = vadd.f32 %v7045_v42, %v4048_v27  ;;  %v7520_v42 = vld [vmem:[%s7717_s2] ss:$0 sm:$0xff] }
 0x252   : > { %v4320_v15 = vmul.f32 0.1, %v4244_v33  ;;  %3119 = vrot.lane.b32.xlu1 %v2976_v41, %s5154_s22  ;;  %2567 = vrot.lane.b32.xlu2 %v2487_v24, %s5153_s21  ;;  %v1789_v28 = vsel %vm6027_vm10, %v1780_v0, %v7494_v36  ;;  %v1779_v41 = vsel %vm6027_vm10, %v1770_v17, %v1778_v21  ;;  %v1798_v21 = vor.u32 %v1797_v23, %v1794_v32 }
 0x253   : > { %2569 = vrot.lane.b32.xlu0 %v2490_v5, %s5153_s21  ;;  %1987 = vst.msk [vmem:[#allocation2 + $0x100] sm:$0xf] %vm277_vm3, %v1789_v28  ;;  %v7744_v5 = vrot.slane %v6975_v3, 7 }
 0x254   : > { %v4356_v7 = vmax.f32 %v4244_v33, %v4320_v15  ;;  %v2225_v46 = vpop.permute.xlu1 %2224  ;;  %v4786_v12 = vld [vmem:[#allocation2 + $0x18c] sm:$0xf0]  ;;  %v2259_v4 = vpop.permute.xlu2 %2258  ;;  %1986 = vst.msk [vmem:[#allocation2 + $0xf4] sm:$0xf] %vm277_vm3, %v1779_v41 }
 0x255   : > { %2314 = vst.msk [vmem:[#allocation2 + $0xdc] sm:$0xf] %vm826_vm7, %v2225_v46  ;;  %v1416_v29 = vpop.permute.xlu0 %1415  ;;  %v4946_v59 = vld [vmem:[#allocation2 + $0x184] sm:$0xf]  ;;  %v3379_v24 = vrot.slane %v7744_v5, 4 }
 0x256   : > { %v4993_v55 = vpack.c.bf16 %v4356_v7, %v4355_v40  ;;  %1505 = vst.msk [vmem:[#allocation2 + $0xe4] sm:$0xf] %vm1485_vm4, %v1416_v29  ;;  %v4789_v39 = vor.u32 %v4946_v59, %v4786_v12  ;;  %v7501_v49 = vpop.f32.mrf.mxu2  ;;  %v4050_v15 = vpop.f32.mrf.mxu0  ;;  %v3380_v40 = vrot.slane %v3242_v47, 7  ;;  %v3243_v7 = vld [vmem:[%s5199_s19 + $0x90] sm:$0xf] }
 0x257   : > { %2331 = vst.msk [vmem:[#allocation2 + $0x1a8] sm:$0xf] %vm826_vm7, %v2259_v4  ;;  %v3383_v48 = vrot.slane %v3243_v7, 7  ;;  %v7530_v4 = vpop.f32.mrf.mxu3  ;;  %v3244_v5 = vld [vmem:[%s5199_s19 + $0x94] sm:$0xf] }
 0x258   : > { %5063 = vst [vmem:[%s7153_s29 + $0x20] sm:$0xff] %v4993_v55   ;;  %4201 = vmatmul.bf16.gmra.mxu3 %v4789_v39  ;;  %v3382_v12 = vrot.slane %v3380_v40, 4  ;;  %v3381_v55 = vsel %vm5737_vm1, %v3379_v24, %v3380_v40  ;;  %v1800_v40 = vrot.slane %v1798_v21, 4 }
 0x259   : > { %3463 = vst.msk [vmem:[#allocation2 + $0x170] sm:$0xf] %vm277_vm3, %v3381_v55 }
 0x25a   : > { %3121 = vrot.lane.b32.xlu2 %v2986_v31, %s5154_s22  ;;  %v3384_v39 = vsel %vm5737_vm1, %v3382_v12, %v3383_v48 }
 0x25b   : > { %3464 = vst.msk [vmem:[#allocation2 + $0x17c] sm:$0xf] %vm277_vm3, %v3384_v39 }
 0x25c   : > { %v2554_v50 = vpop.permute.xlu1 %2553  ;;  %v3136_v13 = vpop.permute.xlu2 %3135 }
 0x25d   : > { %2642 = vst.msk [vmem:[#allocation2 + $0xe8] sm:$0xf] %vm1157_vm8, %v2554_v50  ;;  %v2552_v6 = vpop.permute.xlu0 %2551  ;;  %v4926_v35 = vld [vmem:[#allocation2 + $0xe0] sm:$0xf0] }
 0x25e   : > { %2641 = vst.msk [vmem:[#allocation2 + $0xdc] sm:$0xf] %vm1157_vm8, %v2552_v6  ;;  %v4147_v56 = vpop.f32.mrf.mxu1  ;;  %v4701_v58 = vor.u32 %v4926_v35, %v4700_v51 }
 0x25f   : > { %3193 = vst.msk [vmem:[#allocation2 + $0xdc] sm:$0xf] %vm1485_vm4, %v3104_v62  ;;  %v4148_v33 = vadd.f32 %v4147_v56, %v4049_v8  ;;  %v4051_v62 = vadd.f32 %v7520_v42, %v4050_v15  ;;  %v1799_v56 = vsel %vm6027_vm10, %v1790_v30, %v1798_v21  ;;  %v7545_v36 = vpop.f32.mrf.mxu3  ;;  %v3386_v15 = vrot.slane %v3244_v5, 7  ;;  %v1547_v30 = vld [vmem:[%s5199_s19 + $0x6c] sm:$0xf] }
 0x260   : > { %4067 = vmatmul.bf16.gmra.mxu0 %v4701_v58  ;;  %v1546_v58 = vld [vmem:[%s5199_s19 + $0x68] sm:$0xf]  ;;  %1988 = vst.msk [vmem:[#allocation2 + $0x10c] sm:$0xf] %vm277_vm3, %v1799_v56 }
 0x261   : > { %v4247_v29 = vadd.f32 %v6988_v45, %v4148_v33  ;;  %v7534_v45 = vpop.f32.mrf.mxu2  ;;  %v1802_v41 = vshrl.u32 %v1546_v58, 16  ;;  %v1805_v8 = vshll.u32 %v1546_v58, 16 }
 0x263   : > { %v4321_v38 = vmul.f32 0.1, %v4247_v29  ;;  %v1804_v33 = vrot.slane %v1802_v41, 5  ;;  %v1807_v47 = vrot.slane %v1805_v8, 6 }
 0x264   : > { %v2257_v46 = vpop.permute.xlu1 %2256  ;;  %v1420_v53 = vpop.permute.xlu2 %1419 }
 0x265   : > { %2330 = vst.msk [vmem:[#allocation2 + $0x19c] sm:$0xf] %vm826_vm7, %v2257_v46  ;;  %v3106_v3 = vpop.permute.xlu0 %3105  ;;  %v4357_v17 = vmax.f32 %v4247_v29, %v4321_v38  ;;  %v7553_v7 = vor.u32 %v1807_v47, %v1804_v33  ;;  %v3245_v46 = vld [vmem:[%s5199_s19 + $0x98] sm:$0xf]  ;;  %v3388_v29 = vrot.slane %v3386_v15, 4 }
 0x266   : > { %3194 = vst.msk [vmem:[#allocation2 + $0xe8] sm:$0xf] %vm1485_vm4, %v3106_v3  ;;  %v4149_v59 = vpop.f32.mrf.mxu1  ;;  %v4925_v6 = vld [vmem:[#allocation2 + $0xdc] sm:$0xf] }
 0x267   : > { %v4150_v60 = vadd.f32 %v4149_v59, %v4051_v62  ;;  %1507 = vst.msk [vmem:[#allocation2 + $0xfc] sm:$0xf] %vm1485_vm4, %v1420_v53  ;;  %v3385_v62 = vrot.slane %v3383_v48, 4  ;;  %v1809_v59 = vsel %vm6027_vm10, %v1800_v40, %v7553_v7  ;;  %v3246_v47 = vld [vmem:[%s5199_s19 + $0x9c] sm:$0xf] }
 0x268   : > { %1989 = vst.msk [vmem:[#allocation2 + $0x118] sm:$0xf] %vm277_vm3, %v1809_v59  ;;  %v1810_v59 = vrot.slane %v7553_v7, 4 }
 0x269   : > { %v4249_v27 = vadd.f32 %v7030_v26, %v4150_v60  ;;  %v7551_v24 = vpop.f32.mrf.mxu2  ;;  %v3387_v39 = vsel %vm5737_vm1, %v3385_v62, %v3386_v15  ;;  %v7567_v60 = vpop.f32.mrf.mxu3  ;;  %v3392_v15 = vrot.slane %v3246_v47, 7 }
 0x26a   : > { %3465 = vst.msk [vmem:[#allocation2 + $0x188] sm:$0xf] %vm277_vm3, %v3387_v39 }
 0x26b   : > { %v4322_v31 = vmul.f32 0.1, %v4249_v27 }
 0x26c   : > { %v2586_v14 = vpop.permute.xlu1 %2585  ;;  %v2556_v35 = vpop.permute.xlu2 %2555 }
 0x26d   : > { %v4358_v50 = vmax.f32 %v4249_v27, %v4322_v31  ;;  %2658 = vst.msk [vmem:[#allocation2 + $0x1a8] sm:$0xf] %vm1157_vm8, %v2586_v14  ;;  %v2584_v0 = vpop.permute.xlu0 %2583  ;;  %v4702_v51 = vld [vmem:[#allocation2 + $0xe4] sm:$0xf0]  ;;  %v4053_v53 = vpop.f32.mrf.mxu0 }
 0x26e   : > { %2657 = vst.msk [vmem:[#allocation2 + $0x19c] sm:$0xf] %vm1157_vm8, %v2584_v0  ;;  %v4705_v26 = vor.u32 %v4925_v6, %v4702_v51  ;;  %v4929_v16 = vld [vmem:[#allocation2 + $0xf8] sm:$0xf0]  ;;  %v4054_v21 = vadd.f32 %v7520_v42, %v4053_v53  ;;  %v1812_v0 = vshrl.u32 %v1547_v30, 16  ;;  %v1815_v6 = vshll.u32 %v1547_v30, 16 }
 0x26f   : > { %v4998_v28 = vpack.c.bf16 %v4358_v50, %v4357_v17  ;;  %3209 = vst.msk [vmem:[#allocation2 + $0x19c] sm:$0xf] %vm1485_vm4, %v3136_v13  ;;  %v3389_v13 = vrot.slane %v3245_v46, 7  ;;  %v1548_v51 = vld [vmem:[%s5199_s19 + $0x70] sm:$0xf] }
 0x270   : > { %4166 = vmatmul.bf16.gmra.mxu1 %v4705_v26  ;;  %v1814_v58 = vrot.slane %v1812_v0, 5  ;;  %v1822_v8 = vshrl.u32 %v1548_v51, 16  ;;  %v1825_v33 = vshll.u32 %v1548_v51, 16 }
 0x271   : > { %5064 = vst [vmem:[%s7153_s29 + $0x28] sm:$0xff] %v4998_v28   ;;  %v3390_v48 = vsel %vm5737_vm1, %v3388_v29, %v3389_v13  ;;  %v7570_v27 = vpop.f32.mrf.mxu2  ;;  %v1817_v28 = vrot.slane %v1815_v6, 6  ;;  %v7579_v41 = vpop.f32.mrf.mxu3  ;;  %v3391_v53 = vrot.slane %v3389_v13, 4 }
 0x272   : > { %3466 = vst.msk [vmem:[#allocation2 + $0x194] sm:$0xf] %vm277_vm3, %v3390_v48  ;;  %v1827_v46 = vrot.slane %v1825_v33, 6 }
 0x273   : > { %v1818_v5 = vor.u32 %v1817_v28, %v1814_v58  ;;  %v3393_v13 = vsel %vm5737_vm1, %v3391_v53, %v3392_v15 }
 0x274   : > { %v1418_v12 = vpop.permute.xlu1 %1417  ;;  %v3110_v55 = vpop.permute.xlu2 %3109  ;;  %3467 = vst.msk [vmem:[#allocation2 + $0x1a0] sm:$0xf] %vm277_vm3, %v3393_v13 }
 0x275   : > { %1506 = vst.msk [vmem:[#allocation2 + $0xf0] sm:$0xf] %vm1485_vm4, %v1418_v12  ;;  %v3138_v3 = vpop.permute.xlu0 %3137  ;;  %v4055_v26 = vpop.f32.mrf.mxu0  ;;  %v3247_v12 = vld [vmem:[%s5199_s19 + $0xa0] sm:$0x7] }
 0x276   : > { %3210 = vst.msk [vmem:[#allocation2 + $0x1a8] sm:$0xf] %vm1485_vm4, %v3138_v3  ;;  %v4949_v38 = vld [vmem:[#allocation2 + $0x19c] sm:$0xf]  ;;  %v4056_v40 = vadd.f32 %v7520_v42, %v4055_v26  ;;  %v1820_v3 = vrot.slane %v1818_v5, 4 }
 0x27c   : > { %v2231_v19 = vpop.permute.xlu1 %2230  ;;  %v4712_v34 = vld [vmem:[#allocation2 + $0xf0] sm:$0xf]  ;;  %v2233_v50 = vpop.permute.xlu2 %2232 }
 0x27d   : > { %2317 = vst.msk [vmem:[#allocation2 + $0x100] sm:$0xf] %vm826_vm7, %v2231_v19  ;;  %v4152_v32 = vpop.f32.mrf.mxu1  ;;  %v2229_v23 = vpop.permute.xlu0 %2228  ;;  %v4713_v31 = vor.u32 %v4929_v16, %v4712_v34  ;;  %v4798_v14 = vld [vmem:[#allocation2 + $0x1a4] sm:$0xf0]  ;;  %v3394_v19 = vrot.slane %v3392_v15, 4  ;;  %v3395_v34 = vrot.slane %v3247_v12, 7 }
 0x27e   : > { %2316 = vst.msk [vmem:[#allocation2 + $0xf4] sm:$0xf] %vm826_vm7, %v2229_v23  ;;  %v4801_v17 = vor.u32 %v4949_v38, %v4798_v14  ;;  %v4153_v56 = vadd.f32 %v4152_v32, %v4054_v21  ;;  %v7593_v23 = vpop.f32.mrf.mxu2  ;;  %v4780_v21 = vld [vmem:[#allocation2 + $0x170] sm:$0xf]  ;;  %v1549_v12 = vld [vmem:[%s5199_s19 + $0x74] sm:$0xf] }
 0x27f   : > { %2643 = vst.msk [vmem:[#allocation2 + $0xf4] sm:$0xf] %vm1157_vm8, %v2556_v35  ;;  %4072 = vmatmul.bf16.gmra.mxu0 %v4713_v31  ;;  %v1824_v35 = vrot.slane %v1822_v8, 5  ;;  %v3396_v30 = vsel %vm5737_vm1, %v3394_v19, %v3395_v34  ;;  %v1835_v53 = vshll.u32 %v1549_v12, 16  ;;  %v4792_v19 = vld [vmem:[#allocation2 + $0x188] sm:$0xf] }
 0x280   : > { %4206 = vmatmul.bf16.gmra.mxu3 %v4801_v17  ;;  %2318 = vst.msk [vmem:[#allocation2 + $0x10c] sm:$0xf] %vm826_vm7, %v2233_v50  ;;  %v4252_v62 = vadd.f32 %v7075_v52, %v4153_v56  ;;  %v1819_v52 = vsel %vm6027_vm10, %v1810_v59, %v1818_v5  ;;  %v4945_v17 = vld [vmem:[#allocation2 + $0x178] sm:$0xf0]  ;;  %v7606_v50 = vpop.f32.mrf.mxu3  ;;  %v4094_v5 = vadd.f32 %v7520_v42, %v7456_v25  ;;  %v1832_v59 = vshrl.u32 %v1549_v12, 16 }
 0x281   : > { %v7587_v16 = vor.u32 %v1827_v46, %v1824_v35  ;;  %1990 = vst.msk [vmem:[#allocation2 + $0x124] sm:$0xf] %vm277_vm3, %v1819_v52  ;;  %v4781_v51 = vor.u32 %v4945_v17, %v4780_v21  ;;  %v4948_v34 = vld [vmem:[#allocation2 + $0x190] sm:$0xf0] }
 0x282   : > { %v4323_v31 = vmul.f32 0.1, %v4252_v62  ;;  %3468 = vst.msk [vmem:[#allocation2 + $0x1ac] sm:$0xf] %vm277_vm3, %v3396_v30  ;;  %v1834_v25 = vrot.slane %v1832_v59, 5 }
 0x283   : > { %v1829_v7 = vsel %vm6027_vm10, %v1820_v3, %v7587_v16  ;;  %v4804_v59 = vld [vmem:[#allocation2 + $0x1a0] sm:$0xf] }
 0x284   : > { %v3108_v29 = vpop.permute.xlu1 %3107  ;;  %v2562_v32 = vpop.permute.xlu2 %2561  ;;  %1991 = vst.msk [vmem:[#allocation2 + $0x130] sm:$0xf] %vm277_vm3, %v1829_v7  ;;  %v4359_v0 = vmax.f32 %v4252_v62, %v4323_v31 }
 0x285   : > { %3195 = vst.msk [vmem:[#allocation2 + $0xf4] sm:$0xf] %vm1485_vm4, %v3108_v29  ;;  %v4154_v39 = vpop.f32.mrf.mxu1  ;;  %v2558_v48 = vpop.permute.xlu0 %2557 }
 0x286   : > { %v4155_v38 = vadd.f32 %v4154_v39, %v4056_v40  ;;  %2644 = vst.msk [vmem:[#allocation2 + $0x100] sm:$0xf] %vm1157_vm8, %v2558_v48  ;;  %v4291_v33 = vpop.f32.mrf.mxu2  ;;  %v1837_v48 = vrot.slane %v1835_v53, 6 }
 0x287   : > { %3196 = vst.msk [vmem:[#allocation2 + $0x100] sm:$0xf] %vm1485_vm4, %v3110_v55 }
 0x288   : > { %v4254_v14 = vadd.f32 %v7118_v61, %v4155_v38  ;;  %v4096_v38 = vadd.f32 %v7520_v42, %v7482_v43  ;;  %v1838_v7 = vor.u32 %v1837_v48, %v1834_v25 }
 0x28a   : > { %v4324_v55 = vmul.f32 0.1, %v4254_v14  ;;  %v1840_v17 = vrot.slane %v1838_v7, 4 }
 0x28c   : > { %v4360_v6 = vmax.f32 %v4254_v14, %v4324_v55  ;;  %v1424_v61 = vpop.permute.xlu1 %1423  ;;  %v4928_v26 = vld [vmem:[#allocation2 + $0xf4] sm:$0xf]  ;;  %v1426_v28 = vpop.permute.xlu2 %1425  ;;  %v1830_v14 = vrot.slane %v7587_v16, 4  ;;  %v1849_v16 = vsel %vm6027_vm10, %v1840_v17, %v6863_v20 }
 0x28d   : > { %1509 = vst.msk [vmem:[#allocation2 + $0x114] sm:$0xf] %vm1485_vm4, %v1424_v61  ;;  %v1422_v10 = vpop.permute.xlu0 %1421  ;;  %v4058_v39 = vpop.f32.mrf.mxu0 }
 0x28e   : > { %v5003_v56 = vpack.c.bf16 %v4360_v6, %v4359_v0  ;;  %1508 = vst.msk [vmem:[#allocation2 + $0x108] sm:$0xf] %vm1485_vm4, %v1422_v10  ;;  %v4714_v58 = vld [vmem:[#allocation2 + $0xfc] sm:$0xf0]  ;;  %v4293_v31 = vpop.f32.mrf.mxu2  ;;  %v1839_v0 = vsel %vm6027_vm10, %v1830_v14, %v1838_v7 }
 0x28f   : > { %v4717_v8 = vor.u32 %v4928_v26, %v4714_v58  ;;  %1510 = vst.msk [vmem:[#allocation2 + $0x120] sm:$0xf] %vm1485_vm4, %v1426_v28  ;;  %v4059_v26 = vadd.f32 %v7520_v42, %v4058_v39 }
 0x290   : > { %5065 = vst [vmem:[%s7153_s29 + $0x30] sm:$0xff] %v5003_v56   ;;  %4893 = vmatmul.msk.bf16.vlgmr.msra.gmra.mxu3 %vm3959_vm2, %v4781_v51 }
 0x291   : > { %4171 = vmatmul.bf16.gmra.mxu1 %v4717_v8  ;;  %1992 = vst.msk [vmem:[#allocation2 + $0x13c] sm:$0xf] %vm277_vm3, %v1839_v0 }
 0x292   : > { %1993 = vst.msk [vmem:[#allocation2 + $0x148] sm:$0xf] %vm277_vm3, %v1849_v16 }
 0x293   : > { %v4192_v47 = vpop.f32.mrf.mxu3 }
 0x294   : > { %v2560_v15 = vpop.permute.xlu1 %2559  ;;  %v4932_v40 = vld [vmem:[#allocation2 + $0x110] sm:$0xf0]  ;;  %v4193_v62 = vadd.f32 %v4192_v47, %v4094_v5  ;;  %v2239_v3 = vpop.permute.xlu2 %2238 }
 0x295   : > { %2645 = vst.msk [vmem:[#allocation2 + $0x10c] sm:$0xf] %vm1157_vm8, %v2560_v15  ;;  %v2235_v35 = vpop.permute.xlu0 %2234  ;;  %v4724_v46 = vld [vmem:[#allocation2 + $0x108] sm:$0xf]  ;;  %v4060_v28 = vpop.f32.mrf.mxu0 }
 0x296   : > { %2319 = vst.msk [vmem:[#allocation2 + $0x118] sm:$0xf] %vm826_vm7, %v2235_v35  ;;  %v4725_v29 = vor.u32 %v4932_v40, %v4724_v46  ;;  %v4292_v52 = vadd.f32 %v4291_v33, %v4193_v62  ;;  %v4061_v63 = vadd.f32 %v7520_v42, %v4060_v28 }
 0x297   : > { %2646 = vst.msk [vmem:[#allocation2 + $0x118] sm:$0xf] %vm1157_vm8, %v2562_v32  ;;  %v4793_v32 = vor.u32 %v4948_v34, %v4792_v19 }
 0x298   : > { %4077 = vmatmul.bf16.gmra.mxu0 %v4725_v29  ;;  %2321 = vst.msk [vmem:[#allocation2 + $0x130] sm:$0xf] %vm826_vm7, %v2239_v3  ;;  %v4339_v6 = vmul.f32 0.1, %v4292_v52 }
 0x29a   : > { %v4375_v58 = vmax.f32 %v4292_v52, %v4339_v6 }
 0x29b   : > { %v4194_v13 = vpop.f32.mrf.mxu3 }
 0x29c   : > { %v4195_v30 = vadd.f32 %v4194_v13, %v4096_v38  ;;  %v3114_v21 = vpop.permute.xlu1 %3113  ;;  %v3116_v51 = vpop.permute.xlu2 %3115  ;;  %v4736_v38 = vld [vmem:[#allocation2 + $0x120] sm:$0xf] }
 0x29d   : > { %3198 = vst.msk [vmem:[#allocation2 + $0x118] sm:$0xf] %vm1485_vm4, %v3114_v21  ;;  %v3112_v55 = vpop.permute.xlu0 %3111 }
 0x29e   : > { %v4294_v61 = vadd.f32 %v4293_v31, %v4195_v30  ;;  %3197 = vst.msk [vmem:[#allocation2 + $0x10c] sm:$0xf] %vm1485_vm4, %v3112_v55  ;;  %v4157_v43 = vpop.f32.mrf.mxu1 }
 0x29f   : > { %v4158_v56 = vadd.f32 %v4157_v43, %v4059_v26 }
 0x2a0   : > { %v4340_v10 = vmul.f32 0.1, %v4294_v61  ;;  %4894 = vmatmul.msk.bf16.gmra.mxu3 %vm3959_vm2, %v4793_v32 }
 0x2a1   : > { %v4257_v20 = vadd.f32 %v7172_v11, %v4158_v56  ;;  %v4951_v11 = vld [vmem:[#allocation2 + $0x1a8] sm:$0xf0] }
 0x2a2   : > { %v4376_v8 = vmax.f32 %v4294_v61, %v4340_v10  ;;  %v4805_v25 = vor.u32 %v4951_v11, %v4804_v59 }
 0x2a3   : > { %v4325_v29 = vmul.f32 0.1, %v4257_v20 }
 0x2a4   : > { %v5043_v33 = vpack.c.bf16 %v4376_v8, %v4375_v58  ;;  %v2237_v47 = vpop.permute.xlu1 %2236  ;;  %v4726_v5 = vld [vmem:[#allocation2 + $0x114] sm:$0xf0]  ;;  %v1432_v12 = vpop.permute.xlu2 %1431 }
 0x2a5   : > { %2320 = vst.msk [vmem:[#allocation2 + $0x124] sm:$0xf] %vm826_vm7, %v2237_v47  ;;  %v1428_v15 = vpop.permute.xlu0 %1427  ;;  %v4931_v40 = vld [vmem:[#allocation2 + $0x10c] sm:$0xf]  ;;  %v4361_v48 = vmax.f32 %v4257_v20, %v4325_v29 }
 0x2a6   : > { %5073 = vst [vmem:[%s7153_s29 + $0x70] sm:$0xff] %v5043_v33   ;;  %v4159_v35 = vpop.f32.mrf.mxu1  ;;  %v4729_v46 = vor.u32 %v4931_v40, %v4726_v5 }
 0x2a7   : > { %1511 = vst.msk [vmem:[#allocation2 + $0x12c] sm:$0xf] %vm1485_vm4, %v1428_v15  ;;  %v4160_v62 = vadd.f32 %v4159_v35, %v4061_v63 }
 0x2a8   : > { %4176 = vmatmul.bf16.gmra.mxu1 %v4729_v46  ;;  %1513 = vst.msk [vmem:[#allocation2 + $0x144] sm:$0xf] %vm1485_vm4, %v1432_v12 }
 0x2a9   : > { %v4259_v3 = vadd.f32 %v7226_v9, %v4160_v62 }
 0x2ab   : > { %v4326_v53 = vmul.f32 0.1, %v4259_v3 }
 0x2ac   : > { %v2566_v39 = vpop.permute.xlu1 %2565  ;;  %v2568_v14 = vpop.permute.xlu2 %2567 }
 0x2ad   : > { %v4362_v19 = vmax.f32 %v4259_v3, %v4326_v53  ;;  %2648 = vst.msk [vmem:[#allocation2 + $0x130] sm:$0xf] %vm1157_vm8, %v2566_v39  ;;  %v2564_v34 = vpop.permute.xlu0 %2563 }
 0x2ae   : > { %2647 = vst.msk [vmem:[#allocation2 + $0x124] sm:$0xf] %vm1157_vm8, %v2564_v34  ;;  %v4935_v52 = vld [vmem:[#allocation2 + $0x128] sm:$0xf0] }
 0x2af   : > { %v5008_v7 = vpack.c.bf16 %v4362_v19, %v4361_v48  ;;  %3199 = vst.msk [vmem:[#allocation2 + $0x124] sm:$0xf] %vm1485_vm4, %v3116_v51  ;;  %v4737_v13 = vor.u32 %v4935_v52, %v4736_v38  ;;  %v4938_v30 = vld [vmem:[#allocation2 + $0x140] sm:$0xf0] }
 0x2b0   : > { %4895 = vmatmul.msk.bf16.gmra.mxu3 %vm3959_vm2, %v4805_v25 }
 0x2b1   : > { %5066 = vst [vmem:[%s7153_s29 + $0x38] sm:$0xff] %v5008_v7   ;;  %4082 = vmatmul.bf16.gmra.mxu0 %v4737_v13 }
 0x2b4   : > { %v1430_v9 = vpop.permute.xlu1 %1429  ;;  %v3122_v51 = vpop.permute.xlu2 %3121 }
 0x2b5   : > { %1512 = vst.msk [vmem:[#allocation2 + $0x138] sm:$0xf] %vm1485_vm4, %v1430_v9  ;;  %v3118_v31 = vpop.permute.xlu0 %3117  ;;  %v4063_v43 = vpop.f32.mrf.mxu0 }
 0x2b6   : > { %3200 = vst.msk [vmem:[#allocation2 + $0x130] sm:$0xf] %vm1485_vm4, %v3118_v31  ;;  %v4934_v0 = vld [vmem:[#allocation2 + $0x124] sm:$0xf]  ;;  %v4064_v56 = vadd.f32 %v7520_v42, %v4063_v43  ;;  %v4197_v3 = vpop.f32.mrf.mxu3 }
 0x2bc   : > { %v2243_v21 = vpop.permute.xlu1 %2242  ;;  %v4748_v32 = vld [vmem:[#allocation2 + $0x138] sm:$0xf] }
 0x2bd   : > { %v2241_v17 = vpop.permute.xlu0 %2240  ;;  %2323 = vst.msk [vmem:[#allocation2 + $0x148] sm:$0xf] %vm826_vm7, %v2243_v21  ;;  %v4749_v55 = vor.u32 %v4938_v30, %v4748_v32  ;;  %v4738_v6 = vld [vmem:[#allocation2 + $0x12c] sm:$0xf0]  ;;  %v4065_v28 = vpop.f32.mrf.mxu0 }
 0x2be   : > { %2322 = vst.msk [vmem:[#allocation2 + $0x13c] sm:$0xf] %vm826_vm7, %v2241_v17  ;;  %v4741_v61 = vor.u32 %v4934_v0, %v4738_v6  ;;  %v4066_v8 = vadd.f32 %v7520_v42, %v4065_v28  ;;  %v4199_v11 = vpop.f32.mrf.mxu3 }
 0x2bf   : > { %2649 = vst.msk [vmem:[#allocation2 + $0x13c] sm:$0xf] %vm1157_vm8, %v2568_v14 }
 0x2c0   : > { %4181 = vmatmul.bf16.gmra.mxu1 %v4741_v61 }
 0x2c1   : > { %4087 = vmatmul.bf16.gmra.mxu0 %v4749_v55 }
 0x2c4   : > { %v3120_v16 = vpop.permute.xlu1 %3119 }
 0x2c5   : > { %v4162_v26 = vpop.f32.mrf.mxu1  ;;  %v2570_v10 = vpop.permute.xlu0 %2569  ;;  %3201 = vst.msk [vmem:[#allocation2 + $0x13c] sm:$0xf] %vm1485_vm4, %v3120_v16 }
 0x2c6   : > { %2650 = vst.msk [vmem:[#allocation2 + $0x148] sm:$0xf] %vm1157_vm8, %v2570_v10  ;;  %v4163_v58 = vadd.f32 %v4162_v26, %v4064_v56  ;;  %v4101_v56 = vadd.f32 %v7520_v42, %v7530_v4 }
 0x2c7   : > { %3202 = vst.msk [vmem:[#allocation2 + $0x148] sm:$0xf] %vm1485_vm4, %v3122_v51 }
 0x2c8   : > { %v4262_v33 = vadd.f32 %v7258_v22, %v4163_v58 }
 0x2ca   : > { %v4327_v40 = vmul.f32 0.1, %v4262_v33 }
 0x2cc   : > { %v4937_v47 = vld [vmem:[#allocation2 + $0x13c] sm:$0xf]  ;;  %v4363_v12 = vmax.f32 %v4262_v33, %v4327_v40  ;;  %v4200_v33 = vadd.f32 %v4199_v11, %v4101_v56  ;;  %v4106_v11 = vadd.f32 %v7520_v42, %v7567_v60 }
 0x2cd   : > { %v4164_v5 = vpop.f32.mrf.mxu1 }
 0x2ce   : > { %v4165_v63 = vadd.f32 %v4164_v5, %v4066_v8  ;;  %v4750_v20 = vld [vmem:[#allocation2 + $0x144] sm:$0xf0] }
 0x2cf   : > { %v4753_v15 = vor.u32 %v4937_v47, %v4750_v20 }
 0x2d0   : > { %v4264_v35 = vadd.f32 %v7308_v54, %v4165_v63 }
 0x2d1   : > { %4186 = vmatmul.bf16.gmra.mxu1 %v4753_v15 }
 0x2d2   : > { %v4328_v46 = vmul.f32 0.1, %v4264_v35 }
 0x2d4   : > { %v4364_v62 = vmax.f32 %v4264_v35, %v4328_v46 }
 0x2d6   : > { %v5013_v29 = vpack.c.bf16 %v4364_v62, %v4363_v12 }
 0x2d8   : > { %5067 = vst [vmem:[%s7153_s29 + $0x40] sm:$0xff] %v5013_v29   ;;  %v4104_v29 = vadd.f32 %v7520_v42, %v7545_v36 }
 0x2db   : > { %v4202_v25 = vpop.f32.mrf.mxu3 }
 0x2dd   : > { %v4068_v59 = vpop.f32.mrf.mxu0 }
 0x2de   : > { %v4069_v22 = vadd.f32 %v7520_v42, %v4068_v59 }
 0x2e3   : > { %v4204_v9 = vpop.f32.mrf.mxu3 }
 0x2e5   : > { %v4070_v48 = vpop.f32.mrf.mxu0 }
 0x2e6   : > { %v4071_v19 = vadd.f32 %v7520_v42, %v4070_v48  ;;  %v4205_v48 = vadd.f32 %v4204_v9, %v4106_v11 }
 0x2ed   : > { %v4167_v53 = vpop.f32.mrf.mxu1 }
 0x2ee   : > { %v4168_v39 = vadd.f32 %v4167_v53, %v4069_v22 }
 0x2f0   : > { %v4267_v54 = vadd.f32 %v7353_v1, %v4168_v39 }
 0x2f2   : > { %v4329_v52 = vmul.f32 0.1, %v4267_v54 }
 0x2f4   : > { %v4365_v31 = vmax.f32 %v4267_v54, %v4329_v52 }
 0x2f5   : > { %v4169_v34 = vpop.f32.mrf.mxu1 }
 0x2f6   : > { %v4170_v38 = vadd.f32 %v4169_v34, %v4071_v19 }
 0x2f8   : > { %v4269_v7 = vadd.f32 %v7384_v2, %v4170_v38  ;;  %v4099_v2 = vadd.f32 %v7520_v42, %v7497_v44 }
 0x2fa   : > { %v4330_v13 = vmul.f32 0.1, %v4269_v7  ;;  %v4198_v16 = vadd.f32 %v4197_v3, %v4099_v2  ;;  %v4203_v3 = vadd.f32 %v4202_v25, %v4104_v29  ;;  %v4111_v2 = vadd.f32 %v7520_v42, %v7606_v50 }
 0x2fc   : > { %v4366_v14 = vmax.f32 %v4269_v7, %v4330_v13  ;;  %v4073_v32 = vpop.f32.mrf.mxu0 }
 0x2fd   : > { %v4074_v0 = vadd.f32 %v7520_v42, %v4073_v32 }
 0x2fe   : > { %v5018_v30 = vpack.c.bf16 %v4366_v14, %v4365_v31 }
 0x300   : > { %5068 = vst [vmem:[%s7153_s29 + $0x48] sm:$0xff] %v5018_v30  }
 0x303   : > { %v7665_v21 = vpop.f32.mrf.mxu3 }
 0x304   : > { %v4075_v6 = vpop.f32.mrf.mxu0 }
 0x305   : > { %v4076_v43 = vadd.f32 %v7520_v42, %v4075_v6 }
 0x30b   : > { %v7667_v17 = vpop.f32.mrf.mxu3 }
 0x30e   : > { %v4172_v55 = vpop.f32.mrf.mxu1 }
 0x30f   : > { %v4173_v1 = vadd.f32 %v4172_v55, %v4074_v0  ;;  %v4109_v55 = vadd.f32 %v7520_v42, %v7579_v41 }
 0x311   : > { %v4272_v51 = vadd.f32 %v7423_v57, %v4173_v1  ;;  %v4208_v6 = vadd.f32 %v7665_v21, %v4109_v55 }
 0x313   : > { %v4296_v61 = vpop.f32.mrf.mxu3  ;;  %v4331_v28 = vmul.f32 0.1, %v4272_v51 }
 0x314   : > { %v4297_v58 = vadd.f32 %v4296_v61, %v4198_v16 }
 0x315   : > { %v4367_v20 = vmax.f32 %v4272_v51, %v4331_v28  ;;  %v4078_v40 = vpop.f32.mrf.mxu0 }
 0x316   : > { %v4174_v26 = vpop.f32.mrf.mxu1  ;;  %v4341_v44 = vmul.f32 0.1, %v4297_v58  ;;  %v4079_v59 = vadd.f32 %v7520_v42, %v4078_v40 }
 0x317   : > { %v4175_v10 = vadd.f32 %v4174_v26, %v4076_v43 }
 0x318   : > { %v4377_v46 = vmax.f32 %v4297_v58, %v4341_v44 }
 0x319   : > { %v4274_v8 = vadd.f32 %v7453_v37, %v4175_v10 }
 0x31b   : > { %v4332_v47 = vmul.f32 0.1, %v4274_v8  ;;  %v4298_v5 = vpop.f32.mrf.mxu3 }
 0x31c   : > { %v4299_v63 = vadd.f32 %v4298_v5, %v4200_v33 }
 0x31d   : > { %v4368_v15 = vmax.f32 %v4274_v8, %v4332_v47  ;;  %v4080_v39 = vpop.f32.mrf.mxu0 }
 0x31e   : > { %v4342_v57 = vmul.f32 0.1, %v4299_v63  ;;  %v4081_v54 = vadd.f32 %v7520_v42, %v4080_v39 }
 0x31f   : > { %v5023_v35 = vpack.c.bf16 %v4368_v15, %v4367_v20 }
 0x320   : > { %v4378_v12 = vmax.f32 %v4299_v63, %v4342_v57 }
 0x321   : > { %5069 = vst [vmem:[%s7153_s29 + $0x50] sm:$0xff] %v5023_v35  }
 0x322   : > { %v5048_v4 = vpack.c.bf16 %v4378_v12, %v4377_v46 }
 0x323   : > { %v4301_v62 = vpop.f32.mrf.mxu3 }
 0x324   : > { %5074 = vst [vmem:[%s7153_s29 + $0x78] sm:$0xff] %v5048_v4   ;;  %v4302_v53 = vadd.f32 %v4301_v62, %v4203_v3 }
 0x325   : > { %v4177_v37 = vpop.f32.mrf.mxu1 }
 0x326   : > { %v4178_v22 = vadd.f32 %v4177_v37, %v4079_v59  ;;  %v4343_v34 = vmul.f32 0.1, %v4302_v53 }
 0x328   : > { %v4277_v38 = vadd.f32 %v7480_v18, %v4178_v22  ;;  %v4379_v13 = vmax.f32 %v4302_v53, %v4343_v34 }
 0x32a   : > { %v4333_v31 = vmul.f32 0.1, %v4277_v38 }
 0x32b   : > { %v4303_v19 = vpop.f32.mrf.mxu3 }
 0x32c   : > { %v4304_v36 = vadd.f32 %v4303_v19, %v4205_v48  ;;  %v4369_v0 = vmax.f32 %v4277_v38, %v4333_v31 }
 0x32d   : > { %v4179_v52 = vpop.f32.mrf.mxu1 }
 0x32e   : > { %v4344_v7 = vmul.f32 0.1, %v4304_v36  ;;  %v4180_v25 = vadd.f32 %v4179_v52, %v4081_v54  ;;  %v4083_v1 = vpop.f32.mrf.mxu0 }
 0x32f   : > { %v4084_v41 = vadd.f32 %v7520_v42, %v4083_v1 }
 0x330   : > { %v4380_v14 = vmax.f32 %v4304_v36, %v4344_v7  ;;  %v4279_v60 = vadd.f32 %v7501_v49, %v4180_v25  ;;  %v4210_v49 = vadd.f32 %v7667_v17, %v4111_v2 }
 0x332   : > { %v5053_v30 = vpack.c.bf16 %v4380_v14, %v4379_v13  ;;  %v4334_v32 = vmul.f32 0.1, %v4279_v60 }
 0x333   : > { %v4306_v9 = vpop.f32.mrf.mxu3 }
 0x334   : > { %5075 = vst [vmem:[%s7153_s29 + $0x80] sm:$0xff] %v5053_v30   ;;  %v4370_v18 = vmax.f32 %v4279_v60, %v4334_v32  ;;  %v4307_v43 = vadd.f32 %v4306_v9, %v4208_v6 }
 0x336   : > { %v5028_v61 = vpack.c.bf16 %v4370_v18, %v4369_v0  ;;  %v4345_v16 = vmul.f32 0.1, %v4307_v43  ;;  %v4085_v56 = vpop.f32.mrf.mxu0 }
 0x337   : > { %v4086_v50 = vadd.f32 %v7520_v42, %v4085_v56 }
 0x338   : > { %5070 = vst [vmem:[%s7153_s29 + $0x58] sm:$0xff] %v5028_v61   ;;  %v4381_v28 = vmax.f32 %v4307_v43, %v4345_v16 }
 0x33b   : > { %v4308_v51 = vpop.f32.mrf.mxu3 }
 0x33c   : > { %v4309_v26 = vadd.f32 %v4308_v51, %v4210_v49 }
 0x33d   : > { %v4182_v10 = vpop.f32.mrf.mxu1 }
 0x33e   : > { %v4346_v58 = vmul.f32 0.1, %v4309_v26  ;;  %v4183_v21 = vadd.f32 %v4182_v10, %v4084_v41  ;;  %v4088_v44 = vpop.f32.mrf.mxu0 }
 0x33f   : > { %v4089_v12 = vadd.f32 %v7520_v42, %v4088_v44 }
 0x340   : > { %v4382_v8 = vmax.f32 %v4309_v26, %v4346_v58  ;;  %v4282_v47 = vadd.f32 %v7534_v45, %v4183_v21 }
 0x342   : > { %v5058_v33 = vpack.c.bf16 %v4382_v8, %v4381_v28  ;;  %v4335_v63 = vmul.f32 0.1, %v4282_v47 }
 0x344   : > { %5076 = vst [vmem:[%s7153_s29 + $0x88] sm:$0xff] %v5058_v33   ;;  %v4371_v57 = vmax.f32 %v4282_v47, %v4335_v63 }
 0x345   : > { %v4184_v5 = vpop.f32.mrf.mxu1 }
 0x346   : > { %v4185_v17 = vadd.f32 %v4184_v5, %v4086_v50  ;;  %v4090_v62 = vpop.f32.mrf.mxu0 }
 0x347   : > { %v4091_v29 = vadd.f32 %v7520_v42, %v4090_v62 }
 0x348   : > { %v4284_v20 = vadd.f32 %v7551_v24, %v4185_v17 }
 0x34a   : > { %v4336_v15 = vmul.f32 0.1, %v4284_v20 }
 0x34c   : > { %v4372_v40 = vmax.f32 %v4284_v20, %v4336_v15 }
 0x34e   : > { %v5033_v35 = vpack.c.bf16 %v4372_v40, %v4371_v57  ;;  %v4187_v46 = vpop.f32.mrf.mxu1 }
 0x34f   : > { %v4188_v4 = vadd.f32 %v4187_v46, %v4089_v12 }
 0x350   : > { %5071 = vst [vmem:[%s7153_s29 + $0x60] sm:$0xff] %v5033_v35  }
 0x351   : > { %v4287_v45 = vadd.f32 %v7570_v27, %v4188_v4 }
 0x353   : > { %v4337_v59 = vmul.f32 0.1, %v4287_v45 }
 0x355   : > { %v4373_v53 = vmax.f32 %v4287_v45, %v4337_v59 }
 0x356   : > { %v4189_v37 = vpop.f32.mrf.mxu1 }
 0x357   : > { %v4190_v3 = vadd.f32 %v4189_v37, %v4091_v29 }
 0x359   : > { %v4289_v24 = vadd.f32 %v7593_v23, %v4190_v3 }
 0x35b   : > { %v4338_v11 = vmul.f32 0.1, %v4289_v24 }
 0x35d   : > { %v4374_v22 = vmax.f32 %v4289_v24, %v4338_v11 }
 0x35f   : > { %v5038_v39 = vpack.c.bf16 %v4374_v22, %v4373_v53 }
 0x361   : > { %5072 = vst [vmem:[%s7153_s29 + $0x68] sm:$0xff] %v5038_v39  }
 0x362 PF: > { %s13_s14 = sadd.s32 1, %s5150_s14   ;;  %s7745_s12 = smov %s5146_s13 }
 0x363   : > { %p10_p5 = scmp.ge.s32.totalorder %s13_s14, 4   ;;  %s7746_s13 = smov %s7748_s15 }
 0x365   :  { %12 = sbr.rel (!%p10_p5) target bundleno = 2 (0x2), region = 68 }

</bundles_post_ra>
